<compile_context>
chip_gen: v7x
topology: tpu7x:2x2x1
jax: 0.10.0
libtpu: 0.0.40
codegen_flags: <defaults>
</compile_context>

<pallas_src>
import functools

import jax
import jax.numpy as jnp
from jax.experimental import pallas as pl
from jax.experimental.pallas import tpu as pltpu


# ---------------------------------------------------------------------------
# Pallas kernel: one grid step handles WB windows (WB*N rows).
# ---------------------------------------------------------------------------
def _window_attn_kernel(x_ref, wqkv_ref, bqkv_ref, bias_ref, wproj_ref,
                        bproj_ref, o_ref, *, num_heads, head_dim, dim, wb, n):
    x = x_ref[...]                                             # (WB*N, C)

    # Fused QKV projection (softmax scale already folded into the Q columns):
    # (WB*N, C) @ (C, 3C) + (1, 3C)   -> M >= 128 GEMM on the MXU.
    qkv = jnp.dot(x, wqkv_ref[...],
                  preferred_element_type=jnp.float32) + bqkv_ref[...]

    acc = None
    for h in range(num_heads):                                 # static, small H
        lo = h * head_dim
        q_h = qkv[:, lo:lo + head_dim].reshape(wb, n, head_dim)
        k_h = qkv[:, dim + lo:dim + lo + head_dim].reshape(wb, n, head_dim)
        v_h = qkv[:, 2 * dim + lo:2 * dim + lo + head_dim].reshape(wb, n, head_dim)

        # Scores batched over the WB windows, contraction on the trailing dim
        # (no explicit k.T / relayout before the MXU push).
        s = jnp.einsum('bnd,bmd->bnm', q_h, k_h,
                       preferred_element_type=jnp.float32)     # (WB, N, N)
        # single fused add: relative-position bias + shifted-window mask
        s = s + bias_ref[h]

        # numerically-stable softmax; denominator via EUP approx reciprocal
        s = s - jnp.max(s, axis=-1, keepdims=True)
        p = jnp.exp(s)
        p = p * pl.reciprocal(jnp.sum(p, axis=-1, keepdims=True), approx=True)

        ctx = jnp.einsum('bnm,bmd->bnd', p, v_h,
                         preferred_element_type=jnp.float32)   # (WB, N, D)
        ctx = ctx.reshape(wb * n, head_dim)

        # Output projection accumulated per head against a Wproj row-slice:
        # replaces concatenate + single GEMM with pure MXU accumulation.
        part = jnp.dot(ctx, wproj_ref[lo:lo + head_dim, :],
                       preferred_element_type=jnp.float32)     # (WB*N, C)
        acc = part if acc is None else acc + part

    o_ref[...] = (acc + bproj_ref[...]).astype(o_ref.dtype)


# ---------------------------------------------------------------------------
# Window-batch size: multiple of nw (so the fused bias+mask tile is step
# invariant), divides B_, makes the per-step GEMM M-dim >= 128, and keeps the
# resident VMEM footprint bounded.
# ---------------------------------------------------------------------------
def _choose_window_batch(b_, nw, n, c, num_heads,
                         min_rows=128, vmem_budget=24 * 2**20):
    def vmem_bytes(w):
        rows = w * n
        return (2 * rows * c * 4            # double-buffered x tile
                + 2 * rows * c * 4          # double-buffered out tile
                + num_heads * w * n * n * 4  # fused bias+mask (resident)
                + rows * 3 * c * 4)         # live qkv value
    cands = [w for w in range(nw, b_ + 1, nw) if b_ % w == 0]
    best = cands[0]
    for w in cands:
        if vmem_bytes(w) > vmem_budget:
            break
        best = w
        if w * n >= min_rows:
            break
    return best


# ---------------------------------------------------------------------------
# Python wrapper
# ---------------------------------------------------------------------------
def window_attention(x, params, window_size, num_heads, mask=None):
    """x: (B_, N, C).  mask: (nw, N, N) or None.  Returns (B_, N, C)."""
    b_, n, c = x.shape
    head_dim = c // num_heads
    scale = head_dim ** (-0.5)
    out_dtype = x.dtype

    wqkv, bqkv, wproj, bproj, rel_bias_table, rel_pos_index = params

    # ---- one-time parameter prep (plain JAX glue) ----
    # fold the softmax scale into the Q columns of the QKV projection
    col_scale = jnp.concatenate(
        [jnp.full((c,), scale, jnp.float32), jnp.ones((2 * c,), jnp.float32)])
    wqkv_s = wqkv.astype(jnp.float32) * col_scale[None, :]
    bqkv_s = (bqkv.astype(jnp.float32) * col_scale).reshape(1, 3 * c)
    bproj_2d = bproj.astype(jnp.float32).reshape(1, c)

    # relative position bias gather -> (H, N, N)
    rel_bias = rel_bias_table[rel_pos_index.reshape(-1)]
    rel_bias = rel_bias.reshape(n, n, num_heads).transpose(2, 0, 1)
    rel_bias = rel_bias.astype(jnp.float32)

    if mask is None:
        mask_arr = jnp.zeros((1, n, n), jnp.float32)
        nw = 1
    else:
        mask_arr = mask.astype(jnp.float32)
        nw = mask_arr.shape[0]
    assert b_ % nw == 0, "B_ must be a multiple of the number of windows"

    wb = _choose_window_batch(b_, nw, n, c, num_heads)

    # Fuse bias + mask for one window-group.  Grid-invariant because wb % nw == 0:
    # global window g*wb + j uses mask index (j % nw), independent of step g.
    mask_wb = jnp.tile(mask_arr, (wb // nw, 1, 1))                  # (WB, N, N)
    bias_fused = rel_bias[:, None, :, :] + mask_wb[None, :, :, :]   # (H, WB, N, N)

    # lane-friendly flat (B_*N, C) view of x / out (free reshape in XLA)
    x2d = x.reshape(b_ * n, c).astype(jnp.float32)
    rows = wb * n

    kernel = functools.partial(
        _window_attn_kernel, num_heads=num_heads, head_dim=head_dim,
        dim=c, wb=wb, n=n)

    grid_spec = pltpu.PrefetchScalarGridSpec(
        num_scalar_prefetch=0,
        grid=(b_ // wb,),
        in_specs=[
            pl.BlockSpec((rows, c), lambda g: (g, 0)),                   # x
            pl.BlockSpec((c, 3 * c), lambda g: (0, 0)),                  # Wqkv (scaled)
            pl.BlockSpec((1, 3 * c), lambda g: (0, 0)),                  # bqkv (scaled)
            pl.BlockSpec((num_heads, wb, n, n), lambda g: (0, 0, 0, 0)), # bias+mask
            pl.BlockSpec((c, c), lambda g: (0, 0)),                      # Wproj
            pl.BlockSpec((1, c), lambda g: (0, 0)),                      # bproj
        ],
        out_specs=pl.BlockSpec((rows, c), lambda g: (g, 0)),
    )

    out2d = pl.pallas_call(
        kernel,
        out_shape=jax.ShapeDtypeStruct((b_ * n, c), out_dtype),
        grid_spec=grid_spec,
        compiler_params=pltpu.CompilerParams(
            dimension_semantics=("parallel",),          # shards across v7x TCs
            vmem_limit_bytes=64 * 1024 * 1024),
    )(x2d, wqkv_s, bqkv_s, bias_fused, wproj.astype(jnp.float32), bproj_2d)

    return out2d.reshape(b_, n, c)


# ---------------------------------------------------------------------------
# Parameter setup (deterministic, synthetic) + relative position index
# ---------------------------------------------------------------------------
def make_params(key, dim, window_size, num_heads):
    wh, ww = window_size
    k1, k2, k3, k4, k5 = jax.random.split(key, 5)
    wqkv = jax.random.normal(k1, (dim, 3 * dim), jnp.float32) * 0.02
    bqkv = jax.random.normal(k2, (3 * dim,), jnp.float32) * 0.02
    wproj = jax.random.normal(k3, (dim, dim), jnp.float32) * 0.02
    bproj = jax.random.normal(k4, (dim,), jnp.float32) * 0.02
    rel_bias_table = jax.random.normal(
        k5, ((2 * wh - 1) * (2 * ww - 1), num_heads), jnp.float32) * 0.02

    # relative_position_index exactly as in the PyTorch __init__
    coords_h = jnp.arange(wh)
    coords_w = jnp.arange(ww)
    coords = jnp.stack(jnp.meshgrid(coords_h, coords_w, indexing="ij"))  # (2,Wh,Ww)
    coords_flat = coords.reshape(2, -1)                                  # (2, N)
    rel = coords_flat[:, :, None] - coords_flat[:, None, :]              # (2, N, N)
    rel = rel.transpose(1, 2, 0)                                         # (N, N, 2)
    rel = rel.at[:, :, 0].add(wh - 1)
    rel = rel.at[:, :, 1].add(ww - 1)
    rel = rel.at[:, :, 0].multiply(2 * ww - 1)
    rel_pos_index = rel.sum(-1)                                          # (N, N)

    return (wqkv, bqkv, wproj, bproj, rel_bias_table, rel_pos_index)


# ---------------------------------------------------------------------------
# Pure-JAX reference (mirrors the PyTorch forward) for a sanity check
# ---------------------------------------------------------------------------
def window_attention_ref(x, params, window_size, num_heads, mask=None):
    wqkv, bqkv, wproj, bproj, rel_bias_table, rel_pos_index = params
    b_, n, c = x.shape
    hd = c // num_heads
    scale = hd ** (-0.5)
    qkv = (x @ wqkv + bqkv).reshape(b_, n, 3, num_heads, hd).transpose(2, 0, 3, 1, 4)
    q, k, v = qkv[0], qkv[1], qkv[2]
    q = q * scale
    attn = jnp.einsum("bhnd,bhmd->bhnm", q, k)
    rel_bias = rel_bias_table[rel_pos_index.reshape(-1)].reshape(n, n, num_heads)
    rel_bias = rel_bias.transpose(2, 0, 1)
    attn = attn + rel_bias[None]
    if mask is not None:
        nw = mask.shape[0]
        attn = attn.reshape(b_ // nw, nw, num_heads, n, n) + mask[None, :, None]
        attn = attn.reshape(-1, num_heads, n, n)
    attn = jax.nn.softmax(attn, axis=-1)
    out = jnp.einsum("bhnm,bhmd->bhnd", attn, v).transpose(0, 2, 1, 3).reshape(b_, n, c)
    return out @ wproj + bproj


# ---------------------------------------------------------------------------
if __name__ == "__main__":
    dim = 32
    num_heads = 4
    window_size = (4, 4)          # N = 16
    n = window_size[0] * window_size[1]
    batch = 4
    nw = 4                        # number of windows per image
    b_ = batch * nw               # 16  -> WB=8 windows/step (128 rows), grid=(2,)

    key = jax.random.PRNGKey(0)
    kx, km, kp = jax.random.split(key, 3)

    x = jax.random.normal(kx, (b_, n, dim), jnp.float32)

    # 0 / -100 shifted-window mask, as produced by SwinTransformerBlock
    mask_bits = jax.random.bernoulli(km, 0.2, (nw, n, n))
    mask = jnp.where(mask_bits, -100.0, 0.0).astype(jnp.float32)

    params = make_params(kp, dim, window_size, num_heads)

    out = jax.block_until_ready(
        window_attention(x, params, window_size, num_heads, mask=mask))
    ref = window_attention_ref(x, params, window_size, num_heads, mask=mask)
    assert out.shape == (b_, n, dim)
    # tolerance accounts for the EUP approximate reciprocal in the softmax
    assert jnp.allclose(out, ref, atol=2e-3, rtol=2e-3), "mismatch vs reference (masked)"

    # also exercise the mask=None path
    out2 = jax.block_until_ready(
        window_attention(x, params, window_size, num_heads, mask=None))
    ref2 = window_attention_ref(x, params, window_size, num_heads, mask=None)
    assert jnp.allclose(out2, ref2, atol=2e-3, rtol=2e-3), "mismatch vs reference (no mask)"

    print("KERNEL_OK")
</pallas_src>

<mosaic_0001>
module attributes {stable_mosaic.version = 11 : i64} {
  func.func @_window_attn_kernel(%arg0: i32, %arg1: memref<128x32xf32, #tpu.memory_space<vmem>>, %arg2: memref<32x96xf32, #tpu.memory_space<vmem>>, %arg3: memref<1x96xf32, #tpu.memory_space<vmem>>, %arg4: memref<4x8x16x16xf32, #tpu.memory_space<vmem>>, %arg5: memref<32x32xf32, #tpu.memory_space<vmem>>, %arg6: memref<1x32xf32, #tpu.memory_space<vmem>>, %arg7: memref<128x32xf32, #tpu.memory_space<vmem>>) attributes {dimension_semantics = [#tpu.dimension_semantics<parallel>], iteration_bounds = array<i64: 2>, scalar_prefetch = 0 : i64, scratch_operands = 0 : i64, tpu.core_type = #tpu.core_type<tc>, window_params = [{transform_indices = @transform_0, window_bounds = array<i64: 128, 32>}, {pipeline_mode = #tpu.pipeline_mode<synchronous>, transform_indices = @transform_1, window_bounds = array<i64: 32, 96>}, {pipeline_mode = #tpu.pipeline_mode<synchronous>, transform_indices = @transform_2, window_bounds = array<i64: 1, 96>}, {pipeline_mode = #tpu.pipeline_mode<synchronous>, transform_indices = @transform_3, window_bounds = array<i64: 4, 8, 16, 16>}, {pipeline_mode = #tpu.pipeline_mode<synchronous>, transform_indices = @transform_4, window_bounds = array<i64: 32, 32>}, {pipeline_mode = #tpu.pipeline_mode<synchronous>, transform_indices = @transform_5, window_bounds = array<i64: 1, 32>}, {transform_indices = @transform_6, window_bounds = array<i64: 128, 32>}]} {
    %c0 = arith.constant 0 : index
    %c0_0 = arith.constant 0 : index
    %0 = vector.load %arg1[%c0, %c0_0] : memref<128x32xf32, #tpu.memory_space<vmem>>, vector<128x32xf32>
    %c0_1 = arith.constant 0 : index
    %c0_2 = arith.constant 0 : index
    %1 = vector.load %arg2[%c0_1, %c0_2] : memref<32x96xf32, #tpu.memory_space<vmem>>, vector<32x96xf32>
    %cst = arith.constant dense<0.000000e+00> : vector<128x96xf32>
    %2 = tpu.matmul %0, %1, %cst {dimension_numbers = #tpu.dot_dimension_numbers<[1], [0], [0], [1], [0, 0, 1, 1], [], []>} : vector<128x32xf32>, vector<32x96xf32>, vector<128x96xf32> -> vector<128x96xf32>
    %c0_3 = arith.constant 0 : index
    %c0_4 = arith.constant 0 : index
    %3 = vector.load %arg3[%c0_3, %c0_4] : memref<1x96xf32, #tpu.memory_space<vmem>>, vector<1x96xf32>
    %4 = vector.broadcast %3 : vector<1x96xf32> to vector<128x96xf32>
    %5 = arith.addf %2, %4 : vector<128x96xf32>
    %6 = vector.extract_strided_slice %5 {offsets = [0, 0], sizes = [128, 8], strides = [1, 1]} : vector<128x96xf32> to vector<128x8xf32>
    %7 = vector.shape_cast %6 : vector<128x8xf32> to vector<8x16x8xf32>
    %8 = vector.extract_strided_slice %5 {offsets = [0, 32], sizes = [128, 8], strides = [1, 1]} : vector<128x96xf32> to vector<128x8xf32>
    %9 = vector.shape_cast %8 : vector<128x8xf32> to vector<8x16x8xf32>
    %10 = vector.extract_strided_slice %5 {offsets = [0, 64], sizes = [128, 8], strides = [1, 1]} : vector<128x96xf32> to vector<128x8xf32>
    %11 = vector.shape_cast %10 : vector<128x8xf32> to vector<8x16x8xf32>
    "tpu.trace_start"() <{level = 10 : i32, message = "bnd,bmd->bnm"}> : () -> ()
    %cst_5 = arith.constant dense<0.000000e+00> : vector<8x16x16xf32>
    %12 = tpu.matmul %7, %9, %cst_5 {dimension_numbers = #tpu.dot_dimension_numbers<[2], [2], [1], [1], [0, 0, 0, 1, 1, 1], [0], [0]>} : vector<8x16x8xf32>, vector<8x16x8xf32>, vector<8x16x16xf32> -> vector<8x16x16xf32>
    "tpu.trace_stop"() : () -> ()
    %c0_6 = arith.constant 0 : index
    %c0_7 = arith.constant 0 : index
    %c0_8 = arith.constant 0 : index
    %c0_9 = arith.constant 0 : index
    %13 = vector.load %arg4[%c0_6, %c0_7, %c0_8, %c0_9] : memref<4x8x16x16xf32, #tpu.memory_space<vmem>>, vector<1x8x16x16xf32>
    %14 = vector.shape_cast %13 : vector<1x8x16x16xf32> to vector<8x16x16xf32>
    %15 = arith.addf %12, %14 : vector<8x16x16xf32>
    %cst_10 = arith.constant dense<0xFF800000> : vector<8x16xf32>
    %16 = vector.multi_reduction <maximumf>, %15, %cst_10 [2] : vector<8x16x16xf32> to vector<8x16xf32>
    %17 = vector.shape_cast %16 : vector<8x16xf32> to vector<8x16x1xf32>
    %18 = vector.broadcast %17 : vector<8x16x1xf32> to vector<8x16x16xf32>
    %19 = arith.subf %15, %18 : vector<8x16x16xf32>
    %20 = math.exp %19 : vector<8x16x16xf32>
    %cst_11 = arith.constant dense<0.000000e+00> : vector<8x16xf32>
    %21 = vector.multi_reduction <add>, %20, %cst_11 [2] : vector<8x16x16xf32> to vector<8x16xf32>
    %22 = vector.shape_cast %21 : vector<8x16xf32> to vector<8x16x1xf32>
    %23 = tpu.reciprocal %22 {approx = true} : vector<8x16x1xf32> -> vector<8x16x1xf32>
    %24 = vector.broadcast %23 : vector<8x16x1xf32> to vector<8x16x16xf32>
    %25 = arith.mulf %20, %24 : vector<8x16x16xf32>
    "tpu.trace_start"() <{level = 10 : i32, message = "bnm,bmd->bnd"}> : () -> ()
    %cst_12 = arith.constant dense<0.000000e+00> : vector<8x16x8xf32>
    %26 = tpu.matmul %25, %11, %cst_12 {dimension_numbers = #tpu.dot_dimension_numbers<[2], [1], [1], [2], [0, 0, 0, 1, 1, 2], [0], [0]>} : vector<8x16x16xf32>, vector<8x16x8xf32>, vector<8x16x8xf32> -> vector<8x16x8xf32>
    "tpu.trace_stop"() : () -> ()
    %27 = vector.shape_cast %26 : vector<8x16x8xf32> to vector<128x8xf32>
    %c0_13 = arith.constant 0 : index
    %c0_14 = arith.constant 0 : index
    %28 = vector.load %arg5[%c0_13, %c0_14] : memref<32x32xf32, #tpu.memory_space<vmem>>, vector<8x32xf32>
    %cst_15 = arith.constant dense<0.000000e+00> : vector<128x32xf32>
    %29 = tpu.matmul %27, %28, %cst_15 {dimension_numbers = #tpu.dot_dimension_numbers<[1], [0], [0], [1], [0, 0, 1, 1], [], []>} : vector<128x8xf32>, vector<8x32xf32>, vector<128x32xf32> -> vector<128x32xf32>
    %30 = vector.extract_strided_slice %5 {offsets = [0, 8], sizes = [128, 8], strides = [1, 1]} : vector<128x96xf32> to vector<128x8xf32>
    %31 = vector.shape_cast %30 : vector<128x8xf32> to vector<8x16x8xf32>
    %32 = vector.extract_strided_slice %5 {offsets = [0, 40], sizes = [128, 8], strides = [1, 1]} : vector<128x96xf32> to vector<128x8xf32>
    %33 = vector.shape_cast %32 : vector<128x8xf32> to vector<8x16x8xf32>
    %34 = vector.extract_strided_slice %5 {offsets = [0, 72], sizes = [128, 8], strides = [1, 1]} : vector<128x96xf32> to vector<128x8xf32>
    %35 = vector.shape_cast %34 : vector<128x8xf32> to vector<8x16x8xf32>
    "tpu.trace_start"() <{level = 10 : i32, message = "bnd,bmd->bnm"}> : () -> ()
    %cst_16 = arith.constant dense<0.000000e+00> : vector<8x16x16xf32>
    %36 = tpu.matmul %31, %33, %cst_16 {dimension_numbers = #tpu.dot_dimension_numbers<[2], [2], [1], [1], [0, 0, 0, 1, 1, 1], [0], [0]>} : vector<8x16x8xf32>, vector<8x16x8xf32>, vector<8x16x16xf32> -> vector<8x16x16xf32>
    "tpu.trace_stop"() : () -> ()
    %c1 = arith.constant 1 : index
    %c0_17 = arith.constant 0 : index
    %c0_18 = arith.constant 0 : index
    %c0_19 = arith.constant 0 : index
    %37 = vector.load %arg4[%c1, %c0_17, %c0_18, %c0_19] : memref<4x8x16x16xf32, #tpu.memory_space<vmem>>, vector<1x8x16x16xf32>
    %38 = vector.shape_cast %37 : vector<1x8x16x16xf32> to vector<8x16x16xf32>
    %39 = arith.addf %36, %38 : vector<8x16x16xf32>
    %cst_20 = arith.constant dense<0xFF800000> : vector<8x16xf32>
    %40 = vector.multi_reduction <maximumf>, %39, %cst_20 [2] : vector<8x16x16xf32> to vector<8x16xf32>
    %41 = vector.shape_cast %40 : vector<8x16xf32> to vector<8x16x1xf32>
    %42 = vector.broadcast %41 : vector<8x16x1xf32> to vector<8x16x16xf32>
    %43 = arith.subf %39, %42 : vector<8x16x16xf32>
    %44 = math.exp %43 : vector<8x16x16xf32>
    %cst_21 = arith.constant dense<0.000000e+00> : vector<8x16xf32>
    %45 = vector.multi_reduction <add>, %44, %cst_21 [2] : vector<8x16x16xf32> to vector<8x16xf32>
    %46 = vector.shape_cast %45 : vector<8x16xf32> to vector<8x16x1xf32>
    %47 = tpu.reciprocal %46 {approx = true} : vector<8x16x1xf32> -> vector<8x16x1xf32>
    %48 = vector.broadcast %47 : vector<8x16x1xf32> to vector<8x16x16xf32>
    %49 = arith.mulf %44, %48 : vector<8x16x16xf32>
    "tpu.trace_start"() <{level = 10 : i32, message = "bnm,bmd->bnd"}> : () -> ()
    %cst_22 = arith.constant dense<0.000000e+00> : vector<8x16x8xf32>
    %50 = tpu.matmul %49, %35, %cst_22 {dimension_numbers = #tpu.dot_dimension_numbers<[2], [1], [1], [2], [0, 0, 0, 1, 1, 2], [0], [0]>} : vector<8x16x16xf32>, vector<8x16x8xf32>, vector<8x16x8xf32> -> vector<8x16x8xf32>
    "tpu.trace_stop"() : () -> ()
    %51 = vector.shape_cast %50 : vector<8x16x8xf32> to vector<128x8xf32>
    %c8 = arith.constant 8 : index
    %c0_23 = arith.constant 0 : index
    %52 = vector.load %arg5[%c8, %c0_23] : memref<32x32xf32, #tpu.memory_space<vmem>>, vector<8x32xf32>
    %cst_24 = arith.constant dense<0.000000e+00> : vector<128x32xf32>
    %53 = tpu.matmul %51, %52, %cst_24 {dimension_numbers = #tpu.dot_dimension_numbers<[1], [0], [0], [1], [0, 0, 1, 1], [], []>} : vector<128x8xf32>, vector<8x32xf32>, vector<128x32xf32> -> vector<128x32xf32>
    %54 = arith.addf %29, %53 : vector<128x32xf32>
    %55 = vector.extract_strided_slice %5 {offsets = [0, 16], sizes = [128, 8], strides = [1, 1]} : vector<128x96xf32> to vector<128x8xf32>
    %56 = vector.shape_cast %55 : vector<128x8xf32> to vector<8x16x8xf32>
    %57 = vector.extract_strided_slice %5 {offsets = [0, 48], sizes = [128, 8], strides = [1, 1]} : vector<128x96xf32> to vector<128x8xf32>
    %58 = vector.shape_cast %57 : vector<128x8xf32> to vector<8x16x8xf32>
    %59 = vector.extract_strided_slice %5 {offsets = [0, 80], sizes = [128, 8], strides = [1, 1]} : vector<128x96xf32> to vector<128x8xf32>
    %60 = vector.shape_cast %59 : vector<128x8xf32> to vector<8x16x8xf32>
    "tpu.trace_start"() <{level = 10 : i32, message = "bnd,bmd->bnm"}> : () -> ()
    %cst_25 = arith.constant dense<0.000000e+00> : vector<8x16x16xf32>
    %61 = tpu.matmul %56, %58, %cst_25 {dimension_numbers = #tpu.dot_dimension_numbers<[2], [2], [1], [1], [0, 0, 0, 1, 1, 1], [0], [0]>} : vector<8x16x8xf32>, vector<8x16x8xf32>, vector<8x16x16xf32> -> vector<8x16x16xf32>
    "tpu.trace_stop"() : () -> ()
    %c2 = arith.constant 2 : index
    %c0_26 = arith.constant 0 : index
    %c0_27 = arith.constant 0 : index
    %c0_28 = arith.constant 0 : index
    %62 = vector.load %arg4[%c2, %c0_26, %c0_27, %c0_28] : memref<4x8x16x16xf32, #tpu.memory_space<vmem>>, vector<1x8x16x16xf32>
    %63 = vector.shape_cast %62 : vector<1x8x16x16xf32> to vector<8x16x16xf32>
    %64 = arith.addf %61, %63 : vector<8x16x16xf32>
    %cst_29 = arith.constant dense<0xFF800000> : vector<8x16xf32>
    %65 = vector.multi_reduction <maximumf>, %64, %cst_29 [2] : vector<8x16x16xf32> to vector<8x16xf32>
    %66 = vector.shape_cast %65 : vector<8x16xf32> to vector<8x16x1xf32>
    %67 = vector.broadcast %66 : vector<8x16x1xf32> to vector<8x16x16xf32>
    %68 = arith.subf %64, %67 : vector<8x16x16xf32>
    %69 = math.exp %68 : vector<8x16x16xf32>
    %cst_30 = arith.constant dense<0.000000e+00> : vector<8x16xf32>
    %70 = vector.multi_reduction <add>, %69, %cst_30 [2] : vector<8x16x16xf32> to vector<8x16xf32>
    %71 = vector.shape_cast %70 : vector<8x16xf32> to vector<8x16x1xf32>
    %72 = tpu.reciprocal %71 {approx = true} : vector<8x16x1xf32> -> vector<8x16x1xf32>
    %73 = vector.broadcast %72 : vector<8x16x1xf32> to vector<8x16x16xf32>
    %74 = arith.mulf %69, %73 : vector<8x16x16xf32>
    "tpu.trace_start"() <{level = 10 : i32, message = "bnm,bmd->bnd"}> : () -> ()
    %cst_31 = arith.constant dense<0.000000e+00> : vector<8x16x8xf32>
    %75 = tpu.matmul %74, %60, %cst_31 {dimension_numbers = #tpu.dot_dimension_numbers<[2], [1], [1], [2], [0, 0, 0, 1, 1, 2], [0], [0]>} : vector<8x16x16xf32>, vector<8x16x8xf32>, vector<8x16x8xf32> -> vector<8x16x8xf32>
    "tpu.trace_stop"() : () -> ()
    %76 = vector.shape_cast %75 : vector<8x16x8xf32> to vector<128x8xf32>
    %c16 = arith.constant 16 : index
    %c0_32 = arith.constant 0 : index
    %77 = vector.load %arg5[%c16, %c0_32] : memref<32x32xf32, #tpu.memory_space<vmem>>, vector<8x32xf32>
    %cst_33 = arith.constant dense<0.000000e+00> : vector<128x32xf32>
    %78 = tpu.matmul %76, %77, %cst_33 {dimension_numbers = #tpu.dot_dimension_numbers<[1], [0], [0], [1], [0, 0, 1, 1], [], []>} : vector<128x8xf32>, vector<8x32xf32>, vector<128x32xf32> -> vector<128x32xf32>
    %79 = arith.addf %54, %78 : vector<128x32xf32>
    %80 = vector.extract_strided_slice %5 {offsets = [0, 24], sizes = [128, 8], strides = [1, 1]} : vector<128x96xf32> to vector<128x8xf32>
    %81 = vector.shape_cast %80 : vector<128x8xf32> to vector<8x16x8xf32>
    %82 = vector.extract_strided_slice %5 {offsets = [0, 56], sizes = [128, 8], strides = [1, 1]} : vector<128x96xf32> to vector<128x8xf32>
    %83 = vector.shape_cast %82 : vector<128x8xf32> to vector<8x16x8xf32>
    %84 = vector.extract_strided_slice %5 {offsets = [0, 88], sizes = [128, 8], strides = [1, 1]} : vector<128x96xf32> to vector<128x8xf32>
    %85 = vector.shape_cast %84 : vector<128x8xf32> to vector<8x16x8xf32>
    "tpu.trace_start"() <{level = 10 : i32, message = "bnd,bmd->bnm"}> : () -> ()
    %cst_34 = arith.constant dense<0.000000e+00> : vector<8x16x16xf32>
    %86 = tpu.matmul %81, %83, %cst_34 {dimension_numbers = #tpu.dot_dimension_numbers<[2], [2], [1], [1], [0, 0, 0, 1, 1, 1], [0], [0]>} : vector<8x16x8xf32>, vector<8x16x8xf32>, vector<8x16x16xf32> -> vector<8x16x16xf32>
    "tpu.trace_stop"() : () -> ()
    %c3 = arith.constant 3 : index
    %c0_35 = arith.constant 0 : index
    %c0_36 = arith.constant 0 : index
    %c0_37 = arith.constant 0 : index
    %87 = vector.load %arg4[%c3, %c0_35, %c0_36, %c0_37] : memref<4x8x16x16xf32, #tpu.memory_space<vmem>>, vector<1x8x16x16xf32>
    %88 = vector.shape_cast %87 : vector<1x8x16x16xf32> to vector<8x16x16xf32>
    %89 = arith.addf %86, %88 : vector<8x16x16xf32>
    %cst_38 = arith.constant dense<0xFF800000> : vector<8x16xf32>
    %90 = vector.multi_reduction <maximumf>, %89, %cst_38 [2] : vector<8x16x16xf32> to vector<8x16xf32>
    %91 = vector.shape_cast %90 : vector<8x16xf32> to vector<8x16x1xf32>
    %92 = vector.broadcast %91 : vector<8x16x1xf32> to vector<8x16x16xf32>
    %93 = arith.subf %89, %92 : vector<8x16x16xf32>
    %94 = math.exp %93 : vector<8x16x16xf32>
    %cst_39 = arith.constant dense<0.000000e+00> : vector<8x16xf32>
    %95 = vector.multi_reduction <add>, %94, %cst_39 [2] : vector<8x16x16xf32> to vector<8x16xf32>
    %96 = vector.shape_cast %95 : vector<8x16xf32> to vector<8x16x1xf32>
    %97 = tpu.reciprocal %96 {approx = true} : vector<8x16x1xf32> -> vector<8x16x1xf32>
    %98 = vector.broadcast %97 : vector<8x16x1xf32> to vector<8x16x16xf32>
    %99 = arith.mulf %94, %98 : vector<8x16x16xf32>
    "tpu.trace_start"() <{level = 10 : i32, message = "bnm,bmd->bnd"}> : () -> ()
    %cst_40 = arith.constant dense<0.000000e+00> : vector<8x16x8xf32>
    %100 = tpu.matmul %99, %85, %cst_40 {dimension_numbers = #tpu.dot_dimension_numbers<[2], [1], [1], [2], [0, 0, 0, 1, 1, 2], [0], [0]>} : vector<8x16x16xf32>, vector<8x16x8xf32>, vector<8x16x8xf32> -> vector<8x16x8xf32>
    "tpu.trace_stop"() : () -> ()
    %101 = vector.shape_cast %100 : vector<8x16x8xf32> to vector<128x8xf32>
    %c24 = arith.constant 24 : index
    %c0_41 = arith.constant 0 : index
    %102 = vector.load %arg5[%c24, %c0_41] : memref<32x32xf32, #tpu.memory_space<vmem>>, vector<8x32xf32>
    %cst_42 = arith.constant dense<0.000000e+00> : vector<128x32xf32>
    %103 = tpu.matmul %101, %102, %cst_42 {dimension_numbers = #tpu.dot_dimension_numbers<[1], [0], [0], [1], [0, 0, 1, 1], [], []>} : vector<128x8xf32>, vector<8x32xf32>, vector<128x32xf32> -> vector<128x32xf32>
    %104 = arith.addf %79, %103 : vector<128x32xf32>
    %c0_43 = arith.constant 0 : index
    %c0_44 = arith.constant 0 : index
    %105 = vector.load %arg6[%c0_43, %c0_44] : memref<1x32xf32, #tpu.memory_space<vmem>>, vector<1x32xf32>
    %106 = vector.broadcast %105 : vector<1x32xf32> to vector<128x32xf32>
    %107 = arith.addf %104, %106 : vector<128x32xf32>
    %c0_45 = arith.constant 0 : index
    %c0_46 = arith.constant 0 : index
    %108 = vector.load %arg7[%c0_45, %c0_46] : memref<128x32xf32, #tpu.memory_space<vmem>>, vector<128x32xf32>
    tpu.vector_store %arg7[%c0_45, %c0_46], %107 {strides = array<i32>} : memref<128x32xf32, #tpu.memory_space<vmem>>, vector<128x32xf32>,
    return
  }
  func.func @transform_0(%arg0: i32) -> (i32, i32) {
    %c0_i32 = arith.constant 0 : i32
    %c0_i32_0 = arith.constant 0 : i32
    return %arg0, %c0_i32 : i32, i32
  }
  func.func @transform_1(%arg0: i32) -> (i32, i32) {
    %c0_i32 = arith.constant 0 : i32
    %c0_i32_0 = arith.constant 0 : i32
    %c0_i32_1 = arith.constant 0 : i32
    return %c0_i32, %c0_i32_0 : i32, i32
  }
  func.func @transform_2(%arg0: i32) -> (i32, i32) {
    %c0_i32 = arith.constant 0 : i32
    %c0_i32_0 = arith.constant 0 : i32
    %c0_i32_1 = arith.constant 0 : i32
    return %c0_i32, %c0_i32_0 : i32, i32
  }
  func.func @transform_3(%arg0: i32) -> (i32, i32, i32, i32) {
    %c0_i32 = arith.constant 0 : i32
    %c0_i32_0 = arith.constant 0 : i32
    %c0_i32_1 = arith.constant 0 : i32
    %c0_i32_2 = arith.constant 0 : i32
    %c0_i32_3 = arith.constant 0 : i32
    return %c0_i32, %c0_i32_0, %c0_i32_1, %c0_i32_2 : i32, i32, i32, i32
  }
  func.func @transform_4(%arg0: i32) -> (i32, i32) {
    %c0_i32 = arith.constant 0 : i32
    %c0_i32_0 = arith.constant 0 : i32
    %c0_i32_1 = arith.constant 0 : i32
    return %c0_i32, %c0_i32_0 : i32, i32
  }
  func.func @transform_5(%arg0: i32) -> (i32, i32) {
    %c0_i32 = arith.constant 0 : i32
    %c0_i32_0 = arith.constant 0 : i32
    %c0_i32_1 = arith.constant 0 : i32
    return %c0_i32, %c0_i32_0 : i32, i32
  }
  func.func @transform_6(%arg0: i32) -> (i32, i32) {
    %c0_i32 = arith.constant 0 : i32
    %c0_i32_0 = arith.constant 0 : i32
    return %arg0, %c0_i32 : i32, i32
  }
}

</mosaic_0001>

<bundles_post_ra>
// kernel: tpu_custom_call.1
= control target key start
LH: loop header
LB: loop body
LE: loop exit
PB: predicated region body
PF: predicated region fallthrough
CT: control target
= control target key end

     0   :  { %11 = vsyncpa [#allocation3], 0  ;;  %s12412_s0 = inlined_call_operand.hbm [shape: f32[256,32], index: 0, kind: input, shape index: {}]   ;;  %s12413_s1 = inlined_call_operand.hbm [shape: f32[32,96], index: 1, kind: input, shape index: {}]   ;;  %s12414_s2 = inlined_call_operand.hbm [shape: f32[1,96], index: 2, kind: input, shape index: {}]   ;;  %s12415_s3 = inlined_call_operand.hbm [shape: f32[4,8,16,16], index: 3, kind: input, shape index: {}]   ;;  %s12416_s4 = inlined_call_operand.hbm [shape: f32[32,32], index: 4, kind: input, shape index: {}]   ;;  %s12417_s5 = inlined_call_operand.hbm [shape: f32[1,32], index: 5, kind: input, shape index: {}]   ;;  %s12418_s6 = inlined_call_operand.hbm [shape: f32[256,32], index: 6, kind: output, shape index: {}]  }
   0x1   :  { %13 = vsyncpa [#allocation3 + $0x1], 0 }
   0x2   :  { %14 = vsyncpa [#allocation6], 0 }
   0x3   :  { %15 = vsyncpa [#allocation9], 0 }
   0x4   :  { %16 = vsyncpa [#allocation12], 0 }
   0x5   :  { %17 = vsyncpa [#allocation4], 0 }
   0x6   :  { %19 = vsyncpa [#allocation4 + $0x1], 0  ;;  %s10598_s21 = smov 0   ;;  %s10600_s22 = smov 0  }
   0x7   :  { %s10602_s23 = smov 0   ;;  %s10604_s24 = smov 0  }
   0x8 LB: > { %s10541_s25 = smov [#allocation5]   ;;  %s10619_s27 = sadd.s32 4294967295, %s10539_s24   ;;  %s10539_s24 = sphi %s10604_s24, %s12467_s24   ;;  %s10535_s23 = sphi %s10602_s23, %s12466_s23   ;;  %s10531_s22 = sphi %s10600_s22, %s12465_s22   ;;  %s10527_s21 = sphi %s10598_s21, %s12464_s21  }
   0x9   : > { %s199_s26 = sshll.u32 %s10541_s25, 4  ;;  %p7998_p0 = scmp.ge.s32.totalorder %s10539_s24, 1  ;;  %s10624_s26 = int_to_ptr.vmem [resolvable:$true] %s199_s26 }
   0xa   : > { %p12419_p1 = scmp.eq.s32.totalorder %s10619_s27, 0  ;;  %p187_p2 = scmp.lt.s32.totalorder %s10539_s24, 3 }
   0xb   : > { %s10542_s29 = smov [#allocation8]   ;;  %s10543_s8 = smov [#allocation7]  }
   0xc   : > { %p10626_p3 = pnand %p7998_p0, %p187_p2  ;;  %s223_s30 = sshll.u32 %s10542_s29, 4  ;;  %s10639_s30 = int_to_ptr.vmem [resolvable:$true] %s223_s30 }
   0xd   : > { %s213_s9 = sshll.u32 %s10543_s8, 4  ;;  %s10291_s12 = scalar_lea.hbm %s12413_s1, 512  ;;  %s10641_s9 = int_to_ptr.vmem [resolvable:$true] %s213_s9 }
   0xe   : > { %s12422_s28 = scalar_select %p10626_p3, 1, 0 }
   0xf   : > { %p9627_p5 = pneg %p10626_p3  ;;  %p10292_p7 = scmp.ne.s32.totalorder %s12413_s1, %s10291_s12 }
  0x10   : > { %p10298_p11 = scmp.lt.u32.totalorder %s10291_s12, %s12413_s1 }
  0x11   : > { %p10635_p6 = pnand %p9627_p5, %p12419_p1 }
  0x13   : > { %p10651_p8 = pneg %p10635_p6 }
  0x15   : > { %p10294_p9 = pnand %p10651_p8, %p10292_p7 }
  0x17   : > { %p10295_p10 = pneg %p10294_p9 }
  0x19   : > { %p10300_p12 = pnand %p10298_p11, %p10295_p10 }
  0x1b   : > { %10303 = shalt.err (!%p10300_p12)
}
  0x1c   : > { %s10304_s18 = scalar_lea.vmem %s10624_s26, 512  ;;  %p10312_p5 = scmp.lt.s32.totalorder %s10624_s26, %s10624_s26 }
  0x1d   : > { %p10305_p13 = scmp.ne.s32.totalorder %s10624_s26, %s10304_s18  ;;  %p10313_p4 = scmp.lt.s32.totalorder %s10304_s18, %s10304_s18 }
  0x1f   : > { %p10307_p0 = pnand %p10305_p13, %p10651_p8  ;;  %p10314_p7 = por %p10313_p4, %p10312_p5 }
  0x21   : > { %p10308_p2 = pneg %p10307_p0 }
  0x23   : > { %p10315_p9 = pnand %p10314_p7, %p10308_p2 }
  0x25   : > { %10318 = shalt.err (!%p10315_p9)
}
  0x26   : > { %s10544_s19 = smov 128   ;;  %s10545_s20 = smov 8  }
  0x27   : > { %9630 = dma.hbm_to_vmem [thread:$0]  (!%p10635_p6), %s12413_s1, 512, %s10624_s26, [#allocation6], %s10544_s19, %s10544_s19, %s10545_s20  }
  0x28   : > { %s10319_s11 = scalar_lea.hbm %s12415_s3, 8192 }
  0x29   : > { %p10320_p4 = scmp.ne.s32.totalorder %s12415_s3, %s10319_s11  ;;  %p10326_p12 = scmp.lt.u32.totalorder %s10319_s11, %s12415_s3 }
  0x2b   : > { %p10322_p10 = pnand %p10320_p4, %p10651_p8 }
  0x2d   : > { %p10323_p11 = pneg %p10322_p10 }
  0x2f   : > { %p10328_p13 = pnand %p10326_p12, %p10323_p11 }
  0x31   : > { %10331 = shalt.err (!%p10328_p13)
}
  0x32   : > { %s10332_s26 = scalar_lea.vmem %s10639_s30, 8192  ;;  %p10340_p7 = scmp.lt.s32.totalorder %s10639_s30, %s10639_s30 }
  0x33   : > { %p10333_p0 = scmp.ne.s32.totalorder %s10639_s30, %s10332_s26  ;;  %p10341_p9 = scmp.lt.s32.totalorder %s10332_s26, %s10332_s26 }
  0x35   : > { %p10335_p2 = pnand %p10333_p0, %p10651_p8  ;;  %p10342_p4 = por %p10341_p9, %p10340_p7 }
  0x37   : > { %p10336_p5 = pneg %p10335_p2 }
  0x39   : > { %p10343_p10 = pnand %p10342_p4, %p10336_p5 }
  0x3b   : > { %10346 = shalt.err (!%p10343_p10)
}
  0x3c   : > { %9636 = dma.hbm_to_vmem [thread:$0]  (!%p10635_p6), %s12415_s3, 8192, %s10639_s30, [#allocation9], %s10544_s19, %s10544_s19, %s10545_s20  }
  0x3d   : > { %s10347_s8 = scalar_lea.hbm %s12414_s2, 16 }
  0x3e   : > { %p10348_p11 = scmp.ne.s32.totalorder %s12414_s2, %s10347_s8  ;;  %p10354_p0 = scmp.lt.u32.totalorder %s10347_s8, %s12414_s2 }
  0x40   : > { %p10350_p12 = pnand %p10348_p11, %p10651_p8 }
  0x42   : > { %p10351_p13 = pneg %p10350_p12 }
  0x44   : > { %p10356_p2 = pnand %p10354_p0, %p10351_p13 }
  0x46   : > { %10359 = shalt.err (!%p10356_p2)
}
  0x47   : > { %s10360_s30 = scalar_lea.vmem %s10641_s9, 16  ;;  %s10367_s14 = scalar_lea.vmem %s10641_s9, 32 }
  0x48   : > { %p10361_p5 = scmp.ne.s32.totalorder %s10641_s9, %s10360_s30  ;;  %p10368_p4 = scmp.lt.s32.totalorder %s10641_s9, %s10641_s9 }
  0x49   : > { %p10369_p10 = scmp.lt.s32.totalorder %s10367_s14, %s10360_s30 }
  0x4a   : > { %p10363_p7 = pnand %p10361_p5, %p10651_p8 }
  0x4b   : > { %p10370_p11 = por %p10369_p10, %p10368_p4 }
  0x4c   : > { %p10364_p9 = pneg %p10363_p7 }
  0x4e   : > { %p10371_p12 = pnand %p10370_p11, %p10364_p9 }
  0x50   : > { %10374 = shalt.err (!%p10371_p12)
}
  0x51   : > { %9633 = dma.hbm_to_vmem [thread:$0]  (!%p10635_p6), %s12414_s2, 16, %s10641_s9, [#allocation6]  }
  0x52   : > { %s10546_s17 = smov [#allocation10]   ;;  %s10547_s25 = smov [#allocation11]  }
  0x53   : > { %s236_s18 = sshll.u32 %s10546_s17, 4  ;;  %s250_s29 = sshll.u32 %s10547_s25, 4  ;;  %s237_s18 = int_to_ptr.vmem [resolvable:$true] %s236_s18  ;;  %s251_s29 = int_to_ptr.vmem [resolvable:$true] %s250_s29 }
  0x54   : > { %s10375_s11 = scalar_lea.hbm %s12416_s4, 512 }
  0x55   : > { %p10376_p13 = scmp.ne.s32.totalorder %s12416_s4, %s10375_s11  ;;  %p10382_p5 = scmp.lt.u32.totalorder %s10375_s11, %s12416_s4 }
  0x57   : > { %p10378_p0 = pnand %p10376_p13, %p10651_p8 }
  0x59   : > { %p10379_p2 = pneg %p10378_p0 }
  0x5b   : > { %p10384_p7 = pnand %p10382_p5, %p10379_p2 }
  0x5d   : > { %10387 = shalt.err (!%p10384_p7)
}
  0x5e   : > { %s10388_s9 = scalar_lea.vmem %s237_s18, 512  ;;  %p10396_p11 = scmp.lt.s32.totalorder %s237_s18, %s237_s18 }
  0x5f   : > { %p10389_p9 = scmp.ne.s32.totalorder %s237_s18, %s10388_s9  ;;  %p10397_p12 = scmp.lt.s32.totalorder %s10388_s9, %s10388_s9 }
  0x61   : > { %p10391_p4 = pnand %p10389_p9, %p10651_p8  ;;  %p10398_p1 = por %p10397_p12, %p10396_p11 }
  0x63   : > { %p10392_p10 = pneg %p10391_p4 }
  0x65   : > { %p10399_p3 = pnand %p10398_p1, %p10392_p10 }
  0x67   : > { %10402 = shalt.err (!%p10399_p3)
}
  0x68   : > { %9639 = dma.hbm_to_vmem [thread:$0]  (!%p10635_p6), %s12416_s4, 512, %s237_s18, [#allocation9], %s10544_s19, %s10544_s19, %s10545_s20  }
  0x69   : > { %s10403_s8 = scalar_lea.hbm %s12417_s5, 16 }
  0x6a   : > { %p10404_p1 = scmp.ne.s32.totalorder %s12417_s5, %s10403_s8  ;;  %p10410_p0 = scmp.lt.u32.totalorder %s10403_s8, %s12417_s5 }
  0x6c   : > { %p10406_p3 = pnand %p10404_p1, %p10651_p8 }
  0x6e   : > { %p10407_p13 = pneg %p10406_p3 }
  0x70   : > { %p10412_p2 = pnand %p10410_p0, %p10407_p13 }
  0x72   : > { %10415 = shalt.err (!%p10412_p2)
}
  0x73   : > { %s10416_s30 = scalar_lea.vmem %s251_s29, 16  ;;  %s10423_s18 = scalar_lea.vmem %s251_s29, 32 }
  0x74   : > { %p10417_p5 = scmp.ne.s32.totalorder %s251_s29, %s10416_s30  ;;  %p10424_p4 = scmp.lt.s32.totalorder %s251_s29, %s251_s29 }
  0x75   : > { %p10425_p10 = scmp.lt.s32.totalorder %s10423_s18, %s10416_s30 }
  0x76   : > { %p10419_p7 = pnand %p10417_p5, %p10651_p8 }
  0x77   : > { %p10426_p11 = por %p10425_p10, %p10424_p4 }
  0x78   : > { %p10420_p9 = pneg %p10419_p7 }
  0x7a   : > { %p10427_p12 = pnand %p10426_p11, %p10420_p9 }
  0x7c   : > { %10430 = shalt.err (!%p10427_p12)
}
  0x7d   : > { %9642 = dma.hbm_to_vmem [thread:$0]  (!%p10635_p6), %s12417_s5, 16, %s251_s29, [#allocation12]  }
  0x7e   : > { %s7997_s15 = sadd.s32 4294967294, %s10539_s24   ;;  %s10766_s7 = sadd.s32 1, %s10539_s24  }
  0x7f   : > { %s32_s16 = sadd.s32 1, %s10535_s23  ;;  %s29_s26 = ssub.s32 %s10539_s24, %s10766_s7 }
  0x80   : > { %p39_p8 = scmp.ne.s32.totalorder %s10535_s23, %s10531_s22  ;;  %p30_p1 = scmp.eq.s32.totalorder %s29_s26, 0 }
  0x81   : > { %p40_p3 = scmp.eq.s32.totalorder %s10539_s24, 0  ;;  %p45_p13 = scmp.ne.s32.totalorder %s10531_s22, %s10527_s21 }
  0x82   : > { %p174_p0 = scmp.eq.s32.totalorder %s10619_s27, 1  ;;  %p12425_p5 = scmp.eq.s32.totalorder %s10619_s27, 0 }
  0x83   : > { %s10778_s17 = scalar_select %p30_p1, %s10535_s23, %s32_s16  }
  0x84   : > { %p41_p2 = por %p40_p3, %p39_p8  ;;  %p10782_p7 = por %p12425_p5, %p45_p13 }
  0x85   : > { %p10786_p6 = por %p174_p0, %p39_p8  ;;  %p180_p9 = scmp.eq.s32.totalorder %s7997_s15, 1 }
  0x86   : > { %p9656_p4 = scmp.lt.s32.totalorder %s10539_s24, 2  ;;  %s261_s8 = sand.u32 1, %s10535_s23  }
  0x87   : > { %s12427_s29 = scalar_select %p10786_p6, 1, 0 }
  0x88   : > { %p10792_p10 = por %p180_p9, %p45_p13  ;;  %s8005_s11 = sshll.u32 %s261_s8, 7 }
  0x89   : > { %s8295_s12 = sshll.u32 %s10539_s24, 11  ;;  %s265_s14 = scalar_lea.vmem [#allocation2], %s8005_s11 }
  0x8a   : > { %s12428_s10 = scalar_select %p10792_p10, 1, 0 }
  0x8b   : > { %s10800_s18 = scalar_lea.hbm %s12412_s0, %s8295_s12  ;;  %s272_s9 = sshll.u32 %s265_s14, 4  ;;  %s10806_s9 = int_to_ptr.vmem [resolvable:$true] %s272_s9 }
  0x8c   : > { %p10802_p11 = pnand %p9656_p4, %p41_p2  ;;  %s10808_s16 = scalar_lea.sflag [#allocation3], %s261_s8 }
  0x8d   : > { %s10431_s26 = scalar_lea.hbm %s10800_s18, 2048  ;;  %s10436_s13 = scalar_lea.hbm %s12412_s0, 4096 }
  0x8e   : > { %p10432_p12 = scmp.ne.s32.totalorder %s10800_s18, %s10431_s26  ;;  %p10433_p8 = pneg %p10802_p11 }
  0x8f   : > { %p10437_p13 = scmp.lt.u32.totalorder %s10800_s18, %s12412_s0  ;;  %p10438_p0 = scmp.lt.u32.totalorder %s10436_s13, %s10431_s26 }
  0x90   : > { %p10434_p1 = pnand %p10433_p8, %p10432_p12  ;;  %p10440_p5 = scmp.lt.u32.totalorder %s10431_s26, %s10800_s18 }
  0x91   : > { %p10439_p2 = por %p10438_p0, %p10437_p13 }
  0x92   : > { %p10435_p3 = pneg %p10434_p1 }
  0x93   : > { %p10441_p9 = por %p10440_p5, %p10439_p2 }
  0x95   : > { %p10442_p4 = pnand %p10441_p9, %p10435_p3 }
  0x97   : > { %10445 = shalt.err (!%p10442_p4)
}
  0x98   : > { %s10446_s8 = scalar_lea.vmem %s10806_s9, 2048  ;;  %s10548_s11 = smov [#allocation2]  }
  0x99   : > { %p10447_p12 = scmp.ne.s32.totalorder %s10806_s9, %s10446_s8  ;;  %s10451_s12 = sshll.u32 %s10548_s11, 4  ;;  %s10452_s12 = int_to_ptr.vmem [resolvable:$false] %s10451_s12 }
  0x9a   : > { %s10453_s30 = scalar_lea.vmem %s10452_s12, 4096  ;;  %p10454_p6 = scmp.lt.s32.totalorder %s10806_s9, %s10452_s12 }
  0x9b   : > { %p10449_p1 = pnand %p10447_p12, %p10433_p8  ;;  %p10455_p13 = scmp.lt.s32.totalorder %s10453_s30, %s10446_s8 }
  0x9d   : > { %p10450_p10 = pneg %p10449_p1  ;;  %p10456_p0 = por %p10455_p13, %p10454_p6 }
  0x9f   : > { %p10457_p2 = pnand %p10456_p0, %p10450_p10 }
  0xa1   : > { %10460 = shalt.err (!%p10457_p2)
}
  0xa2   : > { %9646 = dma.hbm_to_vmem [thread:$0]  (!%p10802_p11), %s10800_s18, 2048, %s10806_s9, %s10808_s16, %s10544_s19, %s10544_s19, %s10545_s20  }
  0xa3   : > { %p12430_p8 = scmp.ne.s32.totalorder %s12422_s28, 0 }
  0xa5   : > { %284 = sbr.rel (%p12430_p8) target bundleno = 3849 (0xf09), region = 44 }
  0xac   : > { %s10842_s26 = sand.u32 1, %s10531_s22  }
  0xad   : > { %s8009_s13 = sshll.u32 %s10842_s26, 7  ;;  %s287_s14 = scalar_lea.sflag [#allocation3], %s10842_s26 }
  0xae   : > { %s10848_s15 = scalar_lea.vmem [#allocation2], %s8009_s13 }
  0xaf   : > { %10506 = dma.done.wait (%p10782_p7), %s287_s14, 2048  }
  0xb0   : > { %10508 = vsyncadd (%p10782_p7), %s287_s14, 4294965248  ;;  %p12431_p6 = scmp.eq.s32.totalorder %s10619_s27, 0 }
  0xb2   : > { %10510 = dma.done.wait (%p12431_p6), [#allocation6], 528   ;;  %p12432_p10 = pmov %p12431_p6 }
  0xb3   : > { %p12433_p11 = pmov %p12431_p6 }
  0xb4   : > { %10512 = vsyncadd (%p12432_p10), [#allocation6], 4294966768 }
  0xb5   : > { %10514 = dma.done.wait (%p12433_p11), [#allocation9], 8704   ;;  %p12434_p3 = pmov %p12431_p6 }
  0xb7   : > { %10516 = vsyncadd (%p12434_p3), [#allocation9], 4294958592  ;;  %p12435_p5 = pmov %p12434_p3 }
  0xb8   : > { %p12436_p9 = pmov %p12434_p3 }
  0xb9   : > { %10518 = dma.done.wait (%p12435_p5), [#allocation12], 16  }
  0xba   : > { %10520 = vsyncadd (%p12436_p9), [#allocation12], 4294967280  ;;  %vm368_vm0 = vcmask 261120   ;;  %v357_v0 = vld [vmem:[#allocation5] sm:$0xff]  ;;  %v358_v1 = vld [vmem:[#allocation5 + $0x8] sm:$0xff]  ;;  %vm584_vm1 = vcmask 64512  }
  0xbb   : > { %v359_v2 = vld [vmem:[#allocation5 + $0x10] sm:$0xff]  ;;  %v9225_v3 = vpack.c.bf16 %v358_v1, %v357_v0  ;;  %v360_v4 = vld [vmem:[#allocation5 + $0x18] sm:$0xff]  ;;  %v341_v5 = vld [vmem:[%s10848_s15] sm:$0xff]  ;;  %s10549_s28 = smov 96   ;;  %s10550_s19 = smov 64   ;;  %vm1291_vm3 = vcmask 130048  }
  0xbc   : > { %v9229_v6 = vpack.c.bf16 %v360_v4, %v359_v2  ;;  %8649 = vmatprep.mubr.msk.f32.mxu0 %vm368_vm0, %v341_v5  ;;  %v342_v7 = vld [vmem:[%s10848_s15 + $0x8] sm:$0xff]  ;;  %v343_v8 = vld [vmem:[%s10848_s15 + $0x10] sm:$0xff]  ;;  %v344_v9 = vld [vmem:[%s10848_s15 + $0x18] sm:$0xff]  ;;  %s10551_s20 = smov 88   ;;  %s10552_s25 = smov 120  }
  0xbd   : > { %9226 = vmatprep.subr.bf16.mxu0 %v9225_v3  ;;  %v345_v10 = vld [vmem:[%s10848_s15 + $0x20] sm:$0xff]  ;;  %v346_v11 = vld [vmem:[%s10848_s15 + $0x28] sm:$0xff]  ;;  %v347_v12 = vld [vmem:[%s10848_s15 + $0x30] sm:$0xff]  ;;  %s10553_s18 = smov 56   ;;  %s10554_s9 = smov 80  }
  0xbe   : > { %9228 = vmatpush3.bf16.msra.mxu0 %v9225_v3  ;;  %v348_v13 = vld [vmem:[%s10848_s15 + $0x38] sm:$0xff]  ;;  %v349_v14 = vld [vmem:[%s10848_s15 + $0x40] sm:$0xff]  ;;  %v350_v15 = vld [vmem:[%s10848_s15 + $0x48] sm:$0xff]  ;;  %s10555_s16 = smov 112   ;;  %s10556_s8 = smov 48  }
  0xbf   : > { %9230 = vmatprep.subr.bf16.mxu0 %v9229_v6  ;;  %v351_v16 = vld [vmem:[%s10848_s15 + $0x50] sm:$0xff]  ;;  %v352_v17 = vld [vmem:[%s10848_s15 + $0x58] sm:$0xff]  ;;  %v353_v18 = vld [vmem:[%s10848_s15 + $0x60] sm:$0xff]  ;;  %s10557_s11 = smov 72   ;;  %s10558_s12 = smov 104  }
  0xc0   : > { %v354_v19 = vld [vmem:[%s10848_s15 + $0x68] sm:$0xff]  ;;  %v355_v20 = vld [vmem:[%s10848_s15 + $0x70] sm:$0xff]  ;;  %v356_v21 = vld [vmem:[%s10848_s15 + $0x78] sm:$0xff]  ;;  %s10559_s30 = smov 40   ;;  %s12317_s14 = scalar_lea.vmem [#allocation13], %s8009_s13 }
  0xc1   : > { %v8016_v22 = vld [vmem:[#allocation7] ss:$0 sm:$0xff]  ;;  %vm10996_vm2 = vmpackc.low %vm584_vm1, %vm584_vm1  ;;  %v5999_v2 = vld [vmem:[#allocation8 + $0x190] sm:$0xff]  ;;  %s8296_s13 = sshll.u32 %s10619_s27, 11  ;;  %s7876_s15 = sshll.u32 %s12317_s14, 4  ;;  %s12364_s15 = int_to_ptr.vmem [resolvable:$true] %s7876_s15 }
  0xc2   : > { %9232 = vmatpush3.bf16.msra.mxu0 %v9229_v6  ;;  %s7863_s27 = scalar_lea.sflag [#allocation4], %s10842_s26  ;;  %p12461_p4 = scmp.ne.s32.totalorder %s12427_s29, 0 }
  0xc5   : > { %8650 = vmatmul.mubr.msk.f32.vlgmr.msra.gmra.mrb[0].mxu0 %vm368_vm0, %v342_v7 }
  0xc6   : > { %8652 = vmatprep.mubr.msk.f32.mxu0 %vm368_vm0, %v343_v8 }
  0xc9   : > { %8653 = vmatmul.mubr.msk.f32.gmra.mrb[2].mxu0 %vm368_vm0, %v344_v9 }
  0xca   : > { %8655 = vmatprep.mubr.msk.f32.mxu0 %vm368_vm0, %v345_v10 }
  0xcd   : > { %8656 = vmatmul.mubr.msk.f32.gmra.mrb[4].mxu0 %vm368_vm0, %v346_v11 }
  0xce   : > { %8658 = vmatprep.mubr.msk.f32.mxu0 %vm368_vm0, %v347_v12 }
  0xd1   : > { %8659 = vmatmul.mubr.msk.f32.gmra.mrb[6].mxu0 %vm368_vm0, %v348_v13 }
  0xd2   : > { %8661 = vmatprep.mubr.msk.f32.mxu0 %vm368_vm0, %v349_v14 }
  0xd5   : > { %8662 = vmatmul.mubr.msk.f32.gmra.mrb[8].mxu0 %vm368_vm0, %v350_v15 }
  0xd6   : > { %8664 = vmatprep.mubr.msk.f32.mxu0 %vm368_vm0, %v351_v16 }
  0xd9   : > { %8665 = vmatmul.mubr.msk.f32.gmra.mrb[10].mxu0 %vm368_vm0, %v352_v17 }
  0xda   : > { %8667 = vmatprep.mubr.msk.f32.mxu0 %vm368_vm0, %v353_v18 }
  0xdd   : > { %8668 = vmatmul.mubr.msk.f32.gmra.mrb[12].mxu0 %vm368_vm0, %v354_v19 }
  0xde   : > { %8670 = vmatprep.mubr.msk.f32.mxu0 %vm368_vm0, %v355_v20 }
  0xe1   : > { %8671 = vmatmul.mubr.msk.f32.gmra.mrb[14].mxu0 %vm368_vm0, %v356_v21 }
 0x198   : > { %v8651_v23 = vpop.f32.mrb[0].mxu0 }
 0x199   : > { %v10898_v24 = vadd.f32 %v8651_v23, %v8016_v22  ;;  %v483_v25 = vpop.f32.mrb[1].mxu0 }
 0x19a   : > { %v10900_v26 = vadd.f32 %v8016_v22, %v483_v25 }
 0x19c   : > { %v8654_v27 = vpop.f32.mrb[2].mxu0  ;;  %8677 = vmatprep.mubr.msk.f32.mxu1 %vm584_vm1, %v10900_v26  ;;  %v10906_v28 = vpack.i.bf16 %v10898_v24, %v10900_v26 }
 0x19d   : > { %v10908_v29 = vadd.f32 %v8654_v27, %v8016_v22  ;;  %v493_v30 = vpop.f32.mrb[3].mxu0 }
 0x19e   : > { %v10910_v31 = vadd.f32 %v8016_v22, %v493_v30  ;;  %9716 = vrot.lane.b32.xlu0 %v10906_v28, %s10549_s28 }
 0x1a0   : > { %v8657_v32 = vpop.f32.mrb[4].mxu0  ;;  %v10916_v33 = vpack.i.bf16 %v10908_v29, %v10910_v31 }
 0x1a1   : > { %v10918_v34 = vadd.f32 %v8657_v32, %v8016_v22  ;;  %v503_v35 = vpop.f32.mrb[5].mxu0 }
 0x1a2   : > { %v10920_v36 = vadd.f32 %v8016_v22, %v503_v35  ;;  %9721 = vrot.lane.b32.xlu0 %v10916_v33, %s10549_s28 }
 0x1a4   : > { %v8660_v37 = vpop.f32.mrb[6].mxu0  ;;  %v10926_v38 = vpack.i.bf16 %v10918_v34, %v10920_v36 }
 0x1a5   : > { %v10928_v39 = vadd.f32 %v8660_v37, %v8016_v22  ;;  %v513_v40 = vpop.f32.mrb[7].mxu0 }
 0x1a6   : > { %v10930_v41 = vadd.f32 %v8016_v22, %v513_v40  ;;  %9726 = vrot.lane.b32.xlu1 %v10926_v38, %s10549_s28 }
 0x1a8   : > { %v8663_v42 = vpop.f32.mrb[8].mxu0  ;;  %v10936_v43 = vpack.i.bf16 %v10928_v39, %v10930_v41 }
 0x1a9   : > { %v10938_v44 = vadd.f32 %v8663_v42, %v8016_v22  ;;  %v523_v45 = vpop.f32.mrb[9].mxu0 }
 0x1aa   : > { %v10940_v46 = vadd.f32 %v8016_v22, %v523_v45  ;;  %9731 = vrot.lane.b32.xlu1 %v10936_v43, %s10549_s28 }
 0x1ac   : > { %8705 = vmatprep.mubr.msk.f32.mxu0 %vm584_vm1, %v10940_v46  ;;  %v8666_v47 = vpop.f32.mrb[10].mxu0  ;;  %v10948_v48 = vpack.i.bf16 %v10938_v44, %v10940_v46 }
 0x1ad   : > { %v10950_v49 = vadd.f32 %v8666_v47, %v8016_v22  ;;  %v533_v50 = vpop.f32.mrb[11].mxu0 }
 0x1ae   : > { %9736 = vrot.lane.b32.xlu0 %v10948_v48, %s10549_s28  ;;  %v10954_v51 = vadd.f32 %v8016_v22, %v533_v50 }
 0x1b0   : > { %v8669_v52 = vpop.f32.mrb[12].mxu0  ;;  %v10958_v53 = vpack.i.bf16 %v10950_v49, %v10954_v51 }
 0x1b1   : > { %v10960_v54 = vadd.f32 %v8669_v52, %v8016_v22  ;;  %v543_v55 = vpop.f32.mrb[13].mxu0 }
 0x1b2   : > { %v10962_v56 = vadd.f32 %v8016_v22, %v543_v55  ;;  %9741 = vrot.lane.b32.xlu1 %v10958_v53, %s10549_s28 }
 0x1b4   : > { %v8672_v57 = vpop.f32.mrb[14].mxu0  ;;  %v10968_v58 = vpack.i.bf16 %v10960_v54, %v10962_v56 }
 0x1b5   : > { %v10970_v59 = vadd.f32 %v8672_v57, %v8016_v22  ;;  %v553_v60 = vpop.f32.mrb[15].mxu0 }
 0x1b6   : > { %v10972_v61 = vadd.f32 %v8016_v22, %v553_v60  ;;  %9746 = vrot.lane.b32.xlu0 %v10968_v58, %s10549_s28 }
 0x1b8   : > { %v10978_v62 = vpack.i.bf16 %v10970_v59, %v10972_v61 }
 0x1ba   : > { %9751 = vrot.lane.b32.xlu1 %v10978_v62, %s10549_s28  ;;  %9756 = vrot.lane.b32.xlu0 %v10906_v28, %s10550_s19 }
 0x1be   : > { %9761 = vrot.lane.b32.xlu1 %v10916_v33, %s10550_s19  ;;  %9766 = vrot.lane.b32.xlu0 %v10926_v38, %s10550_s19 }
 0x1c2   : > { %9771 = vrot.lane.b32.xlu1 %v10936_v43, %s10550_s19  ;;  %9776 = vrot.lane.b32.xlu0 %v10948_v48, %s10550_s19 }
 0x1c6   : > { %9781 = vrot.lane.b32.xlu1 %v10958_v53, %s10550_s19 }
 0x210   : > { %v9717_v63 = vpop.permute.xlu0 %9716 }
 0x211   : > { %v9719_v0 = vunpack.i.h.bf16 %v9717_v63  ;;  %v9718_v1 = vunpack.i.l.bf16 %v9717_v63 }
 0x213   : > { %v9233_v3 = vpack.c.bf16 %v9719_v0, %v9718_v1 }
 0x214   : > { %v9722_v4 = vpop.permute.xlu0 %9721 }
 0x215   : > { %v9724_v5 = vunpack.i.h.bf16 %v9722_v4  ;;  %v9723_v6 = vunpack.i.l.bf16 %v9722_v4  ;;  %9235 = vmatprep.subr.msk.bf16.mxu1 %vm10996_vm2, %v9233_v3 }
 0x216   : > { %9238 = vmatpush3.bf16.xpose.msk.msra.mxu1 %vm10996_vm2, %v9233_v3 }
 0x217   : > { %v9239_v7 = vpack.c.bf16 %v9724_v5, %v9723_v6 }
 0x218   : > { %v9727_v8 = vpop.permute.xlu1 %9726 }
 0x219   : > { %v9729_v9 = vunpack.i.h.bf16 %v9727_v8  ;;  %v9728_v10 = vunpack.i.l.bf16 %v9727_v8  ;;  %9241 = vmatprep.subr.msk.bf16.mxu1 %vm10996_vm2, %v9239_v7 }
 0x21b   : > { %v9245_v11 = vpack.c.bf16 %v9729_v9, %v9728_v10  ;;  %v563_v9 = vld [vmem:[#allocation8 + $0x8] sm:$0xff]  ;;  %v562_v10 = vld [vmem:[#allocation8] sm:$0xff] }
 0x21c   : > { %v9732_v12 = vpop.permute.xlu1 %9731 }
 0x21d   : > { %8678 = vmatmul.mubr.msk.f32.vlgmr.msra.gmra.mrb[0].mxu1 %vm584_vm1, %v10898_v24  ;;  %v9734_v13 = vunpack.i.h.bf16 %v9732_v12  ;;  %v9733_v14 = vunpack.i.l.bf16 %v9732_v12 }
 0x21e   : > { %9244 = vmatpush3.bf16.xpose.msk.msra.mxu1 %vm10996_vm2, %v9239_v7  ;;  %8684 = vmatprep.mubr.msk.f32.mxu1 %vm584_vm1, %v10910_v31 }
 0x21f   : > { %9247 = vmatprep.subr.msk.bf16.mxu1 %vm10996_vm2, %v9245_v11  ;;  %v9251_v18 = vpack.c.bf16 %v9734_v13, %v9733_v14 }
 0x220   : > { %v9737_v15 = vpop.permute.xlu0 %9736 }
 0x221   : > { %v9739_v16 = vunpack.i.h.bf16 %v9737_v15  ;;  %v9738_v17 = vunpack.i.l.bf16 %v9737_v15 }
 0x223   : > { %v9257_v19 = vpack.c.bf16 %v9739_v16, %v9738_v17  ;;  %v565_v17 = vld [vmem:[#allocation8 + $0x18] sm:$0xff] }
 0x224   : > { %v9742_v20 = vpop.permute.xlu1 %9741 }
 0x225   : > { %8685 = vmatmul.mubr.msk.f32.vlgmr.msra.gmra.mrb[2].mxu1 %vm584_vm1, %v10908_v29  ;;  %9259 = vmatprep.subr.msk.bf16.mxu0 %vm10996_vm2, %v9257_v19  ;;  %v9744_v21 = vunpack.i.h.bf16 %v9742_v20  ;;  %v9743_v22 = vunpack.i.l.bf16 %v9742_v20 }
 0x226   : > { %9250 = vmatpush3.bf16.xpose.msk.msra.mxu1 %vm10996_vm2, %v9245_v11  ;;  %8691 = vmatprep.mubr.msk.f32.mxu1 %vm584_vm1, %v10920_v36 }
 0x227   : > { %9262 = vmatpush3.bf16.xpose.msk.msra.mxu0 %vm10996_vm2, %v9257_v19  ;;  %9253 = vmatprep.subr.msk.bf16.mxu1 %vm10996_vm2, %v9251_v18  ;;  %v9263_v32 = vpack.c.bf16 %v9744_v21, %v9743_v22 }
 0x228   : > { %v9747_v23 = vpop.permute.xlu0 %9746 }
 0x229   : > { %v9749_v25 = vunpack.i.h.bf16 %v9747_v23  ;;  %v9748_v27 = vunpack.i.l.bf16 %v9747_v23 }
 0x22b   : > { %v9269_v30 = vpack.c.bf16 %v9749_v25, %v9748_v27  ;;  %v567_v27 = vld [vmem:[#allocation8 + $0x28] sm:$0xff] }
 0x22c   : > { %v9757_v35 = vpop.permute.xlu0 %9756  ;;  %v9752_v42 = vpop.permute.xlu1 %9751 }
 0x22d   : > { %v9759_v37 = vunpack.i.h.bf16 %v9757_v35  ;;  %v9758_v40 = vunpack.i.l.bf16 %v9757_v35  ;;  %8692 = vmatmul.mubr.msk.f32.vlgmr.msra.gmra.mrb[4].mxu1 %vm584_vm1, %v10918_v34  ;;  %9271 = vmatprep.subr.msk.bf16.mxu0 %vm10996_vm2, %v9269_v30  ;;  %v9754_v47 = vunpack.i.h.bf16 %v9752_v42  ;;  %v9753_v50 = vunpack.i.l.bf16 %v9752_v42 }
 0x22e   : > { %8706 = vmatmul.mubr.msk.f32.vlgmr.msra.gmra.mrb[16].mxu0 %vm584_vm1, %v10938_v44  ;;  %9256 = vmatpush3.bf16.xpose.msk.msra.mxu1 %vm10996_vm2, %v9251_v18  ;;  %v564_v18 = vld [vmem:[#allocation8 + $0x10] sm:$0xff] }
 0x22f   : > { %8698 = vmatprep.mubr.msk.f32.mxu1 %vm584_vm1, %v10930_v41  ;;  %9274 = vmatpush3.bf16.xpose.msk.msra.mxu0 %vm10996_vm2, %v9269_v30  ;;  %v9281_v45 = vpack.c.bf16 %v9759_v37, %v9758_v40  ;;  %v9275_v60 = vpack.c.bf16 %v9754_v47, %v9753_v50  ;;  %v566_v50 = vld [vmem:[#allocation8 + $0x20] sm:$0xff] }
 0x230   : > { %8719 = vmatprep.mubr.msk.f32.mxu0 %vm584_vm1, %v10962_v56  ;;  %v9767_v52 = vpop.permute.xlu0 %9766  ;;  %9265 = vmatprep.subr.msk.bf16.mxu1 %vm10996_vm2, %v9263_v32  ;;  %v9762_v63 = vpop.permute.xlu1 %9761 }
 0x231   : > { %9282 = vmatprep.subr.bf16.mxu0 %v9281_v45  ;;  %v9769_v55 = vunpack.i.h.bf16 %v9767_v52  ;;  %v9768_v57 = vunpack.i.l.bf16 %v9767_v52  ;;  %v9764_v1 = vunpack.i.h.bf16 %v9762_v63  ;;  %v9763_v3 = vunpack.i.l.bf16 %v9762_v63  ;;  %v569_v52 = vld [vmem:[#allocation8 + $0x38] sm:$0xff] }
 0x233   : > { %v11048_v0 = vpack.c.bf16 %v9769_v55, %v9768_v57  ;;  %v9285_v4 = vpack.c.bf16 %v9764_v1, %v9763_v3  ;;  %v568_v1 = vld [vmem:[#allocation8 + $0x30] sm:$0xff] }
 0x234   : > { %v9772_v5 = vpop.permute.xlu1 %9771 }
 0x235   : > { %8699 = vmatmul.mubr.msk.f32.vlgmr.msra.gmra.mrb[6].mxu1 %vm584_vm1, %v10928_v39  ;;  %v9774_v6 = vunpack.i.h.bf16 %v9772_v5  ;;  %v9773_v7 = vunpack.i.l.bf16 %v9772_v5 }
 0x236   : > { %8720 = vmatmul.mubr.msk.f32.vlgmr.msra.gmra.mrb[18].mxu0 %vm584_vm1, %v10960_v54  ;;  %9268 = vmatpush3.bf16.xpose.msk.msra.mxu1 %vm10996_vm2, %v9263_v32  ;;  %v571_v32 = vld [vmem:[#allocation8 + $0x48] sm:$0xff] }
 0x237   : > { %8712 = vmatprep.mubr.msk.f32.mxu1 %vm584_vm1, %v10954_v51  ;;  %9284 = vmatpush3.bf16.msra.mxu0 %v9281_v45  ;;  %v11063_v8 = vpack.c.bf16 %v9774_v6, %v9773_v7 }
 0x238   : > { %9290 = vmatprep.subr.bf16.mxu0 %v11048_v0  ;;  %9277 = vmatprep.subr.msk.bf16.mxu1 %vm10996_vm2, %v9275_v60 }
 0x23d   : > { %8713 = vmatmul.mubr.msk.f32.vlgmr.msra.gmra.mrb[8].mxu1 %vm584_vm1, %v10950_v49 }
 0x23e   : > { %9280 = vmatpush3.bf16.xpose.msk.msra.mxu1 %vm10996_vm2, %v9275_v60  ;;  %8726 = vmatprep.mubr.msk.f32.mxu1 %vm584_vm1, %v10972_v61  ;;  %v570_v60 = vld [vmem:[#allocation8 + $0x40] sm:$0xff] }
 0x23f   : > { %9286 = vmatprep.subr.bf16.mxu1 %v9285_v4 }
 0x245   : > { %8727 = vmatmul.mubr.msk.f32.vlgmr.msra.gmra.mrb[10].mxu1 %vm584_vm1, %v10970_v59 }
 0x246   : > { %9288 = vmatpush3.bf16.msra.mxu1 %v9285_v4 }
 0x247   : > { %9294 = vmatprep.subr.bf16.mxu1 %v11063_v8 }
 0x2f0   : > { %v8679_v11 = vpop.f32.mrb[0].mxu1 }
 0x2f1   : > { %v11066_v12 = vadd.f32 %v8679_v11, %v563_v9  ;;  %v659_v13 = vpop.f32.mrb[1].mxu1 }
 0x2f2   : > { %v11068_v14 = vadd.f32 %v659_v13, %v562_v10  ;;  %v575_v13 = vld [vmem:[#allocation8 + $0x68] sm:$0xff] }
 0x2f3   : > { %v1295_v15 = vsel %vm1291_vm3, %v11066_v12, -inf }
 0x2f4   : > { %1296 = vmax.xlane.f32.xlu1 %v1295_v15  ;;  %v1292_v16 = vsel %vm1291_vm3, %v11068_v14, -inf  ;;  %v574_v15 = vld [vmem:[#allocation8 + $0x60] sm:$0xff] }
 0x2f5   : > { %1293 = vmax.xlane.f32.xlu0 %v1292_v16 }
 0x2f8   : > { %v8686_v19 = vpop.f32.mrb[2].mxu1 }
 0x2f9   : > { %v11074_v20 = vadd.f32 %v8686_v19, %v565_v17  ;;  %v748_v21 = vpop.f32.mrb[3].mxu1 }
 0x2fa   : > { %v11076_v22 = vadd.f32 %v748_v21, %v564_v18  ;;  %v573_v21 = vld [vmem:[#allocation8 + $0x58] sm:$0xff] }
 0x2fb   : > { %v1301_v23 = vsel %vm1291_vm3, %v11074_v20, -inf }
 0x2fc   : > { %1302 = vmax.xlane.f32.xlu1 %v1301_v23  ;;  %v1298_v25 = vsel %vm1291_vm3, %v11076_v22, -inf }
 0x2fd   : > { %1299 = vmax.xlane.f32.xlu0 %v1298_v25 }
 0x300   : > { %v8693_v30 = vpop.f32.mrb[4].mxu1 }
 0x301   : > { %v11082_v35 = vadd.f32 %v8693_v30, %v567_v27  ;;  %v8707_v37 = vpop.f32.mrb[16].mxu0  ;;  %v837_v40 = vpop.f32.mrb[5].mxu1 }
 0x302   : > { %v1015_v42 = vpop.f32.mrb[17].mxu0  ;;  %v11084_v45 = vadd.f32 %v8707_v37, %v571_v32  ;;  %v11088_v55 = vadd.f32 %v837_v40, %v566_v50 }
 0x303   : > { %v1307_v47 = vsel %vm1291_vm3, %v11082_v35, -inf  ;;  %v11094_v7 = vadd.f32 %v1015_v42, %v570_v60 }
 0x304   : > { %1308 = vmax.xlane.f32.xlu0 %v1307_v47  ;;  %v1319_v57 = vsel %vm1291_vm3, %v11084_v45, -inf  ;;  %v1304_v11 = vsel %vm1291_vm3, %v11088_v55, -inf  ;;  %v572_v47 = vld [vmem:[#allocation8 + $0x50] sm:$0xff] }
 0x305   : > { %v1316_v19 = vsel %vm1291_vm3, %v11094_v7, -inf }
 0x308   : > { %v8700_v63 = vpop.f32.mrb[6].mxu1  ;;  %1320 = vmax.xlane.f32.xlu0 %v1319_v57 }
 0x309   : > { %v11092_v3 = vadd.f32 %v8700_v63, %v569_v52  ;;  %v8721_v4 = vpop.f32.mrb[18].mxu0  ;;  %v926_v5 = vpop.f32.mrb[7].mxu1  ;;  %v577_v52 = vld [vmem:[#allocation8 + $0x78] sm:$0xff] }
 0x30a   : > { %v1193_v6 = vpop.f32.mrb[19].mxu0  ;;  %v11096_v9 = vadd.f32 %v926_v5, %v568_v1  ;;  %v11102_v16 = vadd.f32 %v8721_v4, %v575_v13  ;;  %v576_v1 = vld [vmem:[#allocation8 + $0x70] sm:$0xff]  ;;  %v11138_v4 = vpop.permute.xlu1 %9781 }
 0x30b   : > { %v1313_v10 = vsel %vm1291_vm3, %v11092_v3, -inf  ;;  %v11104_v17 = vadd.f32 %v1193_v6, %v574_v15  ;;  %v11142_v6 = vpop.permute.xlu0 %9776 }
 0x30c   : > { %1314 = vmax.xlane.f32.xlu1 %v1313_v10  ;;  %1305 = vmax.xlane.f32.xlu0 %v1304_v11  ;;  %v1310_v18 = vsel %vm1291_vm3, %v11096_v9, -inf  ;;  %v1331_v32 = vsel %vm1291_vm3, %v11102_v16, -inf }
 0x30d   : > { %v1328_v30 = vsel %vm1291_vm3, %v11104_v17, -inf }
 0x310   : > { %v8714_v23 = vpop.f32.mrb[8].mxu1  ;;  %1311 = vmax.xlane.f32.xlu1 %v1310_v18  ;;  %1317 = vmax.xlane.f32.xlu0 %v1316_v19 }
 0x311   : > { %v1104_v25 = vpop.f32.mrb[9].mxu1  ;;  %v11110_v27 = vadd.f32 %v8714_v23, %v573_v21 }
 0x312   : > { %v11122_v50 = vadd.f32 %v1104_v25, %v572_v47 }
 0x313   : > { %v1325_v37 = vsel %vm1291_vm3, %v11110_v27, -inf }
 0x314   : > { %1329 = vmax.xlane.f32.xlu1 %v1328_v30  ;;  %1332 = vmax.xlane.f32.xlu0 %v1331_v32  ;;  %v1322_v60 = vsel %vm1291_vm3, %v11122_v50, -inf }
 0x318   : > { %v8728_v40 = vpop.f32.mrb[10].mxu1  ;;  %1326 = vmax.xlane.f32.xlu0 %v1325_v37 }
 0x319   : > { %v1282_v42 = vpop.f32.mrb[11].mxu1  ;;  %v11124_v57 = vadd.f32 %v8728_v40, %v577_v52 }
 0x31a   : > { %v11140_v5 = vadd.f32 %v1282_v42, %v576_v1 }
 0x31b   : > { %v1337_v63 = vsel %vm1291_vm3, %v11124_v57, -inf }
 0x31c   : > { %v1334_v11 = vsel %vm1291_vm3, %v11140_v5, -inf }
 0x325   : > { %9791 = vrot.lane.b32.xlu1 %v10978_v62, %s10550_s19 }
 0x32e   : > { %9786 = vrot.lane.b32.xlu0 %v10968_v58, %s10550_s19 }
 0x349   : > { %1323 = vmax.xlane.f32.xlu1 %v1322_v60 }
 0x34d   : > { %1338 = vmax.xlane.f32.xlu0 %v1337_v63 }
 0x35a   : > { %9801 = vrot.lane.b32.xlu1 %v10916_v33, %s10551_s20 }
 0x35e   : > { %2182 = vrot.lane.b32.xlu1 %v10900_v26, %s10552_s25 }
 0x363   : > { %9796 = vrot.lane.b32.xlu0 %v10906_v28, %s10551_s20 }
 0x367   : > { %9806 = vrot.lane.b32.xlu0 %v10926_v38, %s10551_s20 }
 0x381   : > { %v1297_v10 = vpop.xlane.xlu1 %1296 }
 0x382   : > { %v1341_v13 = vsub.f32 %v11066_v12, %v1297_v10  ;;  %1335 = vmax.xlane.f32.xlu1 %v1334_v11  ;;  %v1294_v15 = vpop.xlane.xlu0 %1293 }
 0x383   : > { %v1340_v18 = vsub.f32 %v11068_v14, %v1294_v15 }
 0x384   : > { %v1358_v19 = vmul.f32 1.442695, %v1341_v13 }
 0x385   : > { %v1356_v21 = vmul.f32 1.442695, %v1340_v18 }
 0x386   : > { %10035 = vpow2.f32 %v1358_v19 }
 0x387   : > { %10037 = vpow2.f32 %v1356_v21 }
 0x389   : > { %v1303_v23 = vpop.xlane.xlu1 %1302 }
 0x38a   : > { %v1343_v25 = vsub.f32 %v11074_v20, %v1303_v23  ;;  %v1300_v30 = vpop.xlane.xlu0 %1299 }
 0x38b   : > { %v1342_v32 = vsub.f32 %v11076_v22, %v1300_v30 }
 0x38c   : > { %v1362_v37 = vmul.f32 1.442695, %v1343_v25 }
 0x38d   : > { %v1360_v40 = vmul.f32 1.442695, %v1342_v32 }
 0x38e   : > { %10039 = vpow2.f32 %v1362_v37 }
 0x38f   : > { %10041 = vpow2.f32 %v1360_v40 }
 0x390   : > { %v11150_v42 = vpop.eup %10035 }
 0x391   : > { %v11152_v12 = vpop.eup %10037  ;;  %v1309_v47 = vpop.xlane.xlu0 %1308  ;;  %v1391_v14 = vsel %vm1291_vm3, %v11150_v42, 0.0 }
 0x392   : > { %v1345_v52 = vsub.f32 %v11082_v35, %v1309_v47  ;;  %1392 = vadd.xlane.f32.xlu0 %v1391_v14  ;;  %v1388_v20 = vsel %vm1291_vm3, %v11152_v12, 0.0 }
 0x393   : > { %1389 = vadd.xlane.f32.xlu1 %v1388_v20 }
 0x394   : > { %v1366_v22 = vmul.f32 1.442695, %v1345_v52 }
 0x395   : > { %v1321_v60 = vpop.xlane.xlu0 %1320 }
 0x396   : > { %10043 = vpow2.f32 %v1366_v22  ;;  %v1349_v63 = vsub.f32 %v11084_v45, %v1321_v60 }
 0x398   : > { %v11160_v1 = vpop.eup %10039  ;;  %v1374_v10 = vmul.f32 1.442695, %v1349_v63 }
 0x399   : > { %v1315_v11 = vpop.xlane.xlu1 %1314  ;;  %v1306_v13 = vpop.xlane.xlu0 %1305  ;;  %v1397_v15 = vsel %vm1291_vm3, %v11160_v1, 0.0 }
 0x39a   : > { %v11164_v18 = vpop.eup %10041  ;;  %10045 = vpow2.f32 %v1374_v10  ;;  %v1347_v35 = vsub.f32 %v11092_v3, %v1315_v11  ;;  %v1344_v19 = vsub.f32 %v11088_v55, %v1306_v13  ;;  %1398 = vadd.xlane.f32.xlu1 %v1397_v15 }
 0x39b   : > { %v1394_v30 = vsel %vm1291_vm3, %v11164_v18, 0.0 }
 0x39c   : > { %v1370_v21 = vmul.f32 1.442695, %v1347_v35  ;;  %v1364_v23 = vmul.f32 1.442695, %v1344_v19 }
 0x39d   : > { %v1312_v25 = vpop.xlane.xlu1 %1311  ;;  %v1318_v45 = vpop.xlane.xlu0 %1317 }
 0x39e   : > { %10047 = vpow2.f32 %v1370_v21  ;;  %v1346_v32 = vsub.f32 %v11096_v9, %v1312_v25  ;;  %v1348_v37 = vsub.f32 %v11094_v7, %v1318_v45  ;;  %1395 = vadd.xlane.f32.xlu1 %v1394_v30 }
 0x39f   : > { %10049 = vpow2.f32 %v1364_v23 }
 0x3a0   : > { %v11172_v40 = vpop.eup %10043  ;;  %v1368_v3 = vmul.f32 1.442695, %v1346_v32  ;;  %v1372_v47 = vmul.f32 1.442695, %v1348_v37 }
 0x3a1   : > { %v1330_v55 = vpop.xlane.xlu1 %1329  ;;  %v1333_v14 = vpop.xlane.xlu0 %1332  ;;  %v1403_v52 = vsel %vm1291_vm3, %v11172_v40, 0.0 }
 0x3a2   : > { %10051 = vpow2.f32 %v1368_v3  ;;  %v1352_v20 = vsub.f32 %v11104_v17, %v1330_v55  ;;  %v1353_v22 = vsub.f32 %v11102_v16, %v1333_v14  ;;  %1404 = vadd.xlane.f32.xlu0 %v1403_v52 }
 0x3a3   : > { %10053 = vpow2.f32 %v1372_v47 }
 0x3a4   : > { %v11178_v9 = vpop.eup %10045  ;;  %v1380_v7 = vmul.f32 1.442695, %v1352_v20  ;;  %v1382_v60 = vmul.f32 1.442695, %v1353_v22 }
 0x3a5   : > { %v1327_v63 = vpop.xlane.xlu0 %1326  ;;  %v1415_v10 = vsel %vm1291_vm3, %v11178_v9, 0.0  ;;  %v11221_v47 = vpop.permute.xlu1 %9791 }
 0x3a6   : > { %10055 = vpow2.f32 %v1380_v7  ;;  %v1351_v11 = vsub.f32 %v11110_v27, %v1327_v63  ;;  %1416 = vadd.xlane.f32.xlu0 %v1415_v10 }
 0x3a7   : > { %10057 = vpow2.f32 %v1382_v60 }
 0x3a8   : > { %v11183_v13 = vpop.eup %10047  ;;  %v1378_v17 = vmul.f32 1.442695, %v1351_v11 }
 0x3a9   : > { %v11185_v15 = vpop.eup %10049  ;;  %v1409_v16 = vsel %vm1291_vm3, %v11183_v13, 0.0  ;;  %v11225_v55 = vpop.permute.xlu0 %9786 }
 0x3aa   : > { %10059 = vpow2.f32 %v1378_v17  ;;  %1410 = vadd.xlane.f32.xlu1 %v1409_v16  ;;  %v1400_v35 = vsel %vm1291_vm3, %v11185_v15, 0.0 }
 0x3ab   : > { %1401 = vadd.xlane.f32.xlu0 %v1400_v35 }
 0x3ac   : > { %v11191_v19 = vpop.eup %10051 }
 0x3ad   : > { %v11193_v21 = vpop.eup %10053  ;;  %v1406_v27 = vsel %vm1291_vm3, %v11191_v19, 0.0 }
 0x3ae   : > { %1407 = vadd.xlane.f32.xlu1 %v1406_v27  ;;  %v1412_v23 = vsel %vm1291_vm3, %v11193_v21, 0.0 }
 0x3af   : > { %1413 = vadd.xlane.f32.xlu0 %v1412_v23 }
 0x3b0   : > { %v11199_v25 = vpop.eup %10055 }
 0x3b1   : > { %v11201_v45 = vpop.eup %10057  ;;  %v1424_v30 = vsel %vm1291_vm3, %v11199_v25, 0.0 }
 0x3b2   : > { %1425 = vadd.xlane.f32.xlu1 %v1424_v30  ;;  %v1427_v32 = vsel %vm1291_vm3, %v11201_v45, 0.0 }
 0x3b3   : > { %1428 = vadd.xlane.f32.xlu0 %v1427_v32 }
 0x3b4   : > { %v11207_v37 = vpop.eup %10059 }
 0x3b5   : > { %v1421_v3 = vsel %vm1291_vm3, %v11207_v37, 0.0 }
 0x3b7   : > { %1422 = vadd.xlane.f32.xlu0 %v1421_v3 }
 0x3c3   : > { %9811 = vrot.lane.b32.xlu1 %v10936_v43, %s10551_s20 }
 0x3c7   : > { %2275 = vrot.lane.b32.xlu1 %v10908_v29, %s10552_s25 }
 0x3cb   : > { %2364 = vrot.lane.b32.xlu1 %v10920_v36, %s10552_s25 }
 0x3cd   : > { %2184 = vrot.lane.b32.xlu0 %v10898_v24, %s10552_s25 }
 0x3d1   : > { %2273 = vrot.lane.b32.xlu0 %v10910_v31, %s10552_s25 }
 0x3d5   : > { %9816 = vrot.lane.b32.xlu0 %v10948_v48, %s10551_s20 }
 0x3d6   : > { %v1324_v14 = vpop.xlane.xlu1 %1323 }
 0x3d7   : > { %v1350_v52 = vsub.f32 %v11122_v50, %v1324_v14 }
 0x3d9   : > { %2366 = vrot.lane.b32.xlu0 %v10918_v34, %s10552_s25  ;;  %v1376_v22 = vmul.f32 1.442695, %v1350_v52 }
 0x3da   : > { %v1339_v20 = vpop.xlane.xlu0 %1338  ;;  %v11253_v11 = vpop.permute.xlu1 %9801 }
 0x3db   : > { %v1355_v7 = vsub.f32 %v11124_v57, %v1339_v20  ;;  %10061 = vpow2.f32 %v1376_v22 }
 0x3dd   : > { %2455 = vrot.lane.b32.xlu0 %v10930_v41, %s10552_s25  ;;  %v1386_v60 = vmul.f32 1.442695, %v1355_v7 }
 0x3de   : > { %v11255_v17 = vpop.permute.xlu1 %2182  ;;  %v11258_v23 = vpop.permute.xlu0 %9796 }
 0x3df   : > { %10063 = vpow2.f32 %v1386_v60  ;;  %v9778_v60 = vunpack.i.l.bf16 %v11142_v6 }
 0x3e1   : > { %9826 = vrot.lane.b32.xlu0 %v10968_v58, %s10551_s20 }
 0x3e2   : > { %v11260_v30 = vpop.permute.xlu0 %9806 }
 0x3e5   : > { %2548 = vrot.lane.b32.xlu0 %v10938_v44, %s10552_s25  ;;  %v11239_v50 = vpop.eup %10061 }
 0x3e6   : > { %v1418_v57 = vsel %vm1291_vm3, %v11239_v50, 0.0 }
 0x3e9   : > { %2637 = vrot.lane.b32.xlu0 %v10954_v51, %s10552_s25  ;;  %v11245_v63 = vpop.eup %10063 }
 0x3ea   : > { %v1433_v10 = vsel %vm1291_vm3, %v11245_v63, 0.0 }
 0x3ed   : > { %2728 = vrot.lane.b32.xlu0 %v10962_v56, %s10552_s25 }
 0x3ef   : > { %1419 = vadd.xlane.f32.xlu1 %v1418_v57 }
 0x3f1   : > { %2819 = vrot.lane.b32.xlu0 %v10972_v61, %s10552_s25 }
 0x3f3   : > { %1434 = vadd.xlane.f32.xlu1 %v1433_v10 }
 0x3f5   : > { %9841 = vrot.lane.b32.xlu0 %v10916_v33, %s10553_s18 }
 0x40f   : > { %v1336_v16 = vpop.xlane.xlu1 %1335 }
 0x410   : > { %v1354_v35 = vsub.f32 %v11140_v5, %v1336_v16  ;;  %v9779_v5 = vunpack.i.h.bf16 %v11142_v6 }
 0x412   : > { %v1384_v27 = vmul.f32 1.442695, %v1354_v35 }
 0x414   : > { %10065 = vpow2.f32 %v1384_v27  ;;  %v9297_v27 = vpack.c.bf16 %v9779_v5, %v9778_v60 }
 0x41e   : > { %v11262_v32 = vpop.eup %10065 }
 0x41f   : > { %v1393_v3 = vpop.xlane.xlu0 %1392  ;;  %v1430_v14 = vsel %vm1291_vm3, %v11262_v32, 0.0 }
 0x420   : > { %10067 = vrcp.f32 %v1393_v3  ;;  %v1390_v52 = vpop.xlane.xlu1 %1389  ;;  %1431 = vadd.xlane.f32.xlu1 %v1430_v14  ;;  %v9783_v14 = vunpack.i.l.bf16 %v11138_v4 }
 0x421   : > { %10069 = vrcp.f32 %v1390_v52 }
 0x427   : > { %v1399_v20 = vpop.xlane.xlu1 %1398 }
 0x428   : > { %10071 = vrcp.f32 %v1399_v20 }
 0x42a   : > { %v10068_v22 = vpop.eup %10067 }
 0x42b   : > { %v10070_v7 = vpop.eup %10069  ;;  %v1396_v57 = vpop.xlane.xlu1 %1395  ;;  %v1453_v16 = vmul.f32 %v10068_v22, %v11150_v42  ;;  %v9784_v42 = vunpack.i.h.bf16 %v11138_v4 }
 0x42c   : > { %10073 = vrcp.f32 %v1396_v57  ;;  %v1452_v10 = vmul.f32 %v10070_v7, %v11152_v12 }
 0x42d   : > { %v9301_v7 = vpack.c.bf16 %v9784_v42, %v9783_v14  ;;  %v9794_v14 = vunpack.i.h.bf16 %v11221_v47 }
 0x42e   : > { %8733 = vmatprep.mubr.msk.f32.mxu0 %vm1291_vm3, %v1452_v10  ;;  %v9789_v10 = vunpack.i.h.bf16 %v11225_v55 }
 0x42f   : > { %8734 = vmatmul.mubr.msk.f32.vlgmr.msra.gmra.mrb[20].mxu0 %vm1291_vm3, %v1453_v16  ;;  %v1405_v35 = vpop.xlane.xlu0 %1404 }
 0x430   : > { %9292 = vmatpush3.bf16.msra.mxu0 %v11048_v0  ;;  %10075 = vrcp.f32 %v1405_v35 }
 0x431   : > { %9298 = vmatprep.subr.bf16.mxu0 %v9297_v27  ;;  %9821 = vrot.lane.b32.xlu1 %v10958_v53, %s10551_s20 }
 0x432   : > { %v10072_v3 = vpop.eup %10071 }
 0x433   : > { %v1417_v6 = vpop.xlane.xlu0 %1416  ;;  %v1455_v0 = vmul.f32 %v10072_v3, %v11160_v1 }
 0x435   : > { %2457 = vrot.lane.b32.xlu1 %v10928_v39, %s10552_s25 }
 0x436   : > { %v10074_v12 = vpop.eup %10073 }
 0x437   : > { %v1411_v52 = vpop.xlane.xlu1 %1410  ;;  %v1454_v20 = vmul.f32 %v10074_v12, %v11164_v18 }
 0x438   : > { %v1402_v22 = vpop.xlane.xlu0 %1401 }
 0x439   : > { %10077 = vrcp.f32 %v1402_v22  ;;  %8740 = vmatprep.mubr.msk.f32.mxu1 %vm1291_vm3, %v1454_v20  ;;  %2546 = vrot.lane.b32.xlu1 %v10940_v46, %s10552_s25  ;;  %v9798_v22 = vunpack.i.l.bf16 %v11258_v23 }
 0x43a   : > { %10079 = vrcp.f32 %v1417_v6  ;;  %8741 = vmatmul.mubr.msk.f32.vlgmr.msra.gmra.mrb[12].mxu1 %vm1291_vm3, %v1455_v0  ;;  %v10076_v60 = vpop.eup %10075 }
 0x43b   : > { %10081 = vrcp.f32 %v1411_v52  ;;  %9296 = vmatpush3.bf16.msra.mxu1 %v11063_v8  ;;  %v1408_v4 = vpop.xlane.xlu1 %1407  ;;  %v9788_v8 = vunpack.i.l.bf16 %v11225_v55  ;;  %v1457_v12 = vmul.f32 %v10076_v60, %v11172_v40  ;;  %v9793_v52 = vunpack.i.l.bf16 %v11221_v47 }
 0x43c   : > { %9302 = vmatprep.subr.bf16.mxu1 %v9301_v7  ;;  %10083 = vrcp.f32 %v1408_v4  ;;  %v1414_v18 = vpop.xlane.xlu0 %1413  ;;  %v9799_v55 = vunpack.i.h.bf16 %v11258_v23 }
 0x43d   : > { %10085 = vrcp.f32 %v1414_v18  ;;  %9831 = vrot.lane.b32.xlu1 %v10978_v62, %s10551_s20  ;;  %s12362_s20 = scalar_lea.hbm %s12418_s6, %s8296_s13 }
 0x43f   : > { %v1426_v1 = vpop.xlane.xlu1 %1425 }
 0x440   : > { %10087 = vrcp.f32 %v1426_v1  ;;  %v1429_v5 = vpop.xlane.xlu0 %1428 }
 0x441   : > { %10089 = vrcp.f32 %v1429_v5  ;;  %2639 = vrot.lane.b32.xlu1 %v10950_v49, %s10552_s25  ;;  %v9313_v5 = vpack.c.bf16 %v9799_v55, %v9798_v22  ;;  %v9804_v22 = vunpack.i.h.bf16 %v11253_v11 }
 0x443   : > { %v10078_v57 = vpop.eup %10077 }
 0x444   : > { %v10080_v16 = vpop.eup %10079  ;;  %v11292_v35 = vpop.xlane.xlu0 %1422  ;;  %v1456_v6 = vmul.f32 %v10078_v57, %v11185_v15  ;;  %v9305_v15 = vpack.c.bf16 %v9789_v10, %v9788_v8 }
 0x445   : > { %v10082_v3 = vpop.eup %10081  ;;  %2730 = vrot.lane.b32.xlu1 %v10960_v54, %s10552_s25  ;;  %v1461_v18 = vmul.f32 %v10080_v16, %v11178_v9  ;;  %10091 = vrcp.f32 %v11292_v35 }
 0x446   : > { %v10084_v42 = vpop.eup %10083  ;;  %8747 = vmatprep.mubr.msk.f32.mxu0 %vm1291_vm3, %v1456_v6  ;;  %v1459_v47 = vmul.f32 %v10082_v3, %v11183_v13 }
 0x447   : > { %v10086_v20 = vpop.eup %10085  ;;  %8748 = vmatmul.mubr.msk.f32.vlgmr.msra.gmra.mrb[22].mxu0 %vm1291_vm3, %v1457_v12  ;;  %v1458_v0 = vmul.f32 %v10084_v42, %v11191_v19  ;;  %v9309_v19 = vpack.c.bf16 %v9794_v14, %v9793_v52 }
 0x448   : > { %9300 = vmatpush3.bf16.msra.mxu0 %v9297_v27  ;;  %v2185_v4 = vpop.permute.xlu0 %2184  ;;  %v1460_v40 = vmul.f32 %v10086_v20, %v11193_v21  ;;  %v9809_v27 = vunpack.i.h.bf16 %v11260_v30 }
 0x449   : > { %9306 = vmatprep.subr.bf16.mxu0 %v9305_v15  ;;  %8754 = vmatprep.mubr.msk.f32.mxu1 %vm1291_vm3, %v1458_v0 }
 0x44a   : > { %v10088_v1 = vpop.eup %10087  ;;  %2821 = vrot.lane.b32.xlu1 %v10970_v59, %s10552_s25  ;;  %8761 = vmatprep.mubr.msk.f32.mxu0 %vm1291_vm3, %v1460_v40  ;;  %s10461_s25 = scalar_lea.vmem %s12364_s15, 2048 }
 0x44b   : > { %v10090_v23 = vpop.eup %10089  ;;  %8755 = vmatmul.mubr.msk.f32.vlgmr.msra.gmra.mrb[14].mxu1 %vm1291_vm3, %v1459_v47  ;;  %8762 = vmatmul.mubr.msk.f32.vlgmr.msra.gmra.mrb[24].mxu0 %vm1291_vm3, %v1461_v18  ;;  %v1464_v21 = vmul.f32 %v10088_v1, %v11199_v25  ;;  %v9808_v25 = vunpack.i.l.bf16 %v11260_v30  ;;  %p10462_p7 = scmp.ne.s32.totalorder %s12364_s15, %s10461_s25 }
 0x44c   : > { %9304 = vmatpush3.bf16.msra.mxu1 %v9301_v7  ;;  %9308 = vmatpush3.bf16.msra.mxu0 %v9305_v15  ;;  %v11315_v13 = vpop.permute.xlu0 %2273  ;;  %v1465_v9 = vmul.f32 %v10090_v23, %v11201_v45  ;;  %v9812_v7 = vpop.permute.xlu1 %9811  ;;  %v9803_v15 = vunpack.i.l.bf16 %v11253_v11 }
 0x44d   : > { %9310 = vmatprep.subr.bf16.mxu1 %v9309_v19  ;;  %9315 = vmatprep.subr.msk.bf16.mxu0 %vm10996_vm2, %v9313_v5  ;;  %v9325_v45 = vpack.c.bf16 %v9809_v27, %v9808_v25  ;;  %p10463_p12 = pnand %p10462_p7, %p12461_p4 }
 0x44e   : > { %9836 = vrot.lane.b32.xlu1 %v10906_v28, %s10553_s18  ;;  %8775 = vmatprep.mubr.msk.f32.mxu0 %vm1291_vm3, %v1464_v21  ;;  %v9319_v40 = vpack.c.bf16 %v9804_v22, %v9803_v15  ;;  %v9813_v21 = vunpack.i.l.bf16 %v9812_v7 }
 0x44f   : > { %8776 = vmatmul.mubr.msk.f32.vlgmr.msra.gmra.mrb[26].mxu0 %vm1291_vm3, %v1465_v9  ;;  %v10092_v20 = vpop.eup %10091  ;;  %p10464_p1 = pneg %p10463_p12 }
 0x450   : > { %v9817_v60 = vpop.permute.xlu0 %9816  ;;  %8789 = vmatprep.mubr.msk.f32.mxu0 %vm584_vm1, %v11255_v17  ;;  %v11332_v10 = vpop.permute.xlu1 %2275 }
 0x451   : > { %v9819_v30 = vunpack.i.h.bf16 %v9817_v60  ;;  %v9818_v8 = vunpack.i.l.bf16 %v9817_v60 }
 0x452   : > { %9846 = vrot.lane.b32.xlu1 %v10926_v38, %s10553_s18 }
 0x453   : > { %v9337_v6 = vpack.c.bf16 %v9819_v30, %v9818_v8 }
 0x454   : > { %v2367_v57 = vpop.permute.xlu0 %2366  ;;  %v2365_v17 = vpop.permute.xlu1 %2364 }
 0x455   : > { %9318 = vmatpush3.bf16.xpose.msk.msra.mxu0 %vm10996_vm2, %v9313_v5 }
 0x456   : > { %9327 = vmatprep.subr.msk.bf16.mxu0 %vm10996_vm2, %v9325_v45  ;;  %9851 = vrot.lane.b32.xlu1 %v10936_v43, %s10553_s18 }
 0x458   : > { %v2456_v16 = vpop.permute.xlu0 %2455 }
 0x45c   : > { %8790 = vmatmul.mubr.msk.f32.vlgmr.msra.gmra.mrb[28].mxu0 %vm584_vm1, %v2185_v4  ;;  %v9827_v3 = vpop.permute.xlu0 %9826  ;;  %v1463_v4 = vmul.f32 %v10092_v20, %v11207_v37  ;;  %v9814_v37 = vunpack.i.h.bf16 %v9812_v7 }
 0x45d   : > { %9330 = vmatpush3.bf16.xpose.msk.msra.mxu0 %vm10996_vm2, %v9325_v45  ;;  %8803 = vmatprep.mubr.msk.f32.mxu0 %vm584_vm1, %v2365_v17  ;;  %v9829_v12 = vunpack.i.h.bf16 %v9827_v3  ;;  %v9828_v42 = vunpack.i.l.bf16 %v9827_v3 }
 0x45e   : > { %9339 = vmatprep.subr.msk.bf16.mxu0 %vm10996_vm2, %v9337_v6  ;;  %v9331_v25 = vpack.c.bf16 %v9814_v37, %v9813_v21 }
 0x45f   : > { %v9349_v14 = vpack.c.bf16 %v9829_v12, %v9828_v42 }
 0x460   : > { %v2549_v18 = vpop.permute.xlu0 %2548 }
 0x464   : > { %8804 = vmatmul.mubr.msk.f32.vlgmr.msra.gmra.mrb[30].mxu0 %vm584_vm1, %v2367_v57  ;;  %v2638_v23 = vpop.permute.xlu0 %2637 }
 0x465   : > { %9342 = vmatpush3.bf16.xpose.msk.msra.mxu0 %vm10996_vm2, %v9337_v6 }
 0x466   : > { %9351 = vmatprep.subr.msk.bf16.mxu0 %vm10996_vm2, %v9349_v14 }
 0x468   : > { %v2729_v60 = vpop.permute.xlu0 %2728 }
 0x47c   : > { %v1420_v52 = vpop.xlane.xlu1 %1419 }
 0x47d   : > { %10093 = vrcp.f32 %v1420_v52 }
 0x480   : > { %v1435_v35 = vpop.xlane.xlu1 %1434 }
 0x481   : > { %10095 = vrcp.f32 %v1435_v35 }
 0x487   : > { %v10094_v55 = vpop.eup %10093 }
 0x488   : > { %v1462_v0 = vmul.f32 %v10094_v55, %v11239_v50 }
 0x48a   : > { %8768 = vmatprep.mubr.msk.f32.mxu1 %vm1291_vm3, %v1462_v0 }
 0x48b   : > { %8769 = vmatmul.mubr.msk.f32.vlgmr.msra.gmra.mrb[16].mxu1 %vm1291_vm3, %v1463_v4  ;;  %v10096_v50 = vpop.eup %10095 }
 0x48c   : > { %9312 = vmatpush3.bf16.msra.mxu1 %v9309_v19  ;;  %v1467_v19 = vmul.f32 %v10096_v50, %v11245_v63 }
 0x48d   : > { %9321 = vmatprep.subr.msk.bf16.mxu1 %vm10996_vm2, %v9319_v40 }
 0x4ad   : > { %v1432_v47 = vpop.xlane.xlu1 %1431 }
 0x4ae   : > { %10097 = vrcp.f32 %v1432_v47 }
 0x4b1   : > { %v9822_v1 = vpop.permute.xlu1 %9821 }
 0x4b2   : > { %v9824_v63 = vunpack.i.h.bf16 %v9822_v1  ;;  %v9823_v7 = vunpack.i.l.bf16 %v9822_v1 }
 0x4b4   : > { %v9343_v57 = vpack.c.bf16 %v9824_v63, %v9823_v7  ;;  %v2166_v7 = vld [vmem:[#allocation8 + $0x80] sm:$0xff] }
 0x4b5   : > { %v2458_v11 = vpop.permute.xlu1 %2457 }
 0x4b8   : > { %v10098_v5 = vpop.eup %10097 }
 0x4b9   : > { %v2547_v9 = vpop.permute.xlu1 %2546  ;;  %v1466_v27 = vmul.f32 %v10098_v5, %v11262_v32 }
 0x4ba   : > { %8817 = vmatprep.mubr.msk.f32.mxu0 %vm584_vm1, %v2547_v9 }
 0x4bb   : > { %8782 = vmatprep.mubr.msk.f32.mxu1 %vm1291_vm3, %v1466_v27  ;;  %8818 = vmatmul.mubr.msk.f32.vlgmr.msra.gmra.mrb[32].mxu0 %vm584_vm1, %v2549_v18 }
 0x4bc   : > { %9354 = vmatpush3.bf16.xpose.msk.msra.mxu0 %vm10996_vm2, %v9349_v14  ;;  %8783 = vmatmul.mubr.msk.f32.vlgmr.msra.gmra.mrb[18].mxu1 %vm1291_vm3, %v1467_v19 }
 0x4bd   : > { %9324 = vmatpush3.bf16.xpose.msk.msra.mxu1 %vm10996_vm2, %v9319_v40  ;;  %8831 = vmatprep.mubr.msk.f32.mxu0 %vm584_vm1, %v2729_v60  ;;  %v9832_v32 = vpop.permute.xlu1 %9831 }
 0x4be   : > { %8796 = vmatprep.mubr.msk.f32.mxu1 %vm584_vm1, %v11315_v13  ;;  %9333 = vmatprep.subr.msk.bf16.mxu1 %vm10996_vm2, %v9331_v25  ;;  %v2820_v13 = vpop.permute.xlu0 %2819  ;;  %v9834_v8 = vunpack.i.h.bf16 %v9832_v32  ;;  %v9833_v17 = vunpack.i.l.bf16 %v9832_v32  ;;  %v2167_v32 = vld [vmem:[#allocation8 + $0x88] sm:$0xff] }
 0x4c0   : > { %v9355_v3 = vpack.c.bf16 %v9834_v8, %v9833_v17  ;;  %v2171_v8 = vld [vmem:[#allocation8 + $0xa8] sm:$0xff] }
 0x4c1   : > { %v2640_v45 = vpop.permute.xlu1 %2639 }
 0x4c2   : > { %v9842_v12 = vpop.permute.xlu0 %9841 }
 0x4c3   : > { %v9844_v14 = vunpack.i.h.bf16 %v9842_v12  ;;  %v9843_v52 = vunpack.i.l.bf16 %v9842_v12 }
 0x4c4   : > { %8797 = vmatmul.mubr.msk.f32.vlgmr.msra.gmra.mrb[20].mxu1 %vm584_vm1, %v11332_v10 }
 0x4c5   : > { %9336 = vmatpush3.bf16.xpose.msk.msra.mxu1 %vm10996_vm2, %v9331_v25  ;;  %8810 = vmatprep.mubr.msk.f32.mxu1 %vm584_vm1, %v2456_v16  ;;  %v2731_v30 = vpop.permute.xlu1 %2730  ;;  %v9365_v0 = vpack.c.bf16 %v9844_v14, %v9843_v52 }
 0x4c6   : > { %9345 = vmatprep.subr.msk.bf16.mxu1 %vm10996_vm2, %v9343_v57  ;;  %8832 = vmatmul.mubr.msk.f32.vlgmr.msra.gmra.mrb[34].mxu0 %vm584_vm1, %v2731_v30 }
 0x4c9   : > { %v2822_v6 = vpop.permute.xlu1 %2821 }
 0x4cc   : > { %8811 = vmatmul.mubr.msk.f32.vlgmr.msra.gmra.mrb[22].mxu1 %vm584_vm1, %v2458_v11 }
 0x4cd   : > { %9348 = vmatpush3.bf16.xpose.msk.msra.mxu1 %vm10996_vm2, %v9343_v57  ;;  %8824 = vmatprep.mubr.msk.f32.mxu1 %vm584_vm1, %v2638_v23  ;;  %v9837_v10 = vpop.permute.xlu1 %9836 }
 0x4ce   : > { %v9839_v16 = vunpack.i.h.bf16 %v9837_v10  ;;  %v9838_v42 = vunpack.i.l.bf16 %v9837_v10  ;;  %9357 = vmatprep.subr.msk.bf16.mxu1 %vm10996_vm2, %v9355_v3 }
 0x4d0   : > { %v9361_v20 = vpack.c.bf16 %v9839_v16, %v9838_v42 }
 0x4d1   : > { %v9847_v55 = vpop.permute.xlu1 %9846 }
 0x4d2   : > { %v9849_v22 = vunpack.i.h.bf16 %v9847_v55  ;;  %v9848_v15 = vunpack.i.l.bf16 %v9847_v55  ;;  %9362 = vmatprep.subr.bf16.mxu0 %v9361_v20 }
 0x4d3   : > { %9364 = vmatpush3.bf16.msra.mxu0 %v9361_v20 }
 0x4d4   : > { %8825 = vmatmul.mubr.msk.f32.vlgmr.msra.gmra.mrb[24].mxu1 %vm584_vm1, %v2640_v45  ;;  %v11388_v4 = vpack.c.bf16 %v9849_v22, %v9848_v15 }
 0x4d5   : > { %9360 = vmatpush3.bf16.xpose.msk.msra.mxu1 %vm10996_vm2, %v9355_v3  ;;  %8838 = vmatprep.mubr.msk.f32.mxu1 %vm584_vm1, %v2820_v13  ;;  %v9852_v40 = vpop.permute.xlu1 %9851  ;;  %v2170_v3 = vld [vmem:[#allocation8 + $0xa0] sm:$0xff] }
 0x4d6   : > { %9366 = vmatprep.subr.bf16.mxu1 %v9365_v0  ;;  %9370 = vmatprep.subr.bf16.mxu0 %v11388_v4  ;;  %v9854_v35 = vunpack.i.h.bf16 %v9852_v40  ;;  %v9853_v47 = vunpack.i.l.bf16 %v9852_v40  ;;  %v2169_v40 = vld [vmem:[#allocation8 + $0x98] sm:$0xff] }
 0x4d8   : > { %v11395_v18 = vpack.c.bf16 %v9854_v35, %v9853_v47  ;;  %v2168_v35 = vld [vmem:[#allocation8 + $0x90] sm:$0xff]  ;;  %v2175_v47 = vld [vmem:[#allocation8 + $0xc8] sm:$0xff] }
 0x4dc   : > { %8839 = vmatmul.mubr.msk.f32.vlgmr.msra.gmra.mrb[26].mxu1 %vm584_vm1, %v2822_v6 }
 0x4dd   : > { %9368 = vmatpush3.bf16.msra.mxu1 %v9365_v0 }
 0x4de   : > { %9374 = vmatprep.subr.bf16.mxu1 %v11395_v18 }
 0x502   : > { %v11398_v1 = vpop.f32.mrb[20].mxu0 }
 0x503   : > { %v11400_v11 = vpop.f32.mrb[21].mxu0 }
 0x50d   : > { %v11402_v23 = vpop.f32.mrb[12].mxu1 }
 0x50e   : > { %v11404_v50 = vpop.f32.mrb[13].mxu1 }
 0x51a   : > { %v11406_v5 = vpop.f32.mrb[22].mxu0 }
 0x51b   : > { %v11408_v37 = vpop.f32.mrb[23].mxu0 }
 0x51e   : > { %v11410_v21 = vpop.f32.mrb[14].mxu1  ;;  %v11412_v9 = vpop.f32.mrb[24].mxu0 }
 0x51f   : > { %12439 = vst [vmem:[#allocation19_spill] sm:$0xff] %v11410_v21  ;;  %12440 = vst [vmem:[#allocation20_spill] sm:$0xff] %v11412_v9  ;;  %v11414_v27 = vpop.f32.mrb[15].mxu1  ;;  %v11416_v19 = vpop.f32.mrb[25].mxu0 }
 0x520   : > { %12441 = vst [vmem:[#allocation21_spill] sm:$0xff] %v11414_v27  ;;  %12442 = vst [vmem:[#allocation22_spill] sm:$0xff] %v11416_v19 }
 0x522   : > { %v11418_v25 = vpop.f32.mrb[26].mxu0 }
 0x523   : > { %12443 = vst [vmem:[#allocation23_spill] sm:$0xff] %v11418_v25  ;;  %v11420_v60 = vpop.f32.mrb[27].mxu0  ;;  %v2180_v25 = vld [vmem:[#allocation8 + $0xf0] sm:$0xff] }
 0x524   : > { %12444 = vst [vmem:[#allocation24_spill] sm:$0xff] %v11420_v60 }
 0x52f   : > { %v8791_v63 = vpop.f32.mrb[28].mxu0 }
 0x530   : > { %v11422_v45 = vadd.f32 %v8791_v63, %v2167_v32  ;;  %v2264_v57 = vpop.f32.mrb[29].mxu0  ;;  %v2174_v63 = vld [vmem:[#allocation8 + $0xc0] sm:$0xff] }
 0x531   : > { %v11424_v30 = vadd.f32 %v2264_v57, %v2166_v7 }
 0x532   : > { %v2913_v13 = vsel %vm1291_vm3, %v11422_v45, -inf }
 0x533   : > { %2914 = vmax.xlane.f32.xlu0 %v2913_v13  ;;  %v2910_v17 = vsel %vm1291_vm3, %v11424_v30, -inf }
 0x537   : > { %v8805_v6 = vpop.f32.mrb[30].mxu0  ;;  %2911 = vmax.xlane.f32.xlu0 %v2910_v17 }
 0x538   : > { %v11430_v12 = vadd.f32 %v8805_v6, %v2171_v8  ;;  %v2446_v10 = vpop.f32.mrb[31].mxu0 }
 0x539   : > { %v11432_v16 = vadd.f32 %v2446_v10, %v2170_v3 }
 0x53a   : > { %v2925_v42 = vsel %vm1291_vm3, %v11430_v12, -inf }
 0x53b   : > { %2926 = vmax.xlane.f32.xlu1 %v2925_v42  ;;  %v2922_v14 = vsel %vm1291_vm3, %v11432_v16, -inf }
 0x53f   : > { %2923 = vmax.xlane.f32.xlu1 %v2922_v14  ;;  %v2178_v14 = vld [vmem:[#allocation8 + $0xe0] sm:$0xff] }
 0x55e   : > { %v11438_v52 = vpop.f32.mrb[16].mxu1 }
 0x55f   : > { %12445 = vst [vmem:[#allocation25_spill] sm:$0xff] %v11438_v52  ;;  %v11440_v20 = vpop.f32.mrb[17].mxu1 }
 0x560   : > { %12446 = vst [vmem:[#allocation26_spill] sm:$0xff] %v11440_v20 }
 0x58e   : > { %v8819_v55 = vpop.f32.mrb[32].mxu0 }
 0x58f   : > { %v11442_v22 = vpop.f32.mrb[18].mxu1  ;;  %v2628_v15 = vpop.f32.mrb[33].mxu0  ;;  %v11450_v17 = vadd.f32 %v8819_v55, %v2175_v47  ;;  %v2172_v47 = vld [vmem:[#allocation8 + $0xb0] sm:$0xff] }
 0x590   : > { %12447 = vst [vmem:[#allocation27_spill] sm:$0xff] %v11442_v22  ;;  %v11444_v0 = vpop.f32.mrb[19].mxu1  ;;  %v11454_v10 = vadd.f32 %v2628_v15, %v2174_v63  ;;  %v2179_v22 = vld [vmem:[#allocation8 + $0xe8] sm:$0xff] }
 0x591   : > { %12448 = vst [vmem:[#allocation28_spill] sm:$0xff] %v11444_v0 }
 0x597   : > { %v8798_v32 = vpop.f32.mrb[20].mxu1 }
 0x598   : > { %v11446_v7 = vadd.f32 %v8798_v32, %v2169_v40  ;;  %v2355_v57 = vpop.f32.mrb[21].mxu1  ;;  %v2173_v40 = vld [vmem:[#allocation8 + $0xb8] sm:$0xff] }
 0x599   : > { %v11448_v13 = vadd.f32 %v2355_v57, %v2168_v35  ;;  %v8833_v8 = vpop.f32.mrb[34].mxu0  ;;  %v2937_v35 = vsel %vm1291_vm3, %v11450_v17, -inf  ;;  %v2934_v57 = vsel %vm1291_vm3, %v11454_v10, -inf }
 0x59a   : > { %v2810_v6 = vpop.f32.mrb[35].mxu0  ;;  %v2919_v3 = vsel %vm1291_vm3, %v11446_v7, -inf }
 0x59b   : > { %2920 = vmax.xlane.f32.xlu0 %v2919_v3  ;;  %v2916_v42 = vsel %vm1291_vm3, %v11448_v13, -inf  ;;  %v11460_v32 = vadd.f32 %v2810_v6, %v2178_v14  ;;  %v11472_v14 = vadd.f32 %v8833_v8, %v2179_v22  ;;  %v2181_v8 = vld [vmem:[#allocation8 + $0xf8] sm:$0xff] }
 0x59c   : > { %2917 = vmax.xlane.f32.xlu1 %v2916_v42 }
 0x59d   : > { %v2946_v6 = vsel %vm1291_vm3, %v11460_v32, -inf }
 0x59f   : > { %v8812_v55 = vpop.f32.mrb[22].mxu1  ;;  %2938 = vmax.xlane.f32.xlu0 %v2937_v35 }
 0x5a0   : > { %v11464_v15 = vadd.f32 %v8812_v55, %v2173_v40  ;;  %v2537_v63 = vpop.f32.mrb[23].mxu1  ;;  %2935 = vmax.xlane.f32.xlu1 %v2934_v57  ;;  %v2176_v40 = vld [vmem:[#allocation8 + $0xd0] sm:$0xff]  ;;  %v2177_v55 = vld [vmem:[#allocation8 + $0xd8] sm:$0xff] }
 0x5a1   : > { %v11466_v3 = vadd.f32 %v2537_v63, %v2172_v47 }
 0x5a2   : > { %v2931_v42 = vsel %vm1291_vm3, %v11464_v15, -inf }
 0x5a3   : > { %2932 = vmax.xlane.f32.xlu0 %v2931_v42  ;;  %v2928_v35 = vsel %vm1291_vm3, %v11466_v3, -inf  ;;  %v2949_v42 = vsel %vm1291_vm3, %v11472_v14, -inf }
 0x5a4   : > { %2947 = vmax.xlane.f32.xlu1 %v2946_v6 }
 0x5a7   : > { %v8826_v0 = vpop.f32.mrb[24].mxu1  ;;  %2929 = vmax.xlane.f32.xlu0 %v2928_v35 }
 0x5a8   : > { %v2719_v47 = vpop.f32.mrb[25].mxu1  ;;  %v11478_v63 = vadd.f32 %v8826_v0, %v2177_v55 }
 0x5a9   : > { %v11476_v57 = vadd.f32 %v2719_v47, %v2176_v40 }
 0x5aa   : > { %v2943_v6 = vsel %vm1291_vm3, %v11478_v63, -inf }
 0x5ab   : > { %2950 = vmax.xlane.f32.xlu0 %v2949_v42  ;;  %v2940_v22 = vsel %vm1291_vm3, %v11476_v57, -inf }
 0x5ac   : > { %2941 = vmax.xlane.f32.xlu1 %v2940_v22 }
 0x5af   : > { %v8840_v60 = vpop.f32.mrb[26].mxu1  ;;  %2944 = vmax.xlane.f32.xlu0 %v2943_v6 }
 0x5b0   : > { %v11486_v35 = vadd.f32 %v8840_v60, %v2181_v8  ;;  %v2901_v40 = vpop.f32.mrb[27].mxu1 }
 0x5b1   : > { %v11488_v0 = vadd.f32 %v2901_v40, %v2180_v25 }
 0x5b2   : > { %v2955_v55 = vsel %vm1291_vm3, %v11486_v35, -inf }
 0x5b3   : > { %2956 = vmax.xlane.f32.xlu0 %v2955_v55  ;;  %v2952_v47 = vsel %vm1291_vm3, %v11488_v0, -inf }
 0x5b4   : > { %2953 = vmax.xlane.f32.xlu1 %v2952_v47 }
 0x5c0   : > { %v2915_v42 = vpop.xlane.xlu0 %2914 }
 0x5c1   : > { %v2959_v60 = vsub.f32 %v11422_v45, %v2915_v42 }
 0x5c3   : > { %v2976_v8 = vmul.f32 1.442695, %v2959_v60 }
 0x5c4   : > { %v2912_v22 = vpop.xlane.xlu0 %2911 }
 0x5c5   : > { %9861 = vrot.lane.b32.xlu1 %v10958_v53, %s10553_s18  ;;  %v2958_v6 = vsub.f32 %v11424_v30, %v2912_v22  ;;  %10099 = vpow2.f32 %v2976_v8 }
 0x5c7   : > { %v2974_v40 = vmul.f32 1.442695, %v2958_v6 }
 0x5c8   : > { %v2927_v25 = vpop.xlane.xlu1 %2926 }
 0x5c9   : > { %9856 = vrot.lane.b32.xlu0 %v10948_v48, %s10553_s18  ;;  %v2963_v55 = vsub.f32 %v11430_v12, %v2927_v25  ;;  %10101 = vpow2.f32 %v2974_v40 }
 0x5cb   : > { %v2984_v47 = vmul.f32 1.442695, %v2963_v55 }
 0x5cc   : > { %v2924_v52 = vpop.xlane.xlu1 %2923 }
 0x5cd   : > { %v2962_v20 = vsub.f32 %v11432_v16, %v2924_v52  ;;  %10103 = vpow2.f32 %v2984_v47 }
 0x5cf   : > { %v2982_v9 = vmul.f32 1.442695, %v2962_v20  ;;  %v11502_v19 = vpop.eup %10099 }
 0x5d0   : > { %v3009_v45 = vsel %vm1291_vm3, %v11502_v19, 0.0 }
 0x5d1   : > { %10105 = vpow2.f32 %v2982_v9 }
 0x5d3   : > { %v11506_v42 = vpop.eup %10101 }
 0x5d4   : > { %v3006_v30 = vsel %vm1291_vm3, %v11506_v42, 0.0 }
 0x5d7   : > { %v11510_v12 = vpop.eup %10103 }
 0x5d8   : > { %v3021_v16 = vsel %vm1291_vm3, %v11510_v12, 0.0 }
 0x5db   : > { %v11514_v52 = vpop.eup %10105 }
 0x5dc   : > { %v3018_v9 = vsel %vm1291_vm3, %v11514_v52, 0.0 }
 0x5e9   : > { %3010 = vadd.xlane.f32.xlu1 %v3009_v45 }
 0x5ed   : > { %3007 = vadd.xlane.f32.xlu1 %v3006_v30 }
 0x5f1   : > { %3022 = vadd.xlane.f32.xlu1 %v3021_v16 }
 0x5f5   : > { %3019 = vadd.xlane.f32.xlu1 %v3018_v9 }
 0x628   : > { %v2921_v20 = vpop.xlane.xlu0 %2920 }
 0x629   : > { %v2961_v60 = vsub.f32 %v11446_v7, %v2921_v20  ;;  %v2918_v22 = vpop.xlane.xlu1 %2917 }
 0x62a   : > { %v2960_v25 = vsub.f32 %v11448_v13, %v2918_v22 }
 0x62b   : > { %v2980_v8 = vmul.f32 1.442695, %v2961_v60 }
 0x62c   : > { %v2978_v6 = vmul.f32 1.442695, %v2960_v25  ;;  %v2939_v40 = vpop.xlane.xlu0 %2938 }
 0x62d   : > { %10107 = vpow2.f32 %v2980_v8  ;;  %v2967_v55 = vsub.f32 %v11450_v17, %v2939_v40  ;;  %v2936_v47 = vpop.xlane.xlu1 %2935 }
 0x62e   : > { %v2966_v45 = vsub.f32 %v11454_v10, %v2936_v47  ;;  %10109 = vpow2.f32 %v2978_v6 }
 0x62f   : > { %v2992_v30 = vmul.f32 1.442695, %v2967_v55 }
 0x630   : > { %v2990_v16 = vmul.f32 1.442695, %v2966_v45  ;;  %v2933_v21 = vpop.xlane.xlu0 %2932 }
 0x631   : > { %v2965_v9 = vsub.f32 %v11464_v15, %v2933_v21  ;;  %v2948_v27 = vpop.xlane.xlu1 %2947 }
 0x632   : > { %10111 = vpow2.f32 %v2990_v16  ;;  %v2970_v7 = vsub.f32 %v11460_v32, %v2948_v27 }
 0x633   : > { %10113 = vpow2.f32 %v2992_v30  ;;  %v2988_v13 = vmul.f32 1.442695, %v2965_v9 }
 0x634   : > { %v2998_v20 = vmul.f32 1.442695, %v2970_v7  ;;  %v2930_v60 = vpop.xlane.xlu0 %2929 }
 0x635   : > { %v2964_v22 = vsub.f32 %v11466_v3, %v2930_v60 }
 0x636   : > { %10115 = vpow2.f32 %v2998_v20 }
 0x637   : > { %v11525_v17 = vpop.eup %10107  ;;  %10117 = vpow2.f32 %v2988_v13  ;;  %v2986_v10 = vmul.f32 1.442695, %v2964_v22 }
 0x638   : > { %v2951_v25 = vpop.xlane.xlu0 %2950  ;;  %v3015_v8 = vsel %vm1291_vm3, %v11525_v17, 0.0  ;;  %v11529_v21 = vpop.eup %10109 }
 0x639   : > { %v2971_v15 = vsub.f32 %v11472_v14, %v2951_v25  ;;  %v2942_v27 = vpop.xlane.xlu1 %2941  ;;  %3016 = vadd.xlane.f32.xlu0 %v3015_v8  ;;  %10119 = vpow2.f32 %v2986_v10  ;;  %v3012_v47 = vsel %vm1291_vm3, %v11529_v21, 0.0 }
 0x63a   : > { %v2968_v32 = vsub.f32 %v11476_v57, %v2942_v27 }
 0x63b   : > { %v3000_v6 = vmul.f32 1.442695, %v2971_v15 }
 0x63c   : > { %v11533_v3 = vpop.eup %10111  ;;  %v2994_v40 = vmul.f32 1.442695, %v2968_v32  ;;  %v2945_v55 = vpop.xlane.xlu0 %2944 }
 0x63d   : > { %v11537_v45 = vpop.eup %10113  ;;  %v2969_v30 = vsub.f32 %v11478_v63, %v2945_v55  ;;  %3013 = vadd.xlane.f32.xlu0 %v3012_v47  ;;  %v3030_v14 = vsel %vm1291_vm3, %v11533_v3, 0.0 }
 0x63e   : > { %10121 = vpow2.f32 %v2994_v40  ;;  %3031 = vadd.xlane.f32.xlu1 %v3030_v14  ;;  %v3033_v7 = vsel %vm1291_vm3, %v11537_v45, 0.0 }
 0x63f   : > { %10123 = vpow2.f32 %v3000_v6  ;;  %v2996_v57 = vmul.f32 1.442695, %v2969_v30 }
 0x640   : > { %v11542_v16 = vpop.eup %10115  ;;  %v2957_v9 = vpop.xlane.xlu0 %2956 }
 0x641   : > { %v11546_v13 = vpop.eup %10117  ;;  %v2973_v20 = vsub.f32 %v11486_v35, %v2957_v9  ;;  %v2954_v60 = vpop.xlane.xlu1 %2953  ;;  %3034 = vadd.xlane.f32.xlu0 %v3033_v7  ;;  %v3042_v63 = vsel %vm1291_vm3, %v11542_v16, 0.0  ;;  %10125 = vpow2.f32 %v2996_v57 }
 0x642   : > { %v2972_v22 = vsub.f32 %v11488_v0, %v2954_v60  ;;  %3043 = vadd.xlane.f32.xlu1 %v3042_v63  ;;  %v3027_v8 = vsel %vm1291_vm3, %v11546_v13, 0.0 }
 0x643   : > { %v3004_v10 = vmul.f32 1.442695, %v2973_v20  ;;  %v11554_v15 = vpop.eup %10119 }
 0x644   : > { %v3002_v25 = vmul.f32 1.442695, %v2972_v22  ;;  %v3024_v27 = vsel %vm1291_vm3, %v11554_v15, 0.0  ;;  %v9857_v63 = vpop.permute.xlu0 %9856 }
 0x645   : > { %3028 = vadd.xlane.f32.xlu0 %v3027_v8  ;;  %v11590_v9 = vpop.permute.xlu1 %9861  ;;  %v9859_v8 = vunpack.i.h.bf16 %v9857_v63 }
 0x646   : > { %10127 = vpow2.f32 %v3002_v25 }
 0x647   : > { %10129 = vpow2.f32 %v3004_v10 }
 0x648   : > { %v11556_v35 = vpop.eup %10121 }
 0x649   : > { %v11560_v32 = vpop.eup %10123  ;;  %3025 = vadd.xlane.f32.xlu0 %v3024_v27  ;;  %v3036_v0 = vsel %vm1291_vm3, %v11556_v35, 0.0  ;;  %v9858_v27 = vunpack.i.l.bf16 %v9857_v63 }
 0x64a   : > { %3037 = vadd.xlane.f32.xlu1 %v3036_v0  ;;  %v3045_v6 = vsel %vm1291_vm3, %v11560_v32, 0.0 }
 0x64b   : > { %v11566_v40 = vpop.eup %10125 }
 0x64c   : > { %v3039_v47 = vsel %vm1291_vm3, %v11566_v40, 0.0 }
 0x64d   : > { %3046 = vadd.xlane.f32.xlu0 %v3045_v6 }
 0x650   : > { %v11568_v55 = vpop.eup %10127 }
 0x651   : > { %v11572_v30 = vpop.eup %10129  ;;  %3040 = vadd.xlane.f32.xlu0 %v3039_v47  ;;  %v3048_v14 = vsel %vm1291_vm3, %v11568_v55, 0.0  ;;  %v9377_v47 = vpack.c.bf16 %v9859_v8, %v9858_v27 }
 0x652   : > { %3049 = vadd.xlane.f32.xlu1 %v3048_v14  ;;  %v3051_v57 = vsel %vm1291_vm3, %v11572_v30, 0.0 }
 0x655   : > { %3052 = vadd.xlane.f32.xlu0 %v3051_v57 }
 0x663   : > { %9871 = vrot.lane.b32.xlu1 %v10978_v62, %s10553_s18 }
 0x667   : > { %9881 = vrot.lane.b32.xlu1 %v10916_v33, %s10554_s9 }
 0x66b   : > { %4188 = vrot.lane.b32.xlu1 %v10898_v24, %s10555_s16  ;;  %9866 = vrot.lane.b32.xlu0 %v10968_v58, %s10553_s18  ;;  %s10560_s18 = smov [#allocation13]  }
 0x66f   : > { %4277 = vrot.lane.b32.xlu1 %v10910_v31, %s10555_s16  ;;  %9876 = vrot.lane.b32.xlu0 %v10906_v28, %s10554_s9 }
 0x673   : > { %9891 = vrot.lane.b32.xlu1 %v10936_v43, %s10554_s9  ;;  %4186 = vrot.lane.b32.xlu0 %v10900_v26, %s10555_s16 }
 0x676   : > { %v3011_v7 = vpop.xlane.xlu1 %3010 }
 0x677   : > { %4370 = vrot.lane.b32.xlu1 %v10918_v34, %s10555_s16  ;;  %9886 = vrot.lane.b32.xlu0 %v10926_v38, %s10554_s9  ;;  %10131 = vrcp.f32 %v3011_v7 }
 0x67a   : > { %v3008_v20 = vpop.xlane.xlu1 %3007 }
 0x67b   : > { %10133 = vrcp.f32 %v3008_v20  ;;  %4459 = vrot.lane.b32.xlu1 %v10930_v41, %s10555_s16  ;;  %4279 = vrot.lane.b32.xlu0 %v10908_v29, %s10555_s16 }
 0x67e   : > { %v3023_v60 = vpop.xlane.xlu1 %3022 }
 0x67f   : > { %9901 = vrot.lane.b32.xlu1 %v10958_v53, %s10554_s9  ;;  %4368 = vrot.lane.b32.xlu0 %v10920_v36, %s10555_s16  ;;  %10135 = vrcp.f32 %v3023_v60 }
 0x681   : > { %v10132_v10 = vpop.eup %10131 }
 0x682   : > { %v3020_v22 = vpop.xlane.xlu1 %3019  ;;  %v3071_v6 = vmul.f32 %v10132_v10, %v11502_v19  ;;  %v9864_v10 = vunpack.i.h.bf16 %v11590_v9 }
 0x683   : > { %10137 = vrcp.f32 %v3020_v22  ;;  %4552 = vrot.lane.b32.xlu1 %v10938_v44, %s10555_s16  ;;  %9896 = vrot.lane.b32.xlu0 %v10948_v48, %s10554_s9 }
 0x685   : > { %v10134_v25 = vpop.eup %10133 }
 0x686   : > { %v3070_v0 = vmul.f32 %v10134_v25, %v11506_v42  ;;  %v9863_v25 = vunpack.i.l.bf16 %v11590_v9 }
 0x687   : > { %4641 = vrot.lane.b32.xlu1 %v10954_v51, %s10555_s16  ;;  %4461 = vrot.lane.b32.xlu0 %v10928_v39, %s10555_s16 }
 0x688   : > { %8845 = vmatprep.mubr.msk.f32.mxu0 %vm1291_vm3, %v3070_v0  ;;  %v9381_v9 = vpack.c.bf16 %v9864_v10, %v9863_v25 }
 0x689   : > { %8846 = vmatmul.mubr.msk.f32.vlgmr.msra.gmra.mrb[36].mxu0 %vm1291_vm3, %v3071_v6  ;;  %v10136_v42 = vpop.eup %10135 }
 0x68a   : > { %9372 = vmatpush3.bf16.msra.mxu0 %v11388_v4  ;;  %v3075_v19 = vmul.f32 %v10136_v42, %v11510_v12 }
 0x68b   : > { %9378 = vmatprep.subr.bf16.mxu0 %v9377_v47  ;;  %9911 = vrot.lane.b32.xlu1 %v10978_v62, %s10554_s9 }
 0x68c   : > { %4550 = vrot.lane.b32.xlu0 %v10940_v46, %s10555_s16 }
 0x68d   : > { %v10138_v14 = vpop.eup %10137 }
 0x68e   : > { %v3074_v57 = vmul.f32 %v10138_v14, %v11514_v52 }
 0x68f   : > { %4734 = vrot.lane.b32.xlu1 %v10960_v54, %s10555_s16 }
 0x690   : > { %9906 = vrot.lane.b32.xlu0 %v10968_v58, %s10554_s9  ;;  %8859 = vmatprep.mubr.msk.f32.mxu0 %vm1291_vm3, %v3074_v57  ;;  %s10465_s9 = sshll.u32 %s10560_s18, 4  ;;  %s10466_s9 = int_to_ptr.vmem [resolvable:$false] %s10465_s9 }
 0x691   : > { %8860 = vmatmul.mubr.msk.f32.vlgmr.msra.gmra.mrb[38].mxu0 %vm1291_vm3, %v3075_v19  ;;  %p10468_p13 = scmp.lt.s32.totalorder %s12364_s15, %s10466_s9 }
 0x692   : > { %9380 = vmatpush3.bf16.msra.mxu0 %v9377_v47 }
 0x693   : > { %4825 = vrot.lane.b32.xlu1 %v10970_v59, %s10555_s16 }
 0x694   : > { %4643 = vrot.lane.b32.xlu0 %v10950_v49, %s10555_s16 }
 0x697   : > { %9916 = vrot.lane.b32.xlu1 %v10906_v28, %s10556_s8 }
 0x698   : > { %4732 = vrot.lane.b32.xlu0 %v10962_v56, %s10555_s16 }
 0x69c   : > { %4823 = vrot.lane.b32.xlu0 %v10972_v61, %s10555_s16  ;;  %s10467_s16 = scalar_lea.vmem %s10466_s9, 4096 }
 0x69d   : > { %p10469_p0 = scmp.lt.s32.totalorder %s10467_s16, %s10461_s25 }
 0x69f   : > { %p10470_p2 = por %p10469_p0, %p10468_p13 }
 0x6a1   : > { %p10471_p8 = pnand %p10470_p2, %p10464_p1 }
 0x6c6   : > { %v3017_v4 = vpop.xlane.xlu0 %3016 }
 0x6c7   : > { %10139 = vrcp.f32 %v3017_v4 }
 0x6ca   : > { %v3014_v12 = vpop.xlane.xlu0 %3013 }
 0x6cb   : > { %10141 = vrcp.f32 %v3014_v12  ;;  %v3032_v52 = vpop.xlane.xlu1 %3031 }
 0x6cc   : > { %10143 = vrcp.f32 %v3032_v52 }
 0x6ce   : > { %v3035_v7 = vpop.xlane.xlu0 %3034 }
 0x6cf   : > { %10145 = vrcp.f32 %v3035_v7  ;;  %v3044_v20 = vpop.xlane.xlu1 %3043 }
 0x6d0   : > { %10147 = vrcp.f32 %v3044_v20 }
 0x6d1   : > { %v10140_v63 = vpop.eup %10139 }
 0x6d2   : > { %v3029_v60 = vpop.xlane.xlu0 %3028  ;;  %v3073_v47 = vmul.f32 %v10140_v63, %v11525_v17 }
 0x6d3   : > { %10149 = vrcp.f32 %v3029_v60 }
 0x6d5   : > { %v10142_v22 = vpop.eup %10141 }
 0x6d6   : > { %v10144_v8 = vpop.eup %10143  ;;  %v3026_v27 = vpop.xlane.xlu0 %3025  ;;  %v3072_v0 = vmul.f32 %v10142_v22, %v11529_v21 }
 0x6d7   : > { %10151 = vrcp.f32 %v3026_v27  ;;  %v3038_v6 = vpop.xlane.xlu1 %3037  ;;  %v3078_v42 = vmul.f32 %v10144_v8, %v11533_v3 }
 0x6d8   : > { %10153 = vrcp.f32 %v3038_v6  ;;  %8852 = vmatprep.mubr.msk.f32.mxu1 %vm1291_vm3, %v3072_v0 }
 0x6d9   : > { %v10146_v14 = vpop.eup %10145  ;;  %8853 = vmatmul.mubr.msk.f32.vlgmr.msra.gmra.mrb[28].mxu1 %vm1291_vm3, %v3073_v47  ;;  %8873 = vmatprep.mubr.msk.f32.mxu0 %vm1291_vm3, %v3078_v42 }
 0x6da   : > { %v10148_v57 = vpop.eup %10147  ;;  %9376 = vmatpush3.bf16.msra.mxu1 %v11395_v18  ;;  %v3047_v19 = vpop.xlane.xlu0 %3046  ;;  %v3079_v21 = vmul.f32 %v10146_v14, %v11537_v45  ;;  %v3782_v14 = vld [vmem:[#allocation10 + $0x8] sm:$0xff] }
 0x6db   : > { %9382 = vmatprep.subr.bf16.mxu1 %v9381_v9  ;;  %v3082_v17 = vmul.f32 %v10148_v57, %v11542_v16  ;;  %10155 = vrcp.f32 %v3047_v19 }
 0x6dc   : > { %8874 = vmatmul.mubr.msk.f32.vlgmr.msra.gmra.mrb[40].mxu0 %vm1291_vm3, %v3079_v21 }
 0x6dd   : > { %8887 = vmatprep.mubr.msk.f32.mxu0 %vm1291_vm3, %v3082_v17  ;;  %v10150_v12 = vpop.eup %10149 }
 0x6de   : > { %v3041_v3 = vpop.xlane.xlu0 %3040  ;;  %v3077_v60 = vmul.f32 %v10150_v12, %v11546_v13 }
 0x6df   : > { %10157 = vrcp.f32 %v3041_v3  ;;  %v3050_v4 = vpop.xlane.xlu1 %3049 }
 0x6e0   : > { %10159 = vrcp.f32 %v3050_v4 }
 0x6e1   : > { %v10152_v52 = vpop.eup %10151 }
 0x6e2   : > { %v10154_v7 = vpop.eup %10153  ;;  %v3053_v20 = vpop.xlane.xlu0 %3052  ;;  %v3076_v18 = vmul.f32 %v10152_v52, %v11554_v15 }
 0x6e3   : > { %10161 = vrcp.f32 %v3053_v20  ;;  %v9872_v45 = vpop.permute.xlu1 %9871  ;;  %v3080_v16 = vmul.f32 %v10154_v7, %v11556_v35 }
 0x6e4   : > { %v9874_v63 = vunpack.i.h.bf16 %v9872_v45  ;;  %v9873_v22 = vunpack.i.l.bf16 %v9872_v45  ;;  %8866 = vmatprep.mubr.msk.f32.mxu1 %vm1291_vm3, %v3076_v18 }
 0x6e5   : > { %8867 = vmatmul.mubr.msk.f32.vlgmr.msra.gmra.mrb[30].mxu1 %vm1291_vm3, %v3077_v60  ;;  %v10156_v15 = vpop.eup %10155 }
 0x6e6   : > { %9384 = vmatpush3.bf16.msra.mxu1 %v9381_v9  ;;  %8880 = vmatprep.mubr.msk.f32.mxu1 %vm1291_vm3, %v3080_v16  ;;  %v9867_v10 = vpop.permute.xlu0 %9866  ;;  %v9389_v25 = vpack.c.bf16 %v9874_v63, %v9873_v22  ;;  %v3083_v21 = vmul.f32 %v10156_v15, %v11560_v32 }
 0x6e7   : > { %v9869_v8 = vunpack.i.h.bf16 %v9867_v10  ;;  %v9868_v27 = vunpack.i.l.bf16 %v9867_v10  ;;  %v9882_v3 = vpop.permute.xlu1 %9881 }
 0x6e8   : > { %9390 = vmatprep.subr.bf16.mxu1 %v9389_v25 }
 0x6e9   : > { %v10158_v0 = vpop.eup %10157  ;;  %v9385_v6 = vpack.c.bf16 %v9869_v8, %v9868_v27 }
 0x6ea   : > { %v10160_v13 = vpop.eup %10159  ;;  %v9877_v47 = vpop.permute.xlu0 %9876  ;;  %v3081_v35 = vmul.f32 %v10158_v0, %v11566_v40  ;;  %v2164_v40 = vld [vmem:[#allocation10] sm:$0xff] }
 0x6eb   : > { %9386 = vmatprep.subr.bf16.mxu0 %v9385_v6  ;;  %v3084_v42 = vmul.f32 %v10160_v13, %v11568_v55  ;;  %v9879_v57 = vunpack.i.h.bf16 %v9877_v47  ;;  %v9878_v9 = vunpack.i.l.bf16 %v9877_v47  ;;  %v11672_v4 = vpop.permute.xlu1 %4188 }
 0x6ec   : > { %8881 = vmatmul.mubr.msk.f32.vlgmr.msra.gmra.mrb[32].mxu1 %vm1291_vm3, %v3081_v35  ;;  %9388 = vmatpush3.bf16.msra.mxu0 %v9385_v6 }
 0x6ed   : > { %v10162_v19 = vpop.eup %10161  ;;  %9392 = vmatpush3.bf16.msra.mxu1 %v9389_v25  ;;  %8894 = vmatprep.mubr.msk.f32.mxu1 %vm1291_vm3, %v3084_v42  ;;  %v9393_v55 = vpack.c.bf16 %v9879_v57, %v9878_v9  ;;  %v9884_v42 = vunpack.i.h.bf16 %v9882_v3 }
 0x6ee   : > { %9553 = vmatprep.subr.mxu1 %v3782_v14  ;;  %v3085_v17 = vmul.f32 %v10162_v19, %v11572_v30  ;;  %8897 = vmatprep.subr.mxu0 %v3782_v14 }
 0x6ef   : > { %8888 = vmatmul.mubr.msk.f32.vlgmr.msra.gmra.mrb[42].mxu0 %vm1291_vm3, %v3083_v21  ;;  %v11674_v32 = vpop.permute.xlu1 %4277 }
 0x6f0   : > { %8895 = vmatmul.mubr.msk.f32.vlgmr.msra.gmra.mrb[34].mxu1 %vm1291_vm3, %v3085_v17  ;;  %8898 = vmatpush3.msra.mxu0 %v3782_v14 }
 0x6f1   : > { %9554 = vmatpush3.msra.mxu1 %v3782_v14  ;;  %8923 = vmatprep.subr.mxu0 %v2164_v40  ;;  %v9883_v14 = vunpack.i.l.bf16 %v9882_v3 }
 0x6f2   : > { %9395 = vmatprep.subr.msk.bf16.mxu1 %vm10996_vm2, %v9393_v55 }
 0x6f3   : > { %v11676_v12 = vpop.permute.xlu1 %9891  ;;  %v9399_v19 = vpack.c.bf16 %v9884_v42, %v9883_v14  ;;  %v12458_v14 = vld [vmem:[#allocation27_spill] sm:$0xff] }
 0x6f4   : > { %v9893_v42 = vunpack.i.l.bf16 %v11676_v12 }
 0x6f7   : > { %v11678_v30 = vpop.permute.xlu1 %4370 }
 0x6fb   : > { %v11680_v52 = vpop.permute.xlu1 %4459 }
 0x6ff   : > { %v11682_v7 = vpop.permute.xlu1 %9901 }
 0x703   : > { %v11684_v20 = vpop.permute.xlu1 %4552 }
 0x707   : > { %v11686_v18 = vpop.permute.xlu1 %4641 }
 0x70b   : > { %v11688_v45 = vpop.permute.xlu1 %9911 }
 0x70f   : > { %v11690_v60 = vpop.permute.xlu1 %4734 }
 0x713   : > { %v11692_v16 = vpop.permute.xlu1 %4825 }
 0x717   : > { %v9917_v63 = vpop.permute.xlu1 %9916 }
 0x718   : > { %v9919_v22 = vunpack.i.h.bf16 %v9917_v63  ;;  %v9918_v10 = vunpack.i.l.bf16 %v9917_v63  ;;  %v12451_v63 = vld [vmem:[#allocation22_spill] sm:$0xff] }
 0x71a   : > { %v9441_v27 = vpack.c.bf16 %v9919_v22, %v9918_v10  ;;  %v12453_v22 = vld [vmem:[#allocation26_spill] sm:$0xff] }
 0x75c   : > { %v8847_v25 = vpop.f32.mrb[36].mxu0 }
 0x75d   : > { %v3164_v8 = vpop.f32.mrb[37].mxu0 }
 0x75e   : > { %8899 = vmatprep.mubr.msk.f32.mxu0 %vm584_vm1, %v3164_v8 }
 0x75f   : > { %8900 = vmatmul.mubr.msk.f32.vlgmr.msra.gmra.mrb[44].mxu0 %vm584_vm1, %v8847_v25 }
 0x760   : > { %8924 = vmatpush3.msra.mxu0 %v2164_v40 }
 0x761   : > { %9442 = vmatprep.subr.bf16.mxu0 %v9441_v27 }
 0x764   : > { %v8861_v15 = vpop.f32.mrb[38].mxu0 }
 0x765   : > { %v3338_v0 = vpop.f32.mrb[39].mxu0 }
 0x7ac   : > { %v8854_v6 = vpop.f32.mrb[28].mxu1 }
 0x7ad   : > { %v3251_v13 = vpop.f32.mrb[29].mxu1 }
 0x7ae   : > { %8902 = vmatprep.mubr.msk.f32.mxu0 %vm584_vm1, %v3251_v13 }
 0x7af   : > { %v8875_v47 = vpop.f32.mrb[40].mxu0  ;;  %8903 = vmatmul.mubr.msk.f32.gmra.mrb[46].mxu0 %vm584_vm1, %v8854_v6  ;;  %v12456_v6 = vld [vmem:[#allocation23_spill] sm:$0xff] }
 0x7b0   : > { %v3512_v35 = vpop.f32.mrb[41].mxu0  ;;  %8905 = vmatprep.mubr.msk.f32.mxu0 %vm584_vm1, %v3338_v0 }
 0x7b3   : > { %8906 = vmatmul.mubr.msk.f32.gmra.mrb[48].mxu0 %vm584_vm1, %v8861_v15  ;;  %v12455_v15 = vld [vmem:[#allocation24_spill] sm:$0xff] }
 0x7b4   : > { %8925 = vmatprep.mubr.msk.f32.mxu0 %vm584_vm1, %v11400_v11 }
 0x7b7   : > { %8926 = vmatmul.mubr.msk.f32.vlgmr.msra.gmra.mrb[44].mxu0 %vm584_vm1, %v11398_v1  ;;  %v4187_v1 = vpop.permute.xlu0 %4186 }
 0x7b8   : > { %9444 = vmatpush3.bf16.msra.mxu0 %v9441_v27  ;;  %v8868_v57 = vpop.f32.mrb[30].mxu1  ;;  %8928 = vmatprep.mubr.msk.f32.mxu0 %vm584_vm1, %v11404_v50  ;;  %v12454_v27 = vld [vmem:[#allocation25_spill] sm:$0xff] }
 0x7b9   : > { %v3425_v9 = vpop.f32.mrb[31].mxu1 }
 0x7ba   : > { %8908 = vmatprep.mubr.msk.f32.mxu1 %vm584_vm1, %v3425_v9 }
 0x7bb   : > { %8909 = vmatmul.mubr.msk.f32.vlgmr.msra.gmra.mrb[36].mxu1 %vm584_vm1, %v8868_v57  ;;  %8929 = vmatmul.mubr.msk.f32.gmra.mrb[46].mxu0 %vm584_vm1, %v11402_v23  ;;  %v12449_v23 = vld [vmem:[#allocation21_spill] sm:$0xff] }
 0x7bc   : > { %9398 = vmatpush3.bf16.xpose.msk.msra.mxu1 %vm10996_vm2, %v9393_v55  ;;  %8911 = vmatprep.mubr.msk.f32.mxu1 %vm584_vm1, %v3512_v35  ;;  %v9887_v55 = vpop.permute.xlu0 %9886  ;;  %v9894_v35 = vunpack.i.h.bf16 %v11676_v12 }
 0x7bd   : > { %8931 = vmatprep.mubr.msk.f32.mxu0 %vm584_vm1, %v11408_v37  ;;  %9401 = vmatprep.subr.msk.bf16.mxu1 %vm10996_vm2, %v9399_v19  ;;  %v12450_v37 = vld [vmem:[#allocation19_spill] sm:$0xff]  ;;  %v9889_v25 = vunpack.i.h.bf16 %v9887_v55  ;;  %v9888_v8 = vunpack.i.l.bf16 %v9887_v55 }
 0x7be   : > { %v9411_v57 = vpack.c.bf16 %v9894_v35, %v9893_v42 }
 0x7bf   : > { %v8882_v11 = vpop.f32.mrb[32].mxu1  ;;  %8912 = vmatmul.mubr.msk.f32.gmra.mrb[38].mxu1 %vm584_vm1, %v8875_v47  ;;  %8932 = vmatmul.mubr.msk.f32.gmra.mrb[48].mxu0 %vm584_vm1, %v11406_v5  ;;  %v12452_v5 = vld [vmem:[#allocation20_spill] sm:$0xff]  ;;  %v9405_v0 = vpack.c.bf16 %v9889_v25, %v9888_v8 }
 0x7c0   : > { %v3599_v50 = vpop.f32.mrb[33].mxu1  ;;  %8934 = vmatprep.mubr.msk.f32.mxu0 %vm584_vm1, %v12449_v23  ;;  %v4280_v10 = vpop.permute.xlu0 %4279  ;;  %v12457_v47 = vld [vmem:[#allocation28_spill] sm:$0xff] }
 0x7c1   : > { %8914 = vmatprep.mubr.msk.f32.mxu1 %vm584_vm1, %v3599_v50  ;;  %v9903_v50 = vunpack.i.l.bf16 %v11682_v7 }
 0x7c2   : > { %v8889_v21 = vpop.f32.mrb[42].mxu0 }
 0x7c3   : > { %v3686_v17 = vpop.f32.mrb[43].mxu0  ;;  %v8896_v40 = vpop.f32.mrb[34].mxu1  ;;  %8915 = vmatmul.mubr.msk.f32.gmra.mrb[40].mxu1 %vm584_vm1, %v8882_v11  ;;  %8935 = vmatmul.mubr.msk.f32.gmra.mrb[50].mxu0 %vm584_vm1, %v12450_v37  ;;  %v9904_v11 = vunpack.i.h.bf16 %v11682_v7  ;;  %v9913_v37 = vunpack.i.l.bf16 %v11688_v45 }
 0x7c4   : > { %v3773_v3 = vpop.f32.mrb[35].mxu1  ;;  %8917 = vmatprep.mubr.msk.f32.mxu1 %vm584_vm1, %v3686_v17  ;;  %8937 = vmatprep.mubr.msk.f32.mxu0 %vm584_vm1, %v12451_v63  ;;  %v4369_v13 = vpop.permute.xlu0 %4368 }
 0x7c5   : > { %v9423_v23 = vpack.c.bf16 %v9904_v11, %v9903_v50  ;;  %v4174_v50 = vld [vmem:[#allocation8 + $0x120] sm:$0xff] }
 0x7c7   : > { %8918 = vmatmul.mubr.msk.f32.gmra.mrb[42].mxu1 %vm584_vm1, %v8889_v21  ;;  %8938 = vmatmul.mubr.msk.f32.gmra.mrb[52].mxu0 %vm584_vm1, %v12452_v5 }
 0x7c8   : > { %8920 = vmatprep.mubr.msk.f32.mxu1 %vm584_vm1, %v3773_v3  ;;  %8940 = vmatprep.mubr.msk.f32.mxu0 %vm584_vm1, %v12453_v22 }
 0x7cb   : > { %8921 = vmatmul.mubr.msk.f32.gmra.mrb[44].mxu1 %vm584_vm1, %v8896_v40  ;;  %8941 = vmatmul.mubr.msk.f32.gmra.mrb[54].mxu0 %vm584_vm1, %v12454_v27  ;;  %v9914_v40 = vunpack.i.h.bf16 %v11688_v45 }
 0x7cc   : > { %8943 = vmatprep.mubr.msk.f32.mxu0 %vm584_vm1, %v12455_v15  ;;  %8953 = vmatprep.mubr.msk.f32.mxu1 %vm584_vm1, %v4187_v1  ;;  %v4170_v15 = vld [vmem:[#allocation8 + $0x100] sm:$0xff] }
 0x7cd   : > { %v9435_v55 = vpack.c.bf16 %v9914_v40, %v9913_v37  ;;  %v4177_v40 = vld [vmem:[#allocation8 + $0x138] sm:$0xff]  ;;  %v4176_v37 = vld [vmem:[#allocation8 + $0x130] sm:$0xff] }
 0x7cf   : > { %8944 = vmatmul.mubr.msk.f32.gmra.mrb[56].mxu0 %vm584_vm1, %v12456_v6  ;;  %8954 = vmatmul.mubr.msk.f32.vlgmr.msra.gmra.mrb[46].mxu1 %vm584_vm1, %v11672_v4  ;;  %v9897_v4 = vpop.permute.xlu0 %9896 }
 0x7d0   : > { %9404 = vmatpush3.bf16.xpose.msk.msra.mxu1 %vm10996_vm2, %v9399_v19  ;;  %8946 = vmatprep.mubr.msk.f32.mxu0 %vm584_vm1, %v12457_v47  ;;  %v9898_v9 = vunpack.i.l.bf16 %v9897_v4 }
 0x7d1   : > { %8960 = vmatprep.mubr.msk.f32.mxu1 %vm584_vm1, %v11674_v32  ;;  %9407 = vmatprep.subr.msk.bf16.mxu1 %vm10996_vm2, %v9405_v0  ;;  %v9899_v32 = vunpack.i.h.bf16 %v9897_v4 }
 0x7d3   : > { %8947 = vmatmul.mubr.msk.f32.gmra.mrb[58].mxu0 %vm584_vm1, %v12458_v14  ;;  %v4462_v19 = vpop.permute.xlu0 %4461  ;;  %v9417_v1 = vpack.c.bf16 %v9899_v32, %v9898_v9  ;;  %v4173_v14 = vld [vmem:[#allocation8 + $0x118] sm:$0xff] }
 0x7d7   : > { %8961 = vmatmul.mubr.msk.f32.vlgmr.msra.gmra.mrb[48].mxu1 %vm584_vm1, %v4280_v10  ;;  %v4551_v12 = vpop.permute.xlu0 %4550 }
 0x7d8   : > { %9410 = vmatpush3.bf16.xpose.msk.msra.mxu1 %vm10996_vm2, %v9405_v0  ;;  %8967 = vmatprep.mubr.msk.f32.mxu1 %vm584_vm1, %v4369_v13 }
 0x7d9   : > { %9413 = vmatprep.subr.msk.bf16.mxu1 %vm10996_vm2, %v9411_v57 }
 0x7db   : > { %v9907_v21 = vpop.permute.xlu0 %9906 }
 0x7df   : > { %8968 = vmatmul.mubr.msk.f32.vlgmr.msra.gmra.mrb[50].mxu1 %vm584_vm1, %v11678_v30  ;;  %v9909_v30 = vunpack.i.h.bf16 %v9907_v21  ;;  %v4644_v7 = vpop.permute.xlu0 %4643 }
 0x7e0   : > { %9416 = vmatpush3.bf16.xpose.msk.msra.mxu1 %vm10996_vm2, %v9411_v57  ;;  %8974 = vmatprep.mubr.msk.f32.mxu1 %vm584_vm1, %v11680_v52  ;;  %v9908_v52 = vunpack.i.l.bf16 %v9907_v21  ;;  %v4172_v57 = vld [vmem:[#allocation8 + $0x110] sm:$0xff] }
 0x7e1   : > { %9419 = vmatprep.subr.msk.bf16.mxu1 %vm10996_vm2, %v9417_v1 }
 0x7e2   : > { %v9429_v17 = vpack.c.bf16 %v9909_v30, %v9908_v52 }
 0x7e3   : > { %v4733_v3 = vpop.permute.xlu0 %4732 }
 0x7e7   : > { %8975 = vmatmul.mubr.msk.f32.vlgmr.msra.gmra.mrb[52].mxu1 %vm584_vm1, %v4462_v19 }
 0x7e8   : > { %9422 = vmatpush3.bf16.xpose.msk.msra.mxu1 %vm10996_vm2, %v9417_v1  ;;  %8981 = vmatprep.mubr.msk.f32.mxu1 %vm584_vm1, %v4551_v12  ;;  %v4175_v12 = vld [vmem:[#allocation8 + $0x128] sm:$0xff] }
 0x7e9   : > { %9425 = vmatprep.subr.msk.bf16.mxu1 %vm10996_vm2, %v9423_v23 }
 0x7ef   : > { %8982 = vmatmul.mubr.msk.f32.vlgmr.msra.gmra.mrb[54].mxu1 %vm584_vm1, %v11684_v20  ;;  %v4824_v20 = vpop.permute.xlu0 %4823 }
 0x7f0   : > { %9428 = vmatpush3.bf16.xpose.msk.msra.mxu1 %vm10996_vm2, %v9423_v23  ;;  %8988 = vmatprep.mubr.msk.f32.mxu1 %vm584_vm1, %v11686_v18 }
 0x7f1   : > { %9431 = vmatprep.subr.msk.bf16.mxu1 %vm10996_vm2, %v9429_v17 }
 0x7f7   : > { %8989 = vmatmul.mubr.msk.f32.vlgmr.msra.gmra.mrb[56].mxu1 %vm584_vm1, %v4644_v7 }
 0x7f8   : > { %9434 = vmatpush3.bf16.xpose.msk.msra.mxu1 %vm10996_vm2, %v9429_v17  ;;  %8995 = vmatprep.mubr.msk.f32.mxu1 %vm584_vm1, %v4733_v3 }
 0x7f9   : > { %9437 = vmatprep.subr.msk.bf16.mxu1 %vm10996_vm2, %v9435_v55 }
 0x7ff   : > { %8996 = vmatmul.mubr.msk.f32.vlgmr.msra.gmra.mrb[58].mxu1 %vm584_vm1, %v11690_v60 }
 0x800   : > { %9440 = vmatpush3.bf16.xpose.msk.msra.mxu1 %vm10996_vm2, %v9435_v55  ;;  %9002 = vmatprep.mubr.msk.f32.mxu1 %vm584_vm1, %v4824_v20 }
 0x807   : > { %9003 = vmatmul.mubr.msk.f32.vlgmr.msra.gmra.mrb[60].mxu1 %vm584_vm1, %v11692_v16  ;;  %v4171_v16 = vld [vmem:[#allocation8 + $0x108] sm:$0xff] }
 0x88e   : > { %v11802_v18 = vpop.f32.mrb[36].mxu1 }
 0x88f   : > { %v11804_v45 = vpop.f32.mrb[37].mxu1 }
 0x892   : > { %v11806_v63 = vpop.f32.mrb[38].mxu1 }
 0x893   : > { %v11808_v5 = vpop.f32.mrb[39].mxu1 }
 0x896   : > { %v11810_v22 = vpop.f32.mrb[40].mxu1 }
 0x897   : > { %v11812_v10 = vpop.f32.mrb[41].mxu1 }
 0x89a   : > { %v11814_v60 = vpop.f32.mrb[42].mxu1 }
 0x89b   : > { %v11816_v25 = vpop.f32.mrb[43].mxu1 }
 0x89e   : > { %v11818_v8 = vpop.f32.mrb[44].mxu1 }
 0x89f   : > { %v11820_v27 = vpop.f32.mrb[45].mxu1 }
 0x8a0   : > { %12459 = vst [vmem:[#allocation21_spill] sm:$0xff] %v11820_v27 }
 0x8a2   : > { %v8955_v0 = vpop.f32.mrb[46].mxu1 }
 0x8a3   : > { %v11822_v6 = vadd.f32 %v8955_v0, %v4171_v16  ;;  %v4268_v13 = vpop.f32.mrb[47].mxu1 }
 0x8a4   : > { %v11824_v47 = vadd.f32 %v4268_v13, %v4170_v15  ;;  %v4179_v13 = vld [vmem:[#allocation8 + $0x148] sm:$0xff] }
 0x8a5   : > { %v4917_v35 = vsel %vm1291_vm3, %v11822_v6, -inf }
 0x8a6   : > { %4918 = vmax.xlane.f32.xlu1 %v4917_v35  ;;  %v4914_v42 = vsel %vm1291_vm3, %v11824_v47, -inf  ;;  %v4178_v35 = vld [vmem:[#allocation8 + $0x140] sm:$0xff] }
 0x8a7   : > { %4915 = vmax.xlane.f32.xlu0 %v4914_v42 }
 0x8aa   : > { %v8962_v4 = vpop.f32.mrb[48].mxu1 }
 0x8ab   : > { %v11830_v32 = vadd.f32 %v8962_v4, %v4173_v14  ;;  %v4359_v9 = vpop.f32.mrb[49].mxu1 }
 0x8ac   : > { %v11832_v19 = vadd.f32 %v4359_v9, %v4172_v57 }
 0x8ad   : > { %v4923_v1 = vsel %vm1291_vm3, %v11830_v32, -inf }
 0x8ae   : > { %4924 = vmax.xlane.f32.xlu0 %v4923_v1  ;;  %v4920_v11 = vsel %vm1291_vm3, %v11832_v19, -inf }
 0x8b2   : > { %v8969_v23 = vpop.f32.mrb[50].mxu1  ;;  %4921 = vmax.xlane.f32.xlu0 %v4920_v11  ;;  %v4180_v11 = vld [vmem:[#allocation8 + $0x150] sm:$0xff] }
 0x8b3   : > { %v11838_v21 = vadd.f32 %v8969_v23, %v4175_v12  ;;  %v4450_v30 = vpop.f32.mrb[51].mxu1  ;;  %v4181_v12 = vld [vmem:[#allocation8 + $0x158] sm:$0xff] }
 0x8b4   : > { %v11840_v52 = vadd.f32 %v4450_v30, %v4174_v50 }
 0x8b5   : > { %v4929_v17 = vsel %vm1291_vm3, %v11838_v21, -inf }
 0x8b6   : > { %4930 = vmax.xlane.f32.xlu0 %v4929_v17  ;;  %v4926_v7 = vsel %vm1291_vm3, %v11840_v52, -inf }
 0x8b7   : > { %4927 = vmax.xlane.f32.xlu1 %v4926_v7 }
 0x8ba   : > { %v8976_v55 = vpop.f32.mrb[52].mxu1 }
 0x8bb   : > { %v11846_v3 = vadd.f32 %v8976_v55, %v4177_v40  ;;  %v4541_v20 = vpop.f32.mrb[53].mxu1  ;;  %v4182_v55 = vld [vmem:[#allocation8 + $0x160] sm:$0xff] }
 0x8bc   : > { %v11848_v16 = vadd.f32 %v4541_v20, %v4176_v37  ;;  %v4183_v37 = vld [vmem:[#allocation8 + $0x168] sm:$0xff] }
 0x8bd   : > { %v4935_v15 = vsel %vm1291_vm3, %v11846_v3, -inf }
 0x8be   : > { %4936 = vmax.xlane.f32.xlu0 %v4935_v15  ;;  %v4932_v0 = vsel %vm1291_vm3, %v11848_v16, -inf }
 0x8bf   : > { %4933 = vmax.xlane.f32.xlu1 %v4932_v0 }
 0x8c2   : > { %v8983_v42 = vpop.f32.mrb[54].mxu1 }
 0x8c3   : > { %v11854_v14 = vadd.f32 %v8983_v42, %v4179_v13  ;;  %v4632_v4 = vpop.f32.mrb[55].mxu1 }
 0x8c4   : > { %v11856_v57 = vadd.f32 %v4632_v4, %v4178_v35  ;;  %v4185_v4 = vld [vmem:[#allocation8 + $0x178] sm:$0xff] }
 0x8c5   : > { %v4941_v9 = vsel %vm1291_vm3, %v11854_v14, -inf }
 0x8c6   : > { %4942 = vmax.xlane.f32.xlu0 %v4941_v9  ;;  %v4938_v1 = vsel %vm1291_vm3, %v11856_v57, -inf }
 0x8c7   : > { %4939 = vmax.xlane.f32.xlu1 %v4938_v1 }
 0x8ca   : > { %v8990_v50 = vpop.f32.mrb[56].mxu1 }
 0x8cb   : > { %v11862_v23 = vadd.f32 %v8990_v50, %v4181_v12  ;;  %v4723_v30 = vpop.f32.mrb[57].mxu1  ;;  %v4184_v50 = vld [vmem:[#allocation8 + $0x170] sm:$0xff] }
 0x8cc   : > { %v11864_v17 = vadd.f32 %v4723_v30, %v4180_v11 }
 0x8cd   : > { %v4947_v7 = vsel %vm1291_vm3, %v11862_v23, -inf }
 0x8ce   : > { %4948 = vmax.xlane.f32.xlu0 %v4947_v7  ;;  %v4944_v40 = vsel %vm1291_vm3, %v11864_v17, -inf }
 0x8cf   : > { %4945 = vmax.xlane.f32.xlu1 %v4944_v40 }
 0x8d2   : > { %v8997_v20 = vpop.f32.mrb[58].mxu1 }
 0x8d3   : > { %v11870_v15 = vadd.f32 %v8997_v20, %v4183_v37  ;;  %v4814_v0 = vpop.f32.mrb[59].mxu1 }
 0x8d4   : > { %v11872_v13 = vadd.f32 %v4814_v0, %v4182_v55 }
 0x8d5   : > { %v4953_v35 = vsel %vm1291_vm3, %v11870_v15, -inf }
 0x8d6   : > { %4954 = vmax.xlane.f32.xlu0 %v4953_v35  ;;  %v4950_v42 = vsel %vm1291_vm3, %v11872_v13, -inf }
 0x8d7   : > { %4951 = vmax.xlane.f32.xlu1 %v4950_v42 }
 0x8da   : > { %v9004_v9 = vpop.f32.mrb[60].mxu1 }
 0x8db   : > { %v11878_v1 = vadd.f32 %v9004_v9, %v4185_v4  ;;  %v4905_v12 = vpop.f32.mrb[61].mxu1 }
 0x8dc   : > { %v11886_v30 = vadd.f32 %v4905_v12, %v4184_v50 }
 0x8dd   : > { %v4959_v11 = vsel %vm1291_vm3, %v11878_v1, -inf }
 0x8de   : > { %4960 = vmax.xlane.f32.xlu0 %v4959_v11  ;;  %v4956_v7 = vsel %vm1291_vm3, %v11886_v30, -inf }
 0x8e8   : > { %9926 = vrot.lane.b32.xlu1 %v10926_v38, %s10556_s8 }
 0x8f4   : > { %9921 = vrot.lane.b32.xlu0 %v10916_v33, %s10556_s8 }
 0x90c   : > { %4957 = vmax.xlane.f32.xlu1 %v4956_v7 }
 0x933   : > { %v4919_v40 = vpop.xlane.xlu1 %4918 }
 0x934   : > { %v4963_v37 = vsub.f32 %v11822_v6, %v4919_v40  ;;  %v4916_v55 = vpop.xlane.xlu0 %4915 }
 0x935   : > { %v4962_v20 = vsub.f32 %v11824_v47, %v4916_v55 }
 0x936   : > { %v4980_v0 = vmul.f32 1.442695, %v4963_v37 }
 0x937   : > { %v4978_v35 = vmul.f32 1.442695, %v4962_v20 }
 0x938   : > { %10163 = vpow2.f32 %v4980_v0 }
 0x939   : > { %10165 = vpow2.f32 %v4978_v35 }
 0x93b   : > { %v4925_v42 = vpop.xlane.xlu0 %4924 }
 0x93c   : > { %v4965_v4 = vsub.f32 %v11830_v32, %v4925_v42 }
 0x93e   : > { %v4984_v9 = vmul.f32 1.442695, %v4965_v4 }
 0x93f   : > { %v4922_v12 = vpop.xlane.xlu0 %4921 }
 0x940   : > { %10167 = vpow2.f32 %v4984_v9  ;;  %v4964_v11 = vsub.f32 %v11832_v19, %v4922_v12 }
 0x942   : > { %v11894_v50 = vpop.eup %10163  ;;  %v4982_v7 = vmul.f32 1.442695, %v4964_v11 }
 0x943   : > { %v11896_v27 = vpop.eup %10165  ;;  %v4931_v6 = vpop.xlane.xlu0 %4930  ;;  %v5013_v47 = vsel %vm1291_vm3, %v11894_v50, 0.0 }
 0x944   : > { %10169 = vpow2.f32 %v4982_v7  ;;  %v4967_v40 = vsub.f32 %v11838_v21, %v4931_v6  ;;  %v4928_v37 = vpop.xlane.xlu1 %4927  ;;  %5014 = vadd.xlane.f32.xlu0 %v5013_v47  ;;  %v5010_v32 = vsel %vm1291_vm3, %v11896_v27, 0.0 }
 0x945   : > { %v4966_v55 = vsub.f32 %v11840_v52, %v4928_v37  ;;  %5011 = vadd.xlane.f32.xlu1 %v5010_v32 }
 0x946   : > { %v4988_v19 = vmul.f32 1.442695, %v4967_v40 }
 0x947   : > { %v4986_v20 = vmul.f32 1.442695, %v4966_v55 }
 0x948   : > { %10171 = vpow2.f32 %v4988_v19 }
 0x949   : > { %10173 = vpow2.f32 %v4986_v20 }
 0x94a   : > { %v11904_v0 = vpop.eup %10167 }
 0x94b   : > { %v4937_v35 = vpop.xlane.xlu0 %4936  ;;  %v5019_v42 = vsel %vm1291_vm3, %v11904_v0, 0.0 }
 0x94c   : > { %v4969_v21 = vsub.f32 %v11846_v3, %v4937_v35  ;;  %v4934_v4 = vpop.xlane.xlu1 %4933  ;;  %5020 = vadd.xlane.f32.xlu0 %v5019_v42 }
 0x94d   : > { %v4968_v9 = vsub.f32 %v11848_v16, %v4934_v4 }
 0x94e   : > { %v11910_v12 = vpop.eup %10169  ;;  %v4992_v52 = vmul.f32 1.442695, %v4969_v21 }
 0x94f   : > { %v4990_v11 = vmul.f32 1.442695, %v4968_v9  ;;  %v5016_v7 = vsel %vm1291_vm3, %v11910_v12, 0.0 }
 0x950   : > { %10175 = vpow2.f32 %v4992_v52  ;;  %5017 = vadd.xlane.f32.xlu1 %v5016_v7 }
 0x951   : > { %10177 = vpow2.f32 %v4990_v11 }
 0x952   : > { %v11914_v6 = vpop.eup %10171 }
 0x953   : > { %v11916_v47 = vpop.eup %10173  ;;  %v4943_v40 = vpop.xlane.xlu0 %4942  ;;  %v5025_v3 = vsel %vm1291_vm3, %v11914_v6, 0.0 }
 0x954   : > { %v4971_v16 = vsub.f32 %v11854_v14, %v4943_v40  ;;  %v4940_v37 = vpop.xlane.xlu1 %4939  ;;  %5026 = vadd.xlane.f32.xlu0 %v5025_v3  ;;  %v5022_v32 = vsel %vm1291_vm3, %v11916_v47, 0.0 }
 0x955   : > { %v4970_v55 = vsub.f32 %v11856_v57, %v4940_v37  ;;  %5023 = vadd.xlane.f32.xlu1 %v5022_v32 }
 0x956   : > { %v4996_v19 = vmul.f32 1.442695, %v4971_v16 }
 0x957   : > { %v4994_v20 = vmul.f32 1.442695, %v4970_v55 }
 0x958   : > { %10179 = vpow2.f32 %v4996_v19 }
 0x959   : > { %10181 = vpow2.f32 %v4994_v20 }
 0x95a   : > { %v11924_v35 = vpop.eup %10175 }
 0x95b   : > { %v11926_v42 = vpop.eup %10177  ;;  %v4949_v21 = vpop.xlane.xlu0 %4948  ;;  %v5031_v14 = vsel %vm1291_vm3, %v11924_v35, 0.0 }
 0x95c   : > { %v4973_v4 = vsub.f32 %v11862_v23, %v4949_v21  ;;  %v4946_v9 = vpop.xlane.xlu1 %4945  ;;  %5032 = vadd.xlane.f32.xlu0 %v5031_v14  ;;  %v5028_v57 = vsel %vm1291_vm3, %v11926_v42, 0.0 }
 0x95d   : > { %v4972_v52 = vsub.f32 %v11864_v17, %v4946_v9  ;;  %5029 = vadd.xlane.f32.xlu1 %v5028_v57 }
 0x95e   : > { %v5000_v11 = vmul.f32 1.442695, %v4973_v4 }
 0x95f   : > { %v4998_v7 = vmul.f32 1.442695, %v4972_v52 }
 0x960   : > { %10183 = vpow2.f32 %v5000_v11 }
 0x961   : > { %10185 = vpow2.f32 %v4998_v7 }
 0x962   : > { %v11934_v40 = vpop.eup %10179 }
 0x963   : > { %v11936_v3 = vpop.eup %10181  ;;  %v4955_v16 = vpop.xlane.xlu0 %4954  ;;  %v5037_v23 = vsel %vm1291_vm3, %v11934_v40, 0.0 }
 0x964   : > { %v4975_v37 = vsub.f32 %v11870_v15, %v4955_v16  ;;  %v4952_v32 = vpop.xlane.xlu1 %4951  ;;  %5038 = vadd.xlane.f32.xlu0 %v5037_v23  ;;  %v5034_v17 = vsel %vm1291_vm3, %v11936_v3, 0.0 }
 0x965   : > { %v4974_v55 = vsub.f32 %v11872_v13, %v4952_v32  ;;  %5035 = vadd.xlane.f32.xlu1 %v5034_v17 }
 0x966   : > { %v5004_v19 = vmul.f32 1.442695, %v4975_v37 }
 0x967   : > { %v5002_v20 = vmul.f32 1.442695, %v4974_v55 }
 0x968   : > { %10187 = vpow2.f32 %v5004_v19  ;;  %v9927_v21 = vpop.permute.xlu1 %9926 }
 0x969   : > { %v9929_v14 = vunpack.i.h.bf16 %v9927_v21  ;;  %v9928_v4 = vunpack.i.l.bf16 %v9927_v21  ;;  %10189 = vpow2.f32 %v5002_v20 }
 0x96a   : > { %v11944_v9 = vpop.eup %10183 }
 0x96b   : > { %v11946_v57 = vpop.eup %10185  ;;  %v11948_v15 = vpack.c.bf16 %v9929_v14, %v9928_v4  ;;  %v4961_v52 = vpop.xlane.xlu0 %4960  ;;  %v5043_v11 = vsel %vm1291_vm3, %v11944_v9, 0.0 }
 0x96c   : > { %v4977_v13 = vsub.f32 %v11878_v1, %v4961_v52  ;;  %5044 = vadd.xlane.f32.xlu0 %v5043_v11  ;;  %v5040_v7 = vsel %vm1291_vm3, %v11946_v57, 0.0 }
 0x96d   : > { %9450 = vmatprep.subr.bf16.mxu0 %v11948_v15  ;;  %5041 = vadd.xlane.f32.xlu1 %v5040_v7 }
 0x96e   : > { %v5008_v16 = vmul.f32 1.442695, %v4977_v13 }
 0x96f   : > { %v9922_v23 = vpop.permute.xlu0 %9921 }
 0x970   : > { %10191 = vpow2.f32 %v5008_v16  ;;  %v9924_v37 = vunpack.i.h.bf16 %v9922_v23  ;;  %v9923_v32 = vunpack.i.l.bf16 %v9922_v23 }
 0x972   : > { %v11956_v17 = vpop.eup %10187  ;;  %v9445_v55 = vpack.c.bf16 %v9924_v37, %v9923_v32 }
 0x973   : > { %v5049_v19 = vsel %vm1291_vm3, %v11956_v17, 0.0  ;;  %v11960_v20 = vpop.eup %10189 }
 0x974   : > { %5050 = vadd.xlane.f32.xlu0 %v5049_v19  ;;  %9446 = vmatprep.subr.bf16.mxu1 %v9445_v55  ;;  %v5046_v1 = vsel %vm1291_vm3, %v11960_v20, 0.0 }
 0x975   : > { %9448 = vmatpush3.bf16.msra.mxu1 %v9445_v55 }
 0x978   : > { %5047 = vadd.xlane.f32.xlu0 %v5046_v1 }
 0x97a   : > { %v11964_v21 = vpop.eup %10191 }
 0x97b   : > { %v5055_v14 = vsel %vm1291_vm3, %v11964_v21, 0.0 }
 0x97c   : > { %5056 = vadd.xlane.f32.xlu0 %v5055_v14 }
 0x97e   : > { %9936 = vrot.lane.b32.xlu1 %v10948_v48, %s10556_s8 }
 0x982   : > { %9941 = vrot.lane.b32.xlu1 %v10958_v53, %s10556_s8 }
 0x986   : > { %9946 = vrot.lane.b32.xlu1 %v10968_v58, %s10556_s8 }
 0x992   : > { %9931 = vrot.lane.b32.xlu0 %v10936_v43, %s10556_s8 }
 0x996   : > { %9956 = vrot.lane.b32.xlu0 %v10906_v28, %s10557_s11 }
 0x999   : > { %v4958_v4 = vpop.xlane.xlu1 %4957 }
 0x99a   : > { %v4976_v52 = vsub.f32 %v11886_v30, %v4958_v4  ;;  %6013 = vrot.lane.b32.xlu0 %v10900_v26, %s10558_s12 }
 0x99c   : > { %v5006_v11 = vmul.f32 1.442695, %v4976_v52 }
 0x99e   : > { %10193 = vpow2.f32 %v5006_v11  ;;  %9966 = vrot.lane.b32.xlu0 %v10926_v38, %s10557_s11 }
 0x9a2   : > { %6106 = vrot.lane.b32.xlu0 %v10908_v29, %s10558_s12 }
 0x9a6   : > { %6195 = vrot.lane.b32.xlu0 %v10920_v36, %s10558_s12 }
 0x9a8   : > { %v11987_v13 = vpop.eup %10193 }
 0x9a9   : > { %v5052_v30 = vsel %vm1291_vm3, %v11987_v13, 0.0 }
 0x9aa   : > { %5053 = vadd.xlane.f32.xlu1 %v5052_v30  ;;  %9976 = vrot.lane.b32.xlu0 %v10948_v48, %s10557_s11 }
 0x9ae   : > { %6286 = vrot.lane.b32.xlu0 %v10930_v41, %s10558_s12 }
 0x9b2   : > { %9986 = vrot.lane.b32.xlu0 %v10968_v58, %s10557_s11 }
 0x9b6   : > { %6379 = vrot.lane.b32.xlu0 %v10938_v44, %s10558_s12 }
 0x9ba   : > { %6468 = vrot.lane.b32.xlu0 %v10954_v51, %s10558_s12 }
 0x9bb   : > { %9951 = vrot.lane.b32.xlu1 %v10978_v62, %s10556_s8 }
 0x9be   : > { %6559 = vrot.lane.b32.xlu0 %v10962_v56, %s10558_s12 }
 0x9bf   : > { %9961 = vrot.lane.b32.xlu1 %v10916_v33, %s10557_s11 }
 0x9c2   : > { %6650 = vrot.lane.b32.xlu0 %v10972_v61, %s10558_s12 }
 0x9c3   : > { %6015 = vrot.lane.b32.xlu1 %v10898_v24, %s10558_s12 }
 0x9c7   : > { %6104 = vrot.lane.b32.xlu1 %v10910_v31, %s10558_s12 }
 0x9cb   : > { %9971 = vrot.lane.b32.xlu1 %v10936_v43, %s10557_s11 }
 0x9cf   : > { %6197 = vrot.lane.b32.xlu1 %v10918_v34, %s10558_s12 }
 0x9d1   : > { %v5015_v26 = vpop.xlane.xlu0 %5014 }
 0x9d2   : > { %10195 = vrcp.f32 %v5015_v26  ;;  %v5012_v29 = vpop.xlane.xlu1 %5011 }
 0x9d3   : > { %10197 = vrcp.f32 %v5012_v29  ;;  %9981 = vrot.lane.b32.xlu1 %v10958_v53, %s10557_s11 }
 0x9d7   : > { %6288 = vrot.lane.b32.xlu1 %v10928_v39, %s10558_s12 }
 0x9d9   : > { %v5021_v24 = vpop.xlane.xlu0 %5020 }
 0x9da   : > { %10199 = vrcp.f32 %v5021_v24 }
 0x9db   : > { %6377 = vrot.lane.b32.xlu1 %v10940_v46, %s10558_s12 }
 0x9dc   : > { %v10196_v31 = vpop.eup %10195 }
 0x9dd   : > { %v10198_v36 = vpop.eup %10197  ;;  %v5018_v41 = vpop.xlane.xlu1 %5017  ;;  %v5075_v44 = vmul.f32 %v10196_v31, %v11894_v50 }
 0x9de   : > { %10201 = vrcp.f32 %v5018_v41  ;;  %v5074_v34 = vmul.f32 %v10198_v36, %v11896_v27  ;;  %v5786_v36 = vld [vmem:[#allocation10 + $0x10] sm:$0xff] }
 0x9df   : > { %9991 = vrot.lane.b32.xlu1 %v10978_v62, %s10557_s11 }
 0x9e0   : > { %9009 = vmatprep.mubr.msk.f32.mxu0 %vm1291_vm3, %v5074_v34 }
 0x9e1   : > { %v5027_v51 = vpop.xlane.xlu0 %5026  ;;  %9010 = vmatmul.mubr.msk.f32.vlgmr.msra.gmra.mrb[60].mxu0 %vm1291_vm3, %v5075_v44 }
 0x9e2   : > { %10203 = vrcp.f32 %v5027_v51  ;;  %v5024_v39 = vpop.xlane.xlu1 %5023  ;;  %9452 = vmatpush3.bf16.msra.mxu0 %v11948_v15 }
 0x9e3   : > { %10205 = vrcp.f32 %v5024_v39  ;;  %6470 = vrot.lane.b32.xlu1 %v10950_v49, %s10558_s12 }
 0x9e4   : > { %v10200_v46 = vpop.eup %10199 }
 0x9e5   : > { %v5077_v27 = vmul.f32 %v10200_v46, %v11904_v0 }
 0x9e7   : > { %6561 = vrot.lane.b32.xlu1 %v10960_v54, %s10558_s12 }
 0x9e8   : > { %v10202_v56 = vpop.eup %10201 }
 0x9e9   : > { %v5076_v61 = vmul.f32 %v10202_v56, %v11910_v12  ;;  %v5033_v12 = vpop.xlane.xlu0 %5032 }
 0x9ea   : > { %v5030_v50 = vpop.xlane.xlu1 %5029 }
 0x9eb   : > { %10207 = vrcp.f32 %v5030_v50  ;;  %6652 = vrot.lane.b32.xlu1 %v10970_v59, %s10558_s12  ;;  %9016 = vmatprep.mubr.msk.f32.mxu1 %vm1291_vm3, %v5076_v61 }
 0x9ec   : > { %v10204_v15 = vpop.eup %10203  ;;  %9017 = vmatmul.mubr.msk.f32.vlgmr.msra.gmra.mrb[62].mxu1 %vm1291_vm3, %v5077_v27 }
 0x9ed   : > { %v10206_v49 = vpop.eup %10205  ;;  %v5079_v54 = vmul.f32 %v10204_v15, %v11914_v6 }
 0x9ee   : > { %v5078_v7 = vmul.f32 %v10206_v49, %v11916_v47 }
 0x9f0   : > { %9023 = vmatprep.mubr.msk.f32.mxu0 %vm1291_vm3, %v5078_v7 }
 0x9f1   : > { %9024 = vmatmul.mubr.msk.f32.vlgmr.msra.gmra.mrb[62].mxu0 %vm1291_vm3, %v5079_v54  ;;  %v5039_v23 = vpop.xlane.xlu0 %5038 }
 0x9f2   : > { %v5036_v0 = vpop.xlane.xlu1 %5035 }
 0x9f3   : > { %10209 = vrcp.f32 %v5036_v0 }
 0x9f4   : > { %10211 = vrcp.f32 %v5039_v23 }
 0x9f5   : > { %v10208_v16 = vpop.eup %10207 }
 0x9f6   : > { %v5080_v59 = vmul.f32 %v10208_v16, %v11926_v42 }
 0x9f8   : > { %9030 = vmatprep.mubr.msk.f32.mxu1 %vm1291_vm3, %v5080_v59 }
 0x9f9   : > { %v5045_v55 = vpop.xlane.xlu0 %5044 }
 0x9fa   : > { %v5042_v37 = vpop.xlane.xlu1 %5041 }
 0x9fd   : > { %v10210_v32 = vpop.eup %10209 }
 0x9fe   : > { %v9937_v47 = vpop.permute.xlu1 %9936  ;;  %v5082_v6 = vmul.f32 %v10210_v32, %v11936_v3  ;;  %v10212_v52 = vpop.eup %10211 }
 0x9ff   : > { %v9939_v19 = vunpack.i.h.bf16 %v9937_v47  ;;  %v9938_v1 = vunpack.i.l.bf16 %v9937_v47  ;;  %v5083_v42 = vmul.f32 %v10212_v52, %v11934_v40 }
 0xa00   : > { %9037 = vmatprep.mubr.msk.f32.mxu0 %vm1291_vm3, %v5082_v6 }
 0xa01   : > { %v9457_v14 = vpack.c.bf16 %v9939_v19, %v9938_v1  ;;  %v5051_v4 = vpop.xlane.xlu0 %5050 }
 0xa02   : > { %v9942_v11 = vpop.permute.xlu1 %9941  ;;  %10213 = vrcp.f32 %v5051_v4 }
 0xa03   : > { %9458 = vmatprep.subr.bf16.mxu0 %v9457_v14  ;;  %v9944_v34 = vunpack.i.h.bf16 %v9942_v11  ;;  %v9943_v40 = vunpack.i.l.bf16 %v9942_v11 }
 0xa04   : > { %9460 = vmatpush3.bf16.msra.mxu0 %v9457_v14 }
 0xa05   : > { %v5048_v30 = vpop.xlane.xlu0 %5047  ;;  %v9461_v7 = vpack.c.bf16 %v9944_v34, %v9943_v40 }
 0xa06   : > { %10215 = vrcp.f32 %v5048_v30  ;;  %v9947_v26 = vpop.permute.xlu1 %9946 }
 0xa07   : > { %10217 = vrcp.f32 %v5033_v12  ;;  %v9949_v29 = vunpack.i.h.bf16 %v9947_v26  ;;  %v9948_v24 = vunpack.i.l.bf16 %v9947_v26  ;;  %9038 = vmatmul.mubr.msk.f32.vlgmr.msra.gmra.mrb[64].mxu0 %vm1291_vm3, %v5083_v42 }
 0xa08   : > { %10219 = vrcp.f32 %v5042_v37 }
 0xa09   : > { %v9465_v3 = vpack.c.bf16 %v9949_v29, %v9948_v24  ;;  %v5057_v31 = vpop.xlane.xlu0 %5056  ;;  %10221 = vrcp.f32 %v5045_v55 }
 0xa0a   : > { %10223 = vrcp.f32 %v5057_v31 }
 0xa0b   : > { %9466 = vmatprep.subr.bf16.mxu0 %v9465_v3 }
 0xa0c   : > { %9468 = vmatpush3.bf16.msra.mxu0 %v9465_v3  ;;  %v10214_v39 = vpop.eup %10213 }
 0xa0d   : > { %v9932_v41 = vpop.permute.xlu0 %9931  ;;  %9061 = vmatprep.subr.mxu0 %v5786_v36  ;;  %v5087_v49 = vmul.f32 %v10214_v39, %v11956_v17 }
 0xa0e   : > { %v9934_v44 = vunpack.i.h.bf16 %v9932_v41  ;;  %v9933_v51 = vunpack.i.l.bf16 %v9932_v41 }
 0xa10   : > { %v10216_v46 = vpop.eup %10215  ;;  %v9453_v56 = vpack.c.bf16 %v9934_v44, %v9933_v51 }
 0xa11   : > { %v10218_v61 = vpop.eup %10217  ;;  %v9957_v27 = vpop.permute.xlu0 %9956  ;;  %v5086_v50 = vmul.f32 %v10216_v46, %v11960_v20 }
 0xa12   : > { %v10220_v15 = vpop.eup %10219  ;;  %9454 = vmatprep.subr.bf16.mxu1 %v9453_v56  ;;  %v5081_v54 = vmul.f32 %v10218_v61, %v11924_v35  ;;  %v9959_v6 = vunpack.i.h.bf16 %v9957_v27 }
 0xa13   : > { %9456 = vmatpush3.bf16.msra.mxu1 %v9453_v56  ;;  %9051 = vmatprep.mubr.msk.f32.mxu0 %vm1291_vm3, %v5086_v50  ;;  %v10222_v12 = vpop.eup %10221  ;;  %v5084_v16 = vmul.f32 %v10220_v15, %v11946_v57 }
 0xa14   : > { %9462 = vmatprep.subr.bf16.mxu1 %v9461_v7  ;;  %9052 = vmatmul.mubr.msk.f32.vlgmr.msra.gmra.mrb[66].mxu0 %vm1291_vm3, %v5087_v49  ;;  %v5085_v17 = vmul.f32 %v10222_v12, %v11944_v9  ;;  %v9958_v9 = vunpack.i.l.bf16 %v9957_v27  ;;  %v10224_v11 = vpop.eup %10223 }
 0xa15   : > { %v6014_v0 = vpop.permute.xlu0 %6013  ;;  %9062 = vmatpush3.msra.mxu0 %v5786_v36  ;;  %v5089_v29 = vmul.f32 %v10224_v11, %v11964_v21 }
 0xa16   : > { %9031 = vmatmul.mubr.msk.f32.vlgmr.msra.gmra.mrb[64].mxu1 %vm1291_vm3, %v5081_v54  ;;  %v9473_v52 = vpack.c.bf16 %v9959_v6, %v9958_v9 }
 0xa17   : > { %9464 = vmatpush3.bf16.msra.mxu1 %v9461_v7  ;;  %9044 = vmatprep.mubr.msk.f32.mxu1 %vm1291_vm3, %v5084_v16 }
 0xa19   : > { %v9967_v20 = vpop.permute.xlu0 %9966 }
 0xa1a   : > { %9045 = vmatmul.mubr.msk.f32.vlgmr.msra.gmra.mrb[66].mxu1 %vm1291_vm3, %v5085_v17  ;;  %v9968_v34 = vunpack.i.l.bf16 %v9967_v20 }
 0xa1d   : > { %v6107_v23 = vpop.permute.xlu0 %6106 }
 0xa21   : > { %v6196_v35 = vpop.permute.xlu0 %6195 }
 0xa25   : > { %v9977_v59 = vpop.permute.xlu0 %9976 }
 0xa26   : > { %v9979_v37 = vunpack.i.h.bf16 %v9977_v59  ;;  %v9978_v32 = vunpack.i.l.bf16 %v9977_v59 }
 0xa28   : > { %v12060_v55 = vpack.c.bf16 %v9979_v37, %v9978_v32 }
 0xa29   : > { %v6287_v44 = vpop.permute.xlu0 %6286 }
 0xa2a   : > { %9499 = vmatprep.subr.msk.bf16.mxu0 %vm10996_vm2, %v12060_v55 }
 0xa2d   : > { %v9987_v61 = vpop.permute.xlu0 %9986 }
 0xa31   : > { %v6380_v7 = vpop.permute.xlu0 %6379 }
 0xa37   : > { %v5054_v57 = vpop.xlane.xlu1 %5053 }
 0xa38   : > { %10225 = vrcp.f32 %v5054_v57  ;;  %v9989_v57 = vunpack.i.h.bf16 %v9987_v61 }
 0xa3b   : > { %v9952_v47 = vpop.permute.xlu1 %9951 }
 0xa3c   : > { %v9954_v19 = vunpack.i.h.bf16 %v9952_v47  ;;  %v9953_v1 = vunpack.i.l.bf16 %v9952_v47  ;;  %v9988_v47 = vunpack.i.l.bf16 %v9987_v61 }
 0xa3e   : > { %v9469_v14 = vpack.c.bf16 %v9954_v19, %v9953_v1  ;;  %v9509_v19 = vpack.c.bf16 %v9989_v57, %v9988_v47 }
 0xa3f   : > { %v9962_v4 = vpop.permute.xlu1 %9961 }
 0xa40   : > { %9470 = vmatprep.subr.bf16.mxu1 %v9469_v14  ;;  %v9964_v24 = vunpack.i.h.bf16 %v9962_v4  ;;  %v9963_v3 = vunpack.i.l.bf16 %v9962_v4 }
 0xa41   : > { %9472 = vmatpush3.bf16.msra.mxu1 %v9469_v14 }
 0xa42   : > { %v10226_v42 = vpop.eup %10225  ;;  %9475 = vmatprep.subr.msk.bf16.mxu1 %vm10996_vm2, %v9473_v52  ;;  %v9479_v36 = vpack.c.bf16 %v9964_v24, %v9963_v3 }
 0xa43   : > { %v6016_v30 = vpop.permute.xlu1 %6015  ;;  %v5088_v26 = vmul.f32 %v10226_v42, %v11987_v13  ;;  %v9969_v13 = vunpack.i.h.bf16 %v9967_v20 }
 0xa45   : > { %9058 = vmatprep.mubr.msk.f32.mxu1 %vm1291_vm3, %v5088_v26  ;;  %v9485_v40 = vpack.c.bf16 %v9969_v13, %v9968_v34  ;;  %v5997_v13 = vld [vmem:[#allocation8 + $0x180] sm:$0xff] }
 0xa46   : > { %9059 = vmatmul.mubr.msk.f32.vlgmr.msra.gmra.mrb[68].mxu1 %vm1291_vm3, %v5089_v29 }
 0xa47   : > { %v6105_v31 = vpop.permute.xlu1 %6104  ;;  %9091 = vmatprep.mubr.msk.f32.mxu1 %vm584_vm1, %v6014_v0  ;;  %v6469_v0 = vpop.permute.xlu0 %6468 }
 0xa4a   : > { %9478 = vmatpush3.bf16.xpose.msk.msra.mxu1 %vm10996_vm2, %v9473_v52 }
 0xa4b   : > { %v9972_v41 = vpop.permute.xlu1 %9971  ;;  %9481 = vmatprep.subr.msk.bf16.mxu1 %vm10996_vm2, %v9479_v36 }
 0xa4c   : > { %v9974_v39 = vunpack.i.h.bf16 %v9972_v41  ;;  %v9973_v46 = vunpack.i.l.bf16 %v9972_v41  ;;  %v5998_v41 = vld [vmem:[#allocation8 + $0x188] sm:$0xff] }
 0xa4e   : > { %v9491_v27 = vpack.c.bf16 %v9974_v39, %v9973_v46  ;;  %v6000_v46 = vld [vmem:[#allocation8 + $0x198] sm:$0xff] }
 0xa4f   : > { %v6198_v21 = vpop.permute.xlu1 %6197 }
 0xa51   : > { %9092 = vmatmul.mubr.msk.f32.vlgmr.msra.gmra.mrb[70].mxu1 %vm584_vm1, %v6016_v30 }
 0xa52   : > { %9484 = vmatpush3.bf16.xpose.msk.msra.mxu1 %vm10996_vm2, %v9479_v36  ;;  %9098 = vmatprep.mubr.msk.f32.mxu1 %vm584_vm1, %v6105_v31 }
 0xa53   : > { %v9982_v51 = vpop.permute.xlu1 %9981  ;;  %9487 = vmatprep.subr.msk.bf16.mxu1 %vm10996_vm2, %v9485_v40 }
 0xa54   : > { %v9984_v15 = vunpack.i.h.bf16 %v9982_v51  ;;  %v9983_v49 = vunpack.i.l.bf16 %v9982_v51 }
 0xa56   : > { %v9503_v54 = vpack.c.bf16 %v9984_v15, %v9983_v49  ;;  %v6002_v49 = vld [vmem:[#allocation8 + $0x1a8] sm:$0xff] }
 0xa57   : > { %v6289_v56 = vpop.permute.xlu1 %6288 }
 0xa59   : > { %9099 = vmatmul.mubr.msk.f32.vlgmr.msra.gmra.mrb[72].mxu1 %vm584_vm1, %v6107_v23  ;;  %v6560_v23 = vpop.permute.xlu0 %6559 }
 0xa5a   : > { %9490 = vmatpush3.bf16.xpose.msk.msra.mxu1 %vm10996_vm2, %v9485_v40  ;;  %9105 = vmatprep.mubr.msk.f32.mxu1 %vm584_vm1, %v6196_v35 }
 0xa5b   : > { %9493 = vmatprep.subr.msk.bf16.mxu1 %vm10996_vm2, %v9491_v27  ;;  %v12088_v50 = vpop.permute.xlu1 %6377 }
 0xa5d   : > { %v6651_v59 = vpop.permute.xlu0 %6650 }
 0xa5f   : > { %v9992_v12 = vpop.permute.xlu1 %9991 }
 0xa60   : > { %v9994_v16 = vunpack.i.h.bf16 %v9992_v12  ;;  %v9993_v17 = vunpack.i.l.bf16 %v9992_v12 }
 0xa61   : > { %9106 = vmatmul.mubr.msk.f32.vlgmr.msra.gmra.mrb[74].mxu1 %vm584_vm1, %v6198_v21 }
 0xa62   : > { %9496 = vmatpush3.bf16.xpose.msk.msra.mxu1 %vm10996_vm2, %v9491_v27  ;;  %9112 = vmatprep.mubr.msk.f32.mxu1 %vm584_vm1, %v6287_v44  ;;  %v9515_v20 = vpack.c.bf16 %v9994_v16, %v9993_v17 }
 0xa63   : > { %9505 = vmatprep.subr.msk.bf16.mxu1 %vm10996_vm2, %v9503_v54  ;;  %v6471_v35 = vpop.permute.xlu1 %6470 }
 0xa67   : > { %v6562_v37 = vpop.permute.xlu1 %6561 }
 0xa69   : > { %9113 = vmatmul.mubr.msk.f32.vlgmr.msra.gmra.mrb[76].mxu1 %vm584_vm1, %v6289_v56 }
 0xa6a   : > { %9508 = vmatpush3.bf16.xpose.msk.msra.mxu1 %vm10996_vm2, %v9503_v54  ;;  %9126 = vmatprep.mubr.msk.f32.mxu1 %vm584_vm1, %v6469_v0  ;;  %v6001_v54 = vld [vmem:[#allocation8 + $0x1a0] sm:$0xff] }
 0xa6b   : > { %9517 = vmatprep.subr.msk.bf16.mxu1 %vm10996_vm2, %v9515_v20  ;;  %v6653_v32 = vpop.permute.xlu1 %6652 }
 0xa71   : > { %9127 = vmatmul.mubr.msk.f32.vlgmr.msra.gmra.mrb[78].mxu1 %vm584_vm1, %v6471_v35  ;;  %v6004_v35 = vld [vmem:[#allocation8 + $0x1b8] sm:$0xff] }
 0xa72   : > { %9520 = vmatpush3.bf16.xpose.msk.msra.mxu1 %vm10996_vm2, %v9515_v20  ;;  %9140 = vmatprep.mubr.msk.f32.mxu1 %vm584_vm1, %v6651_v59  ;;  %v6003_v59 = vld [vmem:[#allocation8 + $0x1b0] sm:$0xff] }
 0xa79   : > { %9141 = vmatmul.mubr.msk.f32.vlgmr.msra.gmra.mrb[80].mxu1 %vm584_vm1, %v6653_v32 }
 0xab4   : > { %v9011_v6 = vpop.f32.mrb[60].mxu0 }
 0xab5   : > { %v5168_v9 = vpop.f32.mrb[61].mxu0 }
 0xab6   : > { %9063 = vmatprep.mubr.msk.f32.mxu0 %vm584_vm1, %v5168_v9 }
 0xab7   : > { %9064 = vmatmul.mubr.msk.f32.vlgmr.msra.gmra.mrb[44].mxu0 %vm584_vm1, %v9011_v6 }
 0xab8   : > { %9502 = vmatpush3.bf16.xpose.msk.msra.mxu0 %vm10996_vm2, %v12060_v55 }
 0xab9   : > { %9511 = vmatprep.subr.msk.bf16.mxu0 %vm10996_vm2, %v9509_v19 }
 0xabf   : > { %v9018_v1 = vpop.f32.mrb[62].mxu1 }
 0xac0   : > { %v5255_v14 = vpop.f32.mrb[63].mxu1 }
 0xac1   : > { %9066 = vmatprep.mubr.msk.f32.mxu0 %vm584_vm1, %v5255_v14 }
 0xac2   : > { %9067 = vmatmul.mubr.msk.f32.gmra.mrb[46].mxu0 %vm584_vm1, %v9018_v1  ;;  %v6007_v1 = vld [vmem:[#allocation8 + $0x1d0] sm:$0xff] }
 0xac4   : > { %v9025_v4 = vpop.f32.mrb[62].mxu0 }
 0xac5   : > { %v5342_v52 = vpop.f32.mrb[63].mxu0 }
 0xac6   : > { %9069 = vmatprep.mubr.msk.f32.mxu0 %vm584_vm1, %v5342_v52 }
 0xac7   : > { %9070 = vmatmul.mubr.msk.f32.gmra.mrb[48].mxu0 %vm584_vm1, %v9025_v4 }
 0xada   : > { %v9039_v11 = vpop.f32.mrb[64].mxu0 }
 0xadb   : > { %v5516_v42 = vpop.f32.mrb[65].mxu0 }
 0xae7   : > { %v9053_v30 = vpop.f32.mrb[66].mxu0 }
 0xae8   : > { %v5690_v26 = vpop.f32.mrb[67].mxu0 }
 0xae9   : > { %v9032_v55 = vpop.f32.mrb[64].mxu1 }
 0xaea   : > { %v5429_v29 = vpop.f32.mrb[65].mxu1 }
 0xaeb   : > { %9072 = vmatprep.mubr.msk.f32.mxu0 %vm584_vm1, %v5429_v29 }
 0xaec   : > { %9073 = vmatmul.mubr.msk.f32.gmra.mrb[50].mxu0 %vm584_vm1, %v9032_v55  ;;  %v6011_v55 = vld [vmem:[#allocation8 + $0x1f0] sm:$0xff] }
 0xaed   : > { %v9046_v24 = vpop.f32.mrb[66].mxu1  ;;  %9075 = vmatprep.mubr.msk.f32.mxu0 %vm584_vm1, %v5516_v42 }
 0xaee   : > { %v5603_v3 = vpop.f32.mrb[67].mxu1 }
 0xaf0   : > { %9076 = vmatmul.mubr.msk.f32.gmra.mrb[52].mxu0 %vm584_vm1, %v9039_v11 }
 0xaf1   : > { %9078 = vmatprep.mubr.msk.f32.mxu0 %vm584_vm1, %v5603_v3 }
 0xaf4   : > { %9079 = vmatmul.mubr.msk.f32.gmra.mrb[54].mxu0 %vm584_vm1, %v9046_v24 }
 0xaf5   : > { %9081 = vmatprep.mubr.msk.f32.mxu0 %vm584_vm1, %v5690_v26  ;;  %v6012_v26 = vld [vmem:[#allocation8 + $0x1f8] sm:$0xff] }
 0xaf8   : > { %9082 = vmatmul.mubr.msk.f32.gmra.mrb[56].mxu0 %vm584_vm1, %v9053_v30 }
 0xb19   : > { %v9060_v31 = vpop.f32.mrb[68].mxu1 }
 0xb1a   : > { %v5777_v36 = vpop.f32.mrb[69].mxu1 }
 0xb1b   : > { %9084 = vmatprep.mubr.msk.f32.mxu0 %vm584_vm1, %v5777_v36 }
 0xb1c   : > { %9085 = vmatmul.mubr.msk.f32.gmra.mrb[58].mxu0 %vm584_vm1, %v9060_v31 }
 0xb1d   : > { %9119 = vmatprep.mubr.msk.f32.mxu0 %vm584_vm1, %v12088_v50 }
 0xb20   : > { %9120 = vmatmul.mubr.msk.f32.vlgmr.msra.gmra.mrb[68].mxu0 %vm584_vm1, %v6380_v7 }
 0xb21   : > { %9514 = vmatpush3.bf16.xpose.msk.msra.mxu0 %vm10996_vm2, %v9509_v19  ;;  %9133 = vmatprep.mubr.msk.f32.mxu0 %vm584_vm1, %v6560_v23  ;;  %v6008_v19 = vld [vmem:[#allocation8 + $0x1d8] sm:$0xff] }
 0xb24   : > { %v9093_v34 = vpop.f32.mrb[70].mxu1 }
 0xb25   : > { %v6101_v21 = vadd.f32 %v9093_v34, %v5998_v41  ;;  %v6095_v40 = vpop.f32.mrb[71].mxu1 }
 0xb26   : > { %v6096_v44 = vadd.f32 %v6095_v40, %v5997_v13 }
 0xb27   : > { %v6744_v51 = vsel %vm1291_vm3, %v6101_v21, -inf }
 0xb28   : > { %9134 = vmatmul.mubr.msk.f32.vlgmr.msra.gmra.mrb[70].mxu0 %vm584_vm1, %v6562_v37  ;;  %6745 = vmax.xlane.f32.xlu1 %v6744_v51  ;;  %v6741_v39 = vsel %vm1291_vm3, %v6096_v44, -inf }
 0xb29   : > { %6742 = vmax.xlane.f32.xlu0 %v6741_v39 }
 0xb2c   : > { %v9100_v56 = vpop.f32.mrb[72].mxu1 }
 0xb2d   : > { %v6192_v61 = vadd.f32 %v9100_v56, %v6000_v46  ;;  %v6186_v27 = vpop.f32.mrb[73].mxu1 }
 0xb2e   : > { %v6187_v50 = vadd.f32 %v6186_v27, %v5999_v2 }
 0xb2f   : > { %v6750_v15 = vsel %vm1291_vm3, %v6192_v61, -inf }
 0xb30   : > { %6751 = vmax.xlane.f32.xlu0 %v6750_v15  ;;  %v6747_v7 = vsel %vm1291_vm3, %v6187_v50, -inf }
 0xb34   : > { %v9107_v12 = vpop.f32.mrb[74].mxu1  ;;  %6748 = vmax.xlane.f32.xlu0 %v6747_v7 }
 0xb35   : > { %v12139_v0 = vadd.f32 %v9107_v12, %v6002_v49  ;;  %v6277_v16 = vpop.f32.mrb[75].mxu1 }
 0xb36   : > { %v6278_v17 = vadd.f32 %v6277_v16, %v6001_v54 }
 0xb37   : > { %v6756_v20 = vsel %vm1291_vm3, %v12139_v0, -inf }
 0xb38   : > { %6757 = vmax.xlane.f32.xlu0 %v6756_v20  ;;  %v6753_v23 = vsel %vm1291_vm3, %v6278_v17, -inf }
 0xb39   : > { %6754 = vmax.xlane.f32.xlu1 %v6753_v23 }
 0xb3c   : > { %v9114_v37 = vpop.f32.mrb[76].mxu1 }
 0xb3d   : > { %v12144_v32 = vadd.f32 %v9114_v37, %v6004_v35  ;;  %v6368_v57 = vpop.f32.mrb[77].mxu1 }
 0xb3e   : > { %v6369_v47 = vadd.f32 %v6368_v57, %v6003_v59 }
 0xb3f   : > { %v6762_v6 = vsel %vm1291_vm3, %v12144_v32, -inf }
 0xb40   : > { %6763 = vmax.xlane.f32.xlu0 %v6762_v6  ;;  %v6759_v9 = vsel %vm1291_vm3, %v6369_v47, -inf }
 0xb41   : > { %6760 = vmax.xlane.f32.xlu1 %v6759_v9 }
 0xb44   : > { %v9128_v14 = vpop.f32.mrb[78].mxu1 }
 0xb45   : > { %v12149_v4 = vadd.f32 %v9128_v14, %v6008_v19  ;;  %v6550_v52 = vpop.f32.mrb[79].mxu1 }
 0xb46   : > { %v12151_v11 = vadd.f32 %v6550_v52, %v6007_v1 }
 0xb47   : > { %v6774_v42 = vsel %vm1291_vm3, %v12149_v4, -inf }
 0xb48   : > { %6775 = vmax.xlane.f32.xlu0 %v6774_v42  ;;  %v6771_v30 = vsel %vm1291_vm3, %v12151_v11, -inf }
 0xb49   : > { %6772 = vmax.xlane.f32.xlu1 %v6771_v30 }
 0xb4c   : > { %v9142_v29 = vpop.f32.mrb[80].mxu1 }
 0xb4d   : > { %v12157_v24 = vadd.f32 %v9142_v29, %v6012_v26  ;;  %v6732_v3 = vpop.f32.mrb[81].mxu1 }
 0xb4e   : > { %v12159_v31 = vadd.f32 %v6732_v3, %v6011_v55 }
 0xb4f   : > { %v6786_v36 = vsel %vm1291_vm3, %v12157_v24, -inf }
 0xb50   : > { %6787 = vmax.xlane.f32.xlu0 %v6786_v36  ;;  %v6783_v41 = vsel %vm1291_vm3, %v12159_v31, -inf }
 0xb51   : > { %6784 = vmax.xlane.f32.xlu1 %v6783_v41 }
 0xbb5   : > { %v6746_v13 = vpop.xlane.xlu1 %6745 }
 0xbb6   : > { %v6790_v34 = vsub.f32 %v6101_v21, %v6746_v13  ;;  %v6743_v40 = vpop.xlane.xlu0 %6742 }
 0xbb7   : > { %v6789_v51 = vsub.f32 %v6096_v44, %v6743_v40 }
 0xbb8   : > { %v6807_v39 = vmul.f32 1.442695, %v6790_v34 }
 0xbb9   : > { %v6805_v46 = vmul.f32 1.442695, %v6789_v51  ;;  %v6006_v51 = vld [vmem:[#allocation8 + $0x1c8] sm:$0xff] }
 0xbba   : > { %10227 = vpow2.f32 %v6807_v39  ;;  %v6005_v39 = vld [vmem:[#allocation8 + $0x1c0] sm:$0xff] }
 0xbbb   : > { %10229 = vpow2.f32 %v6805_v46 }
 0xbbd   : > { %v6752_v56 = vpop.xlane.xlu0 %6751 }
 0xbbe   : > { %v6792_v2 = vsub.f32 %v6192_v61, %v6752_v56 }
 0xbc0   : > { %v6811_v27 = vmul.f32 1.442695, %v6792_v2 }
 0xbc1   : > { %v6749_v15 = vpop.xlane.xlu0 %6748 }
 0xbc2   : > { %10231 = vpow2.f32 %v6811_v27  ;;  %v6791_v49 = vsub.f32 %v6187_v50, %v6749_v15 }
 0xbc4   : > { %v12165_v7 = vpop.eup %10227  ;;  %v6809_v54 = vmul.f32 1.442695, %v6791_v49 }
 0xbc5   : > { %v12167_v12 = vpop.eup %10229  ;;  %v6758_v16 = vpop.xlane.xlu0 %6757  ;;  %v6840_v21 = vsel %vm1291_vm3, %v12165_v7, 0.0 }
 0xbc6   : > { %10233 = vpow2.f32 %v6809_v54  ;;  %v6794_v44 = vsub.f32 %v12139_v0, %v6758_v16  ;;  %v6755_v20 = vpop.xlane.xlu1 %6754  ;;  %6841 = vadd.xlane.f32.xlu0 %v6840_v21  ;;  %v6837_v61 = vsel %vm1291_vm3, %v12167_v12, 0.0  ;;  %v6010_v54 = vld [vmem:[#allocation8 + $0x1e8] sm:$0xff]  ;;  %v6009_v16 = vld [vmem:[#allocation8 + $0x1e0] sm:$0xff] }
 0xbc7   : > { %v6793_v23 = vsub.f32 %v6278_v17, %v6755_v20  ;;  %6838 = vadd.xlane.f32.xlu1 %v6837_v61 }
 0xbc8   : > { %v6815_v50 = vmul.f32 1.442695, %v6794_v44 }
 0xbc9   : > { %v6813_v35 = vmul.f32 1.442695, %v6793_v23 }
 0xbca   : > { %10235 = vpow2.f32 %v6815_v50 }
 0xbcb   : > { %10237 = vpow2.f32 %v6813_v35 }
 0xbcc   : > { %v12174_v59 = vpop.eup %10231 }
 0xbcd   : > { %v6846_v37 = vsel %vm1291_vm3, %v12174_v59, 0.0  ;;  %v6764_v29 = vpop.xlane.xlu0 %6763 }
 0xbce   : > { %v6761_v57 = vpop.xlane.xlu1 %6760  ;;  %6847 = vadd.xlane.f32.xlu0 %v6846_v37  ;;  %v6796_v36 = vsub.f32 %v12144_v32, %v6764_v29 }
 0xbcf   : > { %v6795_v6 = vsub.f32 %v6369_v47, %v6761_v57 }
 0xbd0   : > { %v12178_v0 = vpop.eup %10233  ;;  %v6819_v13 = vmul.f32 1.442695, %v6796_v36 }
 0xbd1   : > { %v6817_v9 = vmul.f32 1.442695, %v6795_v6  ;;  %v6843_v19 = vsel %vm1291_vm3, %v12178_v0, 0.0 }
 0xbd2   : > { %6844 = vadd.xlane.f32.xlu1 %v6843_v19 }
 0xbd3   : > { %10239 = vpow2.f32 %v6817_v9 }
 0xbd4   : > { %v12182_v17 = vpop.eup %10235 }
 0xbd5   : > { %v12184_v1 = vpop.eup %10237  ;;  %v6852_v14 = vsel %vm1291_vm3, %v12182_v17, 0.0 }
 0xbd6   : > { %v6773_v52 = vpop.xlane.xlu1 %6772  ;;  %6853 = vadd.xlane.f32.xlu0 %v6852_v14  ;;  %v6849_v47 = vsel %vm1291_vm3, %v12184_v1, 0.0 }
 0xbd7   : > { %v6799_v42 = vsub.f32 %v12151_v11, %v6773_v52  ;;  %6850 = vadd.xlane.f32.xlu1 %v6849_v47  ;;  %v6776_v11 = vpop.xlane.xlu0 %6775 }
 0xbd8   : > { %v6800_v34 = vsub.f32 %v12149_v4, %v6776_v11 }
 0xbd9   : > { %v6825_v30 = vmul.f32 1.442695, %v6799_v42 }
 0xbda   : > { %v6827_v40 = vmul.f32 1.442695, %v6800_v34 }
 0xbdb   : > { %10241 = vpow2.f32 %v6825_v30 }
 0xbdc   : > { %10243 = vpow2.f32 %v6819_v13 }
 0xbdd   : > { %v12191_v26 = vpop.eup %10239  ;;  %10245 = vpow2.f32 %v6827_v40  ;;  %v6788_v6 = vpop.xlane.xlu0 %6787 }
 0xbde   : > { %v6855_v55 = vsel %vm1291_vm3, %v12191_v26, 0.0  ;;  %v6785_v57 = vpop.xlane.xlu1 %6784  ;;  %v6804_v19 = vsub.f32 %v12157_v24, %v6788_v6 }
 0xbdf   : > { %6856 = vadd.xlane.f32.xlu1 %v6855_v55  ;;  %v6803_v9 = vsub.f32 %v12159_v31, %v6785_v57 }
 0xbe0   : > { %v6835_v52 = vmul.f32 1.442695, %v6804_v19 }
 0xbe1   : > { %v6833_v14 = vmul.f32 1.442695, %v6803_v9 }
 0xbe3   : > { %10247 = vpow2.f32 %v6833_v14 }
 0xbe4   : > { %10249 = vpow2.f32 %v6835_v52 }
 0xbe5   : > { %v12195_v3 = vpop.eup %10241 }
 0xbe6   : > { %v6867_v41 = vsel %vm1291_vm3, %v12195_v3, 0.0  ;;  %v12202_v32 = vpop.eup %10243 }
 0xbe7   : > { %6868 = vadd.xlane.f32.xlu1 %v6867_v41  ;;  %v6858_v4 = vsel %vm1291_vm3, %v12202_v32, 0.0  ;;  %v12208_v50 = vpop.eup %10245 }
 0xbe8   : > { %v6870_v37 = vsel %vm1291_vm3, %v12208_v50, 0.0 }
 0xbed   : > { %v12219_v47 = vpop.eup %10247 }
 0xbee   : > { %v12221_v42 = vpop.eup %10249 }
 0xbf3   : > { %v9121_v46 = vpop.f32.mrb[68].mxu0 }
 0xbf4   : > { %v6465_v56 = vadd.f32 %v9121_v46, %v6006_v51  ;;  %v6459_v2 = vpop.f32.mrb[69].mxu0 }
 0xbf5   : > { %v6460_v27 = vadd.f32 %v6459_v2, %v6005_v39 }
 0xbf6   : > { %v6768_v15 = vsel %vm1291_vm3, %v6465_v56, -inf }
 0xbf7   : > { %6769 = vmax.xlane.f32.xlu0 %v6768_v15  ;;  %v6765_v49 = vsel %vm1291_vm3, %v6460_v27, -inf }
 0xbf8   : > { %6766 = vmax.xlane.f32.xlu1 %v6765_v49 }
 0xbfb   : > { %v9135_v21 = vpop.f32.mrb[70].mxu0  ;;  %6859 = vadd.xlane.f32.xlu0 %v6858_v4 }
 0xbfc   : > { %v6647_v44 = vadd.f32 %v9135_v21, %v6010_v54  ;;  %v6641_v20 = vpop.f32.mrb[71].mxu0 }
 0xbfd   : > { %v6642_v61 = vadd.f32 %v6641_v20, %v6009_v16 }
 0xbfe   : > { %v6780_v23 = vsel %vm1291_vm3, %v6647_v44, -inf }
 0xbff   : > { %6781 = vmax.xlane.f32.xlu0 %v6780_v23  ;;  %v6777_v35 = vsel %vm1291_vm3, %v6642_v61, -inf }
 0xc00   : > { %6778 = vmax.xlane.f32.xlu1 %v6777_v35 }
 0xc03   : > { %6871 = vadd.xlane.f32.xlu0 %v6870_v37 }
 0xc11   : > { %9996 = vrot.lane.b32.xlu1 %v10906_v28, %s10559_s30  ;;  %v6879_v28 = vsel %vm1291_vm3, %v12219_v47, 0.0 }
 0xc19   : > { %10001 = vrot.lane.b32.xlu0 %v10916_v33, %s10559_s30  ;;  %v6882_v33 = vsel %vm1291_vm3, %v12221_v42, 0.0 }
 0xc35   : > { %6880 = vadd.xlane.f32.xlu1 %v6879_v28 }
 0xc38   : > { %6883 = vadd.xlane.f32.xlu0 %v6882_v33 }
 0xc46   : > { %10006 = vrot.lane.b32.xlu1 %v10926_v38, %s10559_s30 }
 0xc53   : > { %v6842_v13 = vpop.xlane.xlu0 %6841 }
 0xc54   : > { %v6839_v24 = vpop.xlane.xlu1 %6838 }
 0xc55   : > { %10251 = vrcp.f32 %v6839_v24 }
 0xc5b   : > { %v6848_v11 = vpop.xlane.xlu0 %6847 }
 0xc5f   : > { %v10252_v31 = vpop.eup %10251  ;;  %v6845_v30 = vpop.xlane.xlu1 %6844 }
 0xc60   : > { %v6901_v55 = vmul.f32 %v10252_v31, %v12167_v12 }
 0xc62   : > { %9147 = vmatprep.mubr.msk.f32.mxu0 %vm1291_vm3, %v6901_v55 }
 0xc63   : > { %v12233_v40 = vpop.xlane.xlu0 %6853 }
 0xc64   : > { %v6851_v29 = vpop.xlane.xlu1 %6850 }
 0xc65   : > { %10253 = vrcp.f32 %v6851_v29 }
 0xc6c   : > { %v6857_v34 = vpop.xlane.xlu1 %6856 }
 0xc6f   : > { %v10254_v36 = vpop.eup %10253 }
 0xc70   : > { %v6905_v41 = vmul.f32 %v10254_v36, %v12184_v1 }
 0xc72   : > { %9161 = vmatprep.mubr.msk.f32.mxu1 %vm1291_vm3, %v6905_v41 }
 0xc74   : > { %v12235_v38 = vpop.xlane.xlu1 %6868 }
 0xc84   : > { %v6770_v51 = vpop.xlane.xlu0 %6769 }
 0xc85   : > { %v6798_v39 = vsub.f32 %v6465_v56, %v6770_v51  ;;  %v6767_v46 = vpop.xlane.xlu1 %6766 }
 0xc86   : > { %v6797_v12 = vsub.f32 %v6460_v27, %v6767_v46 }
 0xc87   : > { %v6823_v2 = vmul.f32 1.442695, %v6798_v39 }
 0xc88   : > { %v6821_v15 = vmul.f32 1.442695, %v6797_v12  ;;  %v12237_v49 = vpop.xlane.xlu0 %6859 }
 0xc89   : > { %10255 = vpow2.f32 %v6823_v2 }
 0xc8a   : > { %10257 = vpow2.f32 %v6821_v15 }
 0xc8b   : > { %10259 = vrcp.f32 %v6842_v13 }
 0xc8c   : > { %10261 = vrcp.f32 %v6845_v30  ;;  %v6782_v1 = vpop.xlane.xlu0 %6781 }
 0xc8d   : > { %v6802_v54 = vsub.f32 %v6647_v44, %v6782_v1  ;;  %v6779_v4 = vpop.xlane.xlu1 %6778  ;;  %10263 = vrcp.f32 %v6848_v11 }
 0xc8e   : > { %v6801_v16 = vsub.f32 %v6642_v61, %v6779_v4  ;;  %10265 = vrcp.f32 %v6857_v34 }
 0xc8f   : > { %v6831_v21 = vmul.f32 1.442695, %v6802_v54 }
 0xc90   : > { %v6829_v20 = vmul.f32 1.442695, %v6801_v16  ;;  %v12239_v23 = vpop.xlane.xlu0 %6871 }
 0xc91   : > { %10267 = vpow2.f32 %v6831_v21  ;;  %v9997_v56 = vpop.permute.xlu1 %9996 }
 0xc92   : > { %v9999_v27 = vunpack.i.h.bf16 %v9997_v56  ;;  %v9998_v35 = vunpack.i.l.bf16 %v9997_v56  ;;  %10269 = vpow2.f32 %v6829_v20 }
 0xc93   : > { %v12241_v37 = vpop.eup %10255  ;;  %10271 = vrcp.f32 %v12233_v40 }
 0xc94   : > { %v12243_v57 = vpop.eup %10257  ;;  %v9521_v6 = vpack.c.bf16 %v9999_v27, %v9998_v35  ;;  %v10002_v9 = vpop.permute.xlu0 %10001  ;;  %v6864_v44 = vsel %vm1291_vm3, %v12241_v37, 0.0 }
 0xc95   : > { %v10260_v61 = vpop.eup %10259  ;;  %v10004_v19 = vunpack.i.h.bf16 %v10002_v9  ;;  %v10003_v14 = vunpack.i.l.bf16 %v10002_v9  ;;  %6865 = vadd.xlane.f32.xlu0 %v6864_v44  ;;  %v6861_v52 = vsel %vm1291_vm3, %v12243_v57, 0.0 }
 0xc96   : > { %v10262_v28 = vpop.eup %10261  ;;  %9522 = vmatprep.subr.bf16.mxu0 %v9521_v6  ;;  %6862 = vadd.xlane.f32.xlu1 %v6861_v52  ;;  %v6902_v24 = vmul.f32 %v10260_v61, %v12165_v7 }
 0xc97   : > { %v9525_v33 = vpack.c.bf16 %v10004_v19, %v10003_v14  ;;  %9524 = vmatpush3.bf16.msra.mxu0 %v9521_v6  ;;  %v10264_v31 = vpop.eup %10263  ;;  %v6903_v30 = vmul.f32 %v10262_v28, %v12178_v0 }
 0xc98   : > { %v10266_v55 = vpop.eup %10265  ;;  %v6904_v36 = vmul.f32 %v10264_v31, %v12174_v59 }
 0xc99   : > { %9526 = vmatprep.subr.bf16.mxu0 %v9525_v33  ;;  %v6907_v7 = vmul.f32 %v10266_v55, %v12191_v26 }
 0xc9a   : > { %9148 = vmatmul.mubr.msk.f32.vlgmr.msra.gmra.mrb[72].mxu0 %vm1291_vm3, %v6902_v24 }
 0xc9b   : > { %v12252_v29 = vpop.eup %10267  ;;  %9528 = vmatpush3.bf16.msra.mxu0 %v9525_v33  ;;  %9154 = vmatprep.mubr.msk.f32.mxu0 %vm1291_vm3, %v6903_v30 }
 0xc9c   : > { %v6876_v41 = vsel %vm1291_vm3, %v12252_v29, 0.0  ;;  %v12258_v13 = vpop.eup %10269 }
 0xc9d   : > { %6877 = vadd.xlane.f32.xlu0 %v6876_v41  ;;  %v6873_v0 = vsel %vm1291_vm3, %v12258_v13, 0.0 }
 0xc9e   : > { %9155 = vmatmul.mubr.msk.f32.vlgmr.msra.gmra.mrb[74].mxu0 %vm1291_vm3, %v6904_v36 }
 0xc9f   : > { %9168 = vmatprep.mubr.msk.f32.mxu0 %vm1291_vm3, %v6907_v7 }
 0xca1   : > { %6874 = vadd.xlane.f32.xlu0 %v6873_v0 }
 0xca7   : > { %10016 = vrot.lane.b32.xlu1 %v10948_v48, %s10559_s30  ;;  %v10272_v48 = vpop.eup %10271 }
 0xcab   : > { %10021 = vrot.lane.b32.xlu1 %v10958_v53, %s10559_s30  ;;  %v6906_v53 = vmul.f32 %v10272_v48, %v12182_v17 }
 0xcaf   : > { %10026 = vrot.lane.b32.xlu1 %v10968_v58, %s10559_s30 }
 0xcb3   : > { %10031 = vrot.lane.b32.xlu1 %v10978_v62, %s10559_s30 }
 0xcb7   : > { %10011 = vrot.lane.b32.xlu0 %v10936_v43, %s10559_s30 }
 0xcc2   : > { %v6881_v59 = vpop.xlane.xlu1 %6880 }
 0xcc5   : > { %v6884_v58 = vpop.xlane.xlu0 %6883 }
 0xcc6   : > { %v10007_v26 = vpop.permute.xlu1 %10006 }
 0xcc7   : > { %v10009_v11 = vunpack.i.h.bf16 %v10007_v26  ;;  %v10008_v34 = vunpack.i.l.bf16 %v10007_v26 }
 0xcc9   : > { %v9529_v51 = vpack.c.bf16 %v10009_v11, %v10008_v34 }
 0xccb   : > { %9530 = vmatprep.subr.bf16.mxu1 %v9529_v51 }
 0xccc   : > { %9532 = vmatpush3.bf16.msra.mxu1 %v9529_v51 }
 0xccf   : > { %9162 = vmatmul.mubr.msk.f32.vlgmr.msra.gmra.mrb[82].mxu1 %vm1291_vm3, %v6906_v53 }
 0xd22   : > { %v6866_v39 = vpop.xlane.xlu0 %6865 }
 0xd23   : > { %10273 = vrcp.f32 %v6866_v39  ;;  %v6863_v62 = vpop.xlane.xlu1 %6862 }
 0xd24   : > { %10275 = vrcp.f32 %v6863_v62 }
 0xd25   : > { %10277 = vrcp.f32 %v12237_v49 }
 0xd26   : > { %10279 = vrcp.f32 %v12235_v38 }
 0xd27   : > { %v10017_v43 = vpop.permute.xlu1 %10016 }
 0xd28   : > { %v10019_v46 = vunpack.i.h.bf16 %v10017_v43  ;;  %v10018_v40 = vunpack.i.l.bf16 %v10017_v43 }
 0xd2a   : > { %v9537_v12 = vpack.c.bf16 %v10019_v46, %v10018_v40  ;;  %v6878_v2 = vpop.xlane.xlu0 %6877  ;;  %v8289_v40 = vld [vmem:[#allocation11] ss:$0 sm:$0xff] }
 0xd2b   : > { %v10022_v15 = vpop.permute.xlu1 %10021  ;;  %10281 = vrcp.f32 %v6878_v2 }
 0xd2c   : > { %9538 = vmatprep.subr.bf16.mxu1 %v9537_v12  ;;  %v10024_v38 = vunpack.i.h.bf16 %v10022_v15  ;;  %v10023_v35 = vunpack.i.l.bf16 %v10022_v15 }
 0xd2d   : > { %v10274_v1 = vpop.eup %10273  ;;  %9540 = vmatpush3.bf16.msra.mxu1 %v9537_v12 }
 0xd2e   : > { %v10276_v17 = vpop.eup %10275  ;;  %v6875_v54 = vpop.xlane.xlu0 %6874  ;;  %v6910_v21 = vmul.f32 %v10274_v1, %v12241_v37  ;;  %v9541_v61 = vpack.c.bf16 %v10024_v38, %v10023_v35 }
 0xd2f   : > { %10283 = vrcp.f32 %v6875_v54  ;;  %v10027_v4 = vpop.permute.xlu1 %10026  ;;  %v6909_v16 = vmul.f32 %v10276_v17, %v12243_v57 }
 0xd30   : > { %10285 = vrcp.f32 %v12239_v23  ;;  %v10029_v20 = vunpack.i.h.bf16 %v10027_v4  ;;  %v10028_v56 = vunpack.i.l.bf16 %v10027_v4  ;;  %v10278_v23 = vpop.eup %10277 }
 0xd31   : > { %10287 = vrcp.f32 %v6881_v59  ;;  %9175 = vmatprep.mubr.msk.f32.mxu1 %vm1291_vm3, %v6909_v16  ;;  %v10280_v37 = vpop.eup %10279  ;;  %v6908_v33 = vmul.f32 %v10278_v23, %v12202_v32 }
 0xd32   : > { %v9545_v49 = vpack.c.bf16 %v10029_v20, %v10028_v56  ;;  %v10012_v27 = vpop.permute.xlu0 %10011  ;;  %9176 = vmatmul.mubr.msk.f32.vlgmr.msra.gmra.mrb[84].mxu1 %vm1291_vm3, %v6910_v21  ;;  %10289 = vrcp.f32 %v6884_v58  ;;  %v6911_v31 = vmul.f32 %v10280_v37, %v12195_v3 }
 0xd33   : > { %v10014_v6 = vunpack.i.h.bf16 %v10012_v27  ;;  %v10013_v9 = vunpack.i.l.bf16 %v10012_v27  ;;  %v10032_v44 = vpop.permute.xlu1 %10031 }
 0xd34   : > { %9546 = vmatprep.subr.bf16.mxu1 %v9545_v49  ;;  %v10034_v19 = vunpack.i.h.bf16 %v10032_v44  ;;  %v10033_v14 = vunpack.i.l.bf16 %v10032_v44 }
 0xd35   : > { %v9533_v57 = vpack.c.bf16 %v10014_v6, %v10013_v9  ;;  %9548 = vmatpush3.bf16.msra.mxu1 %v9545_v49  ;;  %v10282_v52 = vpop.eup %10281 }
 0xd36   : > { %v9549_v36 = vpack.c.bf16 %v10034_v19, %v10033_v14  ;;  %v6914_v41 = vmul.f32 %v10282_v52, %v12252_v29 }
 0xd37   : > { %9534 = vmatprep.subr.bf16.mxu0 %v9533_v57 }
 0xd38   : > { %9536 = vmatpush3.bf16.msra.mxu0 %v9533_v57 }
 0xd39   : > { %v10284_v28 = vpop.eup %10283  ;;  %9542 = vmatprep.subr.bf16.mxu0 %v9541_v61 }
 0xd3a   : > { %v10286_v24 = vpop.eup %10285  ;;  %v6913_v30 = vmul.f32 %v10284_v28, %v12258_v13  ;;  %v7613_v13 = vld [vmem:[#allocation10 + $0x18] sm:$0xff] }
 0xd3b   : > { %v10288_v55 = vpop.eup %10287  ;;  %9169 = vmatmul.mubr.msk.f32.vlgmr.msra.gmra.mrb[76].mxu0 %vm1291_vm3, %v6908_v33  ;;  %v6912_v7 = vmul.f32 %v10286_v24, %v12208_v50 }
 0xd3c   : > { %9544 = vmatpush3.bf16.msra.mxu0 %v9541_v61  ;;  %9182 = vmatprep.mubr.msk.f32.mxu0 %vm1291_vm3, %v6911_v31  ;;  %v10290_v32 = vpop.eup %10289  ;;  %v6915_v3 = vmul.f32 %v10288_v55, %v12219_v47 }
 0xd3d   : > { %9189 = vmatprep.mubr.msk.f32.mxu1 %vm1291_vm3, %v6913_v30  ;;  %9550 = vmatprep.subr.bf16.mxu0 %v9549_v36  ;;  %v6916_v29 = vmul.f32 %v10290_v32, %v12221_v42 }
 0xd3e   : > { %9190 = vmatmul.mubr.msk.f32.vlgmr.msra.gmra.mrb[86].mxu1 %vm1291_vm3, %v6914_v41 }
 0xd3f   : > { %9183 = vmatmul.mubr.msk.f32.vlgmr.msra.gmra.mrb[78].mxu0 %vm1291_vm3, %v6912_v7 }
 0xd40   : > { %9552 = vmatpush3.bf16.msra.mxu0 %v9549_v36  ;;  %9196 = vmatprep.mubr.msk.f32.mxu0 %vm1291_vm3, %v6915_v3 }
 0xd41   : > { %9199 = vmatprep.subr.mxu0 %v7613_v13 }
 0xd43   : > { %9197 = vmatmul.mubr.msk.f32.vlgmr.msra.gmra.mrb[80].mxu0 %vm1291_vm3, %v6916_v29 }
 0xd44   : > { %9200 = vmatpush3.msra.mxu0 %v7613_v13 }
 0xd6d   : > { %v9149_v50 = vpop.f32.mrb[72].mxu0 }
 0xd6e   : > { %v6995_v0 = vpop.f32.mrb[73].mxu0 }
 0xd6f   : > { %9201 = vmatprep.mubr.msk.f32.mxu0 %vm584_vm1, %v6995_v0 }
 0xd70   : > { %9202 = vmatmul.mubr.msk.f32.vlgmr.msra.gmra.mrb[44].mxu0 %vm584_vm1, %v9149_v50 }
 0xd71   : > { %v9156_v59 = vpop.f32.mrb[74].mxu0 }
 0xd72   : > { %v7082_v47 = vpop.f32.mrb[75].mxu0 }
 0xd73   : > { %9204 = vmatprep.mubr.msk.f32.mxu0 %vm584_vm1, %v7082_v47 }
 0xd74   : > { %9205 = vmatmul.mubr.msk.f32.gmra.mrb[46].mxu0 %vm584_vm1, %v9156_v59 }
 0xda2   : > { %v9163_v26 = vpop.f32.mrb[82].mxu1 }
 0xda3   : > { %v7169_v11 = vpop.f32.mrb[83].mxu1 }
 0xda4   : > { %9207 = vmatprep.mubr.msk.f32.mxu0 %vm584_vm1, %v7169_v11 }
 0xda5   : > { %9208 = vmatmul.mubr.msk.f32.gmra.mrb[48].mxu0 %vm584_vm1, %v9163_v26 }
 0xe05   : > { %v9177_v42 = vpop.f32.mrb[84].mxu1 }
 0xe06   : > { %v7343_v34 = vpop.f32.mrb[85].mxu1 }
 0xe0e   : > { %v9170_v51 = vpop.f32.mrb[76].mxu0 }
 0xe0f   : > { %v7256_v48 = vpop.f32.mrb[77].mxu0 }
 0xe10   : > { %9210 = vmatprep.mubr.msk.f32.mxu0 %vm584_vm1, %v7256_v48 }
 0xe11   : > { %v9191_v53 = vpop.f32.mrb[86].mxu1  ;;  %9211 = vmatmul.mubr.msk.f32.gmra.mrb[50].mxu0 %vm584_vm1, %v9170_v51 }
 0xe12   : > { %v7517_v58 = vpop.f32.mrb[87].mxu1  ;;  %v9184_v39 = vpop.f32.mrb[78].mxu0  ;;  %9213 = vmatprep.mubr.msk.f32.mxu0 %vm584_vm1, %v7343_v34 }
 0xe13   : > { %v7430_v62 = vpop.f32.mrb[79].mxu0 }
 0xe15   : > { %9214 = vmatmul.mubr.msk.f32.gmra.mrb[52].mxu0 %vm584_vm1, %v9177_v42 }
 0xe16   : > { %v9198_v43 = vpop.f32.mrb[80].mxu0  ;;  %9216 = vmatprep.mubr.msk.f32.mxu0 %vm584_vm1, %v7430_v62 }
 0xe17   : > { %v7604_v46 = vpop.f32.mrb[81].mxu0 }
 0xe19   : > { %9217 = vmatmul.mubr.msk.f32.gmra.mrb[54].mxu0 %vm584_vm1, %v9184_v39 }
 0xe1a   : > { %9219 = vmatprep.mubr.msk.f32.mxu0 %vm584_vm1, %v7517_v58 }
 0xe1d   : > { %9220 = vmatmul.mubr.msk.f32.gmra.mrb[56].mxu0 %vm584_vm1, %v9191_v53 }
 0xe1e   : > { %9222 = vmatprep.mubr.msk.f32.mxu0 %vm584_vm1, %v7604_v46 }
 0xe21   : > { %9223 = vmatmul.mubr.msk.f32.gmra.mrb[58].mxu0 %vm584_vm1, %v9198_v43 }
 0xe43   : > { %v9203_v12 = vpop.f32.mrb[44].mxu0 }
 0xe44   : > { %v7831_v2 = vadd.f32 %v9203_v12, %v8289_v40  ;;  %v7728_v15 = vpop.f32.mrb[45].mxu0 }
 0xe45   : > { %v7830_v1 = vadd.f32 %v8289_v40, %v7728_v15 }
 0xe46   : > { %7847 = vst.msk [vmem:[%s12317_s14 + $0x8] sm:$0xff] %vm368_vm0, %v7831_v2 }
 0xe47   : > { %7846 = vst.msk [vmem:[%s12317_s14] sm:$0xff] %vm368_vm0, %v7830_v1  ;;  %v9206_v17 = vpop.f32.mrb[46].mxu0 }
 0xe48   : > { %v7833_v54 = vadd.f32 %v9206_v17, %v8289_v40  ;;  %v7738_v4 = vpop.f32.mrb[47].mxu0 }
 0xe49   : > { %v7832_v16 = vadd.f32 %v8289_v40, %v7738_v4 }
 0xe4a   : > { %7849 = vst.msk [vmem:[%s12317_s14 + $0x18] sm:$0xff] %vm368_vm0, %v7833_v54 }
 0xe4b   : > { %7848 = vst.msk [vmem:[%s12317_s14 + $0x10] sm:$0xff] %vm368_vm0, %v7832_v16 }
 0xe78   : > { %v9209_v21 = vpop.f32.mrb[48].mxu0 }
 0xe79   : > { %v7835_v20 = vadd.f32 %v9209_v21, %v8289_v40  ;;  %v7748_v56 = vpop.f32.mrb[49].mxu0 }
 0xe7a   : > { %v7834_v49 = vadd.f32 %v8289_v40, %v7748_v56 }
 0xe7b   : > { %7851 = vst.msk [vmem:[%s12317_s14 + $0x28] sm:$0xff] %vm368_vm0, %v7835_v20 }
 0xe7c   : > { %7850 = vst.msk [vmem:[%s12317_s14 + $0x20] sm:$0xff] %vm368_vm0, %v7834_v49 }
 0xee4   : > { %v9212_v27 = vpop.f32.mrb[50].mxu0 }
 0xee5   : > { %v9555_v38 = vadd.f32 %v9212_v27, %v11802_v18  ;;  %v7758_v35 = vpop.f32.mrb[51].mxu0 }
 0xee6   : > { %v9556_v6 = vadd.f32 %v7758_v35, %v11804_v45 }
 0xee7   : > { %v7837_v9 = vadd.f32 %v9555_v38, %v8289_v40 }
 0xee8   : > { %v7836_v44 = vadd.f32 %v9556_v6, %v8289_v40  ;;  %v9215_v57 = vpop.f32.mrb[52].mxu0 }
 0xee9   : > { %7853 = vst.msk [vmem:[%s12317_s14 + $0x38] sm:$0xff] %vm368_vm0, %v7837_v9  ;;  %v9557_v23 = vadd.f32 %v9215_v57, %v11806_v63  ;;  %v7768_v37 = vpop.f32.mrb[53].mxu0 }
 0xeea   : > { %7852 = vst.msk [vmem:[%s12317_s14 + $0x30] sm:$0xff] %vm368_vm0, %v7836_v44  ;;  %v9558_v61 = vadd.f32 %v7768_v37, %v11808_v5 }
 0xeeb   : > { %v7839_v19 = vadd.f32 %v9557_v23, %v8289_v40 }
 0xeec   : > { %v7838_v18 = vadd.f32 %v9558_v61, %v8289_v40  ;;  %v9218_v14 = vpop.f32.mrb[54].mxu0 }
 0xeed   : > { %7855 = vst.msk [vmem:[%s12317_s14 + $0x48] sm:$0xff] %vm368_vm0, %v7839_v19  ;;  %v9559_v45 = vadd.f32 %v9218_v14, %v11810_v22  ;;  %v7778_v52 = vpop.f32.mrb[55].mxu0 }
 0xeee   : > { %7854 = vst.msk [vmem:[%s12317_s14 + $0x40] sm:$0xff] %vm368_vm0, %v7838_v18  ;;  %v9560_v63 = vadd.f32 %v7778_v52, %v11812_v10 }
 0xeef   : > { %v7841_v28 = vadd.f32 %v9559_v45, %v8289_v40 }
 0xef0   : > { %v7840_v33 = vadd.f32 %v9560_v63, %v8289_v40  ;;  %v9221_v24 = vpop.f32.mrb[56].mxu0 }
 0xef1   : > { %7857 = vst.msk [vmem:[%s12317_s14 + $0x58] sm:$0xff] %vm368_vm0, %v7841_v28  ;;  %v9561_v5 = vadd.f32 %v9221_v24, %v11814_v60  ;;  %v7788_v31 = vpop.f32.mrb[57].mxu0  ;;  %v12460_v60 = vld [vmem:[#allocation21_spill] sm:$0xff] }
 0xef2   : > { %7856 = vst.msk [vmem:[%s12317_s14 + $0x50] sm:$0xff] %vm368_vm0, %v7840_v33  ;;  %v9562_v22 = vadd.f32 %v7788_v31, %v11816_v25 }
 0xef3   : > { %v7843_v30 = vadd.f32 %v9561_v5, %v8289_v40 }
 0xef4   : > { %v7842_v55 = vadd.f32 %v9562_v22, %v8289_v40  ;;  %v9224_v36 = vpop.f32.mrb[58].mxu0 }
 0xef5   : > { %7859 = vst.msk [vmem:[%s12317_s14 + $0x68] sm:$0xff] %vm368_vm0, %v7843_v30  ;;  %v9563_v10 = vadd.f32 %v9224_v36, %v11818_v8  ;;  %v7798_v41 = vpop.f32.mrb[59].mxu0 }
 0xef6   : > { %7858 = vst.msk [vmem:[%s12317_s14 + $0x60] sm:$0xff] %vm368_vm0, %v7842_v55  ;;  %v9564_v7 = vadd.f32 %v7798_v41, %v12460_v60 }
 0xef7   : > { %v7845_v32 = vadd.f32 %v9563_v10, %v8289_v40 }
 0xef8   : > { %v7844_v25 = vadd.f32 %v9564_v7, %v8289_v40 }
 0xef9   : > { %7861 = vst.msk [vmem:[%s12317_s14 + $0x78] sm:$0xff] %vm368_vm0, %v7845_v32 }
 0xefa   : > { %7860 = vst.msk [vmem:[%s12317_s14 + $0x70] sm:$0xff] %vm368_vm0, %v7844_v25 }
 0xefb   : > { %10474 = shalt.err (!%p10471_p8)
}
 0xefc   : > { %s10475_s8 = scalar_lea.hbm %s12362_s20, 2048  ;;  %s10479_s30 = scalar_lea.hbm %s12418_s6, 4096 }
 0xefd   : > { %p10476_p6 = scmp.ne.s32.totalorder %s12362_s20, %s10475_s8  ;;  %p10480_p3 = scmp.lt.u32.totalorder %s12362_s20, %s12418_s6 }
 0xefe   : > { %p10481_p5 = scmp.lt.u32.totalorder %s10479_s30, %s10475_s8  ;;  %p10483_p7 = scmp.lt.u32.totalorder %s10475_s8, %s12362_s20 }
 0xeff   : > { %p10477_p10 = pnand %p10476_p6, %p12461_p4 }
 0xf00   : > { %p10482_p9 = por %p10481_p5, %p10480_p3 }
 0xf01   : > { %p10478_p11 = pneg %p10477_p10 }
 0xf02   : > { %p10484_p12 = por %p10483_p7, %p10482_p9 }
 0xf04   : > { %p10485_p1 = pnand %p10484_p12, %p10478_p11 }
 0xf06   : > { %10488 = shalt.err (!%p10485_p1)
}
 0xf07   : > { %s10561_s28 = smov 128   ;;  %s10562_s19 = smov 8  }
 0xf08   : > { %9625 = dma.vmem_to_hbm [thread:$0]  (%p12461_p4), %s12364_s15, 2048, %s12362_s20, %s7863_s27, %s10561_s28, %s10561_s28, %s10562_s19  }
 0xf09 PF: > { %s7891_s25 = sand.u32 1, %s10527_s21   ;;  %p12462_p13 = scmp.ne.s32.totalorder %s12428_s10, 0 }
 0xf0a   : > { %p12463_p0 = scmp.ge.s32.totalorder %s10539_s24, 2  ;;  %s7892_s18 = scalar_lea.sflag [#allocation4], %s7891_s25 }
 0xf0c   : > { %p9648_p2 = pnand %p12463_p0, %p12462_p13 }
 0xf0e   : > { %10522 = dma.done.wait (!%p9648_p2), %s7892_s18, 2048  }
 0xf0f   : > { %10524 = vsyncadd (!%p9648_p2), %s7892_s18, 4294965248  ;;  %p22_p8 = scmp.ge.s32.totalorder %s10766_s7, 4   ;;  %s12464_s21 = smov %s10531_s22 }
 0xf10   : > { %s12465_s22 = smov %s10535_s23  ;;  %s12466_s23 = smov %s10778_s17 }
 0xf11   : > { %s12467_s24 = smov %s10766_s7  ;;  %24 = sbr.rel (!%p22_p8) target bundleno = 8 (0x8), region = 112 }
 0xf18   :  { %7897 = vsyncpa [#allocation3], 1 }
 0xf19   :  { %7899 = vsyncpa [#allocation3 + $0x1], 1 }
 0xf1a   :  { %7900 = vsyncpa [#allocation6], 1 }
 0xf1b   :  { %7901 = vsyncpa [#allocation9], 1 }
 0xf1c   :  { %7902 = vsyncpa [#allocation12], 1 }
 0xf1d   :  { %7903 = vsyncpa [#allocation4], 1 }
 0xf1e   :  { %7905 = vsyncpa [#allocation4 + $0x1], 1 }

</bundles_post_ra>
